<compile_context>
chip_gen: v7x
topology: tpu7x:2x2x1
jax: 0.10.0
libtpu: 0.0.40
codegen_flags: <defaults>
</compile_context>

<pallas_src>
import functools

import jax
import jax.numpy as jnp
from jax import lax
from jax.experimental import pallas as pl
from jax.experimental.pallas import tpu as pltpu


# ----------------------------------------------------------------------------
# Small helpers
# ----------------------------------------------------------------------------
def _round_up(x, m):
    return ((x + m - 1) // m) * m


def _pick_tile(dim, preferred, align):
    """Use `preferred` when the dim is big enough, else round the dim up to `align`."""
    return preferred if dim >= preferred else _round_up(dim, align)


def _pick_k_tile(K):
    """Pick (tk, Kp): single step when the padded K fits 1024 lanes, else tile by 512."""
    Kp = _round_up(K, 128)
    if Kp <= 1024:
        return Kp, Kp
    tk = 512
    return tk, _round_up(Kp, tk)


def _pad_to(x, shape):
    pads = [(0, t - s) for s, t in zip(x.shape, shape)]
    if any(p[1] for p in pads):
        x = jnp.pad(x, pads)
    return x


# ----------------------------------------------------------------------------
# Pallas kernels
# ----------------------------------------------------------------------------
def _gmm1_kernel(a_ref, b_ref, s_ref, t_ref, o_ref, *, relu):
    """Single-K-tile grouped matmul + fused BN affine / ReLU epilogue."""
    acc = jnp.dot(a_ref[...], b_ref[...], preferred_element_type=jnp.float32)
    acc = acc * s_ref[...] + t_ref[...]
    if relu:
        acc = jnp.maximum(acc, 0.0)
    o_ref[...] = acc.astype(o_ref.dtype)


def _gmm1_res_kernel(a_ref, b_ref, s_ref, t_ref, r_ref, o_ref, *, relu):
    """Single-K-tile variant with fused residual add."""
    acc = jnp.dot(a_ref[...], b_ref[...], preferred_element_type=jnp.float32)
    acc = acc * s_ref[...] + t_ref[...] + r_ref[...].astype(jnp.float32)
    if relu:
        acc = jnp.maximum(acc, 0.0)
    o_ref[...] = acc.astype(o_ref.dtype)


def _gmm_kernel(a_ref, b_ref, s_ref, t_ref, o_ref, acc_ref, *, relu):
    """Multi-K-tile grouped matmul with f32 VMEM accumulator + fused epilogue."""
    k = pl.program_id(3)

    @pl.when(k == 0)
    def _():
        acc_ref[...] = jnp.zeros_like(acc_ref)

    acc_ref[...] += jnp.dot(a_ref[...], b_ref[...],
                            preferred_element_type=jnp.float32)

    @pl.when(k == pl.num_programs(3) - 1)
    def _():
        acc = acc_ref[...] * s_ref[...] + t_ref[...]
        if relu:
            acc = jnp.maximum(acc, 0.0)
        o_ref[...] = acc.astype(o_ref.dtype)


def _gmm_res_kernel(a_ref, b_ref, s_ref, t_ref, r_ref, o_ref, acc_ref, *, relu):
    """Multi-K-tile variant with fused residual add in the epilogue."""
    k = pl.program_id(3)

    @pl.when(k == 0)
    def _():
        acc_ref[...] = jnp.zeros_like(acc_ref)

    acc_ref[...] += jnp.dot(a_ref[...], b_ref[...],
                            preferred_element_type=jnp.float32)

    @pl.when(k == pl.num_programs(3) - 1)
    def _():
        acc = acc_ref[...] * s_ref[...] + t_ref[...] + r_ref[...].astype(jnp.float32)
        if relu:
            acc = jnp.maximum(acc, 0.0)
        o_ref[...] = acc.astype(o_ref.dtype)


def _maxpool_kernel(x_ref, o_ref):
    # x_ref: (k*k, tm, C) window taps; reduce over the taps.
    o_ref[...] = jnp.max(x_ref[...], axis=0)


def _avgpool_kernel(x_ref, o_ref):
    # x_ref: (H*W, C) for one batch element; mean over spatial, f32 accumulation.
    o_ref[...] = jnp.mean(x_ref[...].astype(jnp.float32), axis=0, keepdims=True)


# ----------------------------------------------------------------------------
# Tiled (grouped) matmul wrapper
# ----------------------------------------------------------------------------
def grouped_matmul_affine(a, b, scale, shift, *, relu, residual=None,
                          out_dtype=jnp.bfloat16):
    """out[g] = act((a[g] @ b[g]) * scale[g] + shift[g] [+ residual[g]]).

    a: (G, M, K), b: (G, K, N), scale/shift: flat (G*N,) group-major,
    residual: (G, M, N) or None.  Operands are cast to bf16 for the MXU;
    accumulation and the epilogue stay in f32.
    """
    G, M, K = a.shape
    _, _, N = b.shape
    tm = _pick_tile(M, 512, 8)
    tn = _pick_tile(N, 256, 128)
    tk, Kp = _pick_k_tile(K)
    Mp, Np = _round_up(M, tm), _round_up(N, tn)
    nk = Kp // tk

    a_p = _pad_to(a, (G, Mp, Kp)).astype(jnp.bfloat16)
    b_p = _pad_to(b, (G, Kp, Np)).astype(jnp.bfloat16)
    s_p = _pad_to(scale.astype(jnp.float32).reshape(G, 1, N), (G, 1, Np))
    t_p = _pad_to(shift.astype(jnp.float32).reshape(G, 1, N), (G, 1, Np))

    flops = 2 * G * Mp * Kp * Np
    bytes_accessed = 2 * G * (Mp * Kp + Kp * Np + Mp * Np) + 8 * G * Np
    cost = pl.CostEstimate(flops=flops, transcendentals=0,
                           bytes_accessed=bytes_accessed)

    if nk == 1:
        # Fast path: whole contraction in one MXU pass, no accumulator scratch.
        in_specs = [
            pl.BlockSpec((None, tm, tk), lambda g, i, j: (g, i, 0)),
            pl.BlockSpec((None, tk, tn), lambda g, i, j: (g, 0, j)),
            pl.BlockSpec((None, 1, tn), lambda g, i, j: (g, 0, j)),
            pl.BlockSpec((None, 1, tn), lambda g, i, j: (g, 0, j)),
        ]
        args = [a_p, b_p, s_p, t_p]
        if residual is None:
            kernel = functools.partial(_gmm1_kernel, relu=relu)
        else:
            r_p = _pad_to(residual, (G, Mp, Np)).astype(jnp.bfloat16)
            in_specs.append(pl.BlockSpec((None, tm, tn), lambda g, i, j: (g, i, j)))
            args.append(r_p)
            kernel = functools.partial(_gmm1_res_kernel, relu=relu)
        out = pl.pallas_call(
            kernel,
            out_shape=jax.ShapeDtypeStruct((G, Mp, Np), out_dtype),
            grid=(G, Mp // tm, Np // tn),
            in_specs=in_specs,
            out_specs=pl.BlockSpec((None, tm, tn), lambda g, i, j: (g, i, j)),
            compiler_params=pltpu.CompilerParams(
                dimension_semantics=("parallel", "parallel", "parallel"),
                vmem_limit_bytes=48 * 1024 * 1024,
            ),
            cost_estimate=cost,
        )(*args)
    else:
        in_specs = [
            pl.BlockSpec((None, tm, tk), lambda g, i, j, k: (g, i, k)),
            pl.BlockSpec((None, tk, tn), lambda g, i, j, k: (g, k, j)),
            pl.BlockSpec((None, 1, tn), lambda g, i, j, k: (g, 0, j)),
            pl.BlockSpec((None, 1, tn), lambda g, i, j, k: (g, 0, j)),
        ]
        args = [a_p, b_p, s_p, t_p]
        if residual is None:
            kernel = functools.partial(_gmm_kernel, relu=relu)
        else:
            r_p = _pad_to(residual, (G, Mp, Np)).astype(jnp.bfloat16)
            in_specs.append(pl.BlockSpec((None, tm, tn), lambda g, i, j, k: (g, i, j)))
            args.append(r_p)
            kernel = functools.partial(_gmm_res_kernel, relu=relu)
        out = pl.pallas_call(
            kernel,
            out_shape=jax.ShapeDtypeStruct((G, Mp, Np), out_dtype),
            grid=(G, Mp // tm, Np // tn, nk),
            in_specs=in_specs,
            out_specs=pl.BlockSpec((None, tm, tn), lambda g, i, j, k: (g, i, j)),
            scratch_shapes=[pltpu.VMEM((tm, tn), jnp.float32)],
            compiler_params=pltpu.CompilerParams(
                dimension_semantics=("parallel", "parallel", "parallel", "arbitrary"),
                vmem_limit_bytes=48 * 1024 * 1024,
            ),
            cost_estimate=cost,
        )(*args)

    if Mp != M or Np != N:
        out = out[:, :M, :N]
    return out


def matmul_affine(a, b, scale, shift, *, relu, residual=None,
                  out_dtype=jnp.bfloat16):
    M, K = a.shape
    _, N = b.shape
    res = None if residual is None else residual.reshape(1, M, N)
    out = grouped_matmul_affine(a.reshape(1, M, K), b.reshape(1, K, N),
                                scale, shift, relu=relu, residual=res,
                                out_dtype=out_dtype)
    return out.reshape(M, N)


# ----------------------------------------------------------------------------
# Conv / pool wrappers (im2col glue in plain JAX, compute in Pallas)
# ----------------------------------------------------------------------------
# TODO(synk): fully fused im2col (reading shifted strided windows directly via the
# index_map with a kh*kw reduction grid axis) is not implemented; patches are
# materialized in bf16 instead (and fused by XLA under the outer jit).
def _extract_patches(x, k, s, p):
    """NHWC -> (N*Ho*Wo, k*k, C) patches, tap order (kh, kw)."""
    N, H, W, C = x.shape
    Ho = (H + 2 * p - k) // s + 1
    Wo = (W + 2 * p - k) // s + 1
    if k == 1 and p == 0:
        return x[:, ::s, ::s, :].reshape(N * Ho * Wo, 1, C), Ho, Wo
    xp = jnp.pad(x, ((0, 0), (p, p), (p, p), (0, 0)))
    cols = [xp[:, i:i + (Ho - 1) * s + 1:s, j:j + (Wo - 1) * s + 1:s, :]
            for i in range(k) for j in range(k)]
    patches = jnp.stack(cols, axis=3)            # (N, Ho, Wo, k*k, C)
    return patches.reshape(N * Ho * Wo, k * k, C), Ho, Wo


def _bn_scale_shift(bn, eps=1e-5):
    scale = bn['gamma'] / jnp.sqrt(bn['var'] + eps)
    shift = bn['beta'] - bn['mean'] * scale
    return scale, shift


def conv_bn_act(x, w, bn, *, stride, padding, relu, residual=None):
    """Conv2d(bias=False) + BatchNorm2d(inference) [+ residual] [+ ReLU]."""
    N, H, W, Cin = x.shape
    Cout, Cin_w, kh, kw = w.shape
    patches, Ho, Wo = _extract_patches(x, kh, stride, padding)
    M = N * Ho * Wo
    a = patches.reshape(M, kh * kw * Cin)
    wm = jnp.transpose(w, (2, 3, 1, 0)).reshape(kh * kw * Cin_w, Cout)
    scale, shift = _bn_scale_shift(bn)
    res2d = None if residual is None else residual.reshape(M, Cout)
    out = matmul_affine(a, wm, scale, shift, relu=relu, residual=res2d)
    return out.reshape(N, Ho, Wo, Cout)


def grouped_conv_bn_act(x, w, bn, *, stride, padding, groups, relu):
    """Grouped Conv2d + BN + ReLU as ONE batched Pallas matmul (group = grid axis)."""
    N, H, W, Cin = x.shape
    Cout, Cin_g, kh, kw = w.shape
    G = groups
    Cout_g = Cout // G
    patches, Ho, Wo = _extract_patches(x, kh, stride, padding)   # (M, k*k, Cin)
    M = N * Ho * Wo
    a = (patches.reshape(M, kh * kw, G, Cin_g)
                .transpose(2, 0, 1, 3)
                .reshape(G, M, kh * kw * Cin_g))                 # (G, M, Kg)
    b = (w.reshape(G, Cout_g, Cin_g, kh, kw)
          .transpose(0, 3, 4, 2, 1)
          .reshape(G, kh * kw * Cin_g, Cout_g))                  # (G, Kg, Ng)
    scale, shift = _bn_scale_shift(bn)
    out = grouped_matmul_affine(a, b, scale, shift, relu=relu)   # (G, M, Ng)
    return out.transpose(1, 0, 2).reshape(N, Ho, Wo, Cout)


def maxpool2d(x, k, s, p):
    N, H, W, C = x.shape
    Ho = (H + 2 * p - k) // s + 1
    Wo = (W + 2 * p - k) // s + 1
    xp = jnp.pad(x, ((0, 0), (p, p), (p, p), (0, 0)),
                 constant_values=float('-inf'))
    views = [xp[:, i:i + (Ho - 1) * s + 1:s, j:j + (Wo - 1) * s + 1:s, :]
             for i in range(k) for j in range(k)]
    stacked = jnp.stack(views, axis=0).reshape(k * k, N * Ho * Wo, C)
    M = N * Ho * Wo
    tm = _pick_tile(M, 512, 8)
    Mp = _round_up(M, tm)
    stacked = _pad_to(stacked, (k * k, Mp, C))
    out = pl.pallas_call(
        _maxpool_kernel,
        out_shape=jax.ShapeDtypeStruct((Mp, C), x.dtype),
        grid=(Mp // tm,),
        in_specs=[pl.BlockSpec((k * k, tm, C), lambda i: (0, i, 0))],
        out_specs=pl.BlockSpec((tm, C), lambda i: (i, 0)),
        compiler_params=pltpu.CompilerParams(dimension_semantics=("parallel",)),
    )(stacked)
    return out[:M].reshape(N, Ho, Wo, C)


def global_avg_pool(x):
    N, H, W, C = x.shape
    xr = x.reshape(N, H * W, C)
    out = pl.pallas_call(
        _avgpool_kernel,
        out_shape=jax.ShapeDtypeStruct((N, 1, C), jnp.float32),
        grid=(N,),
        in_specs=[pl.BlockSpec((None, H * W, C), lambda i: (i, 0, 0))],
        out_specs=pl.BlockSpec((None, 1, C), lambda i: (i, 0, 0)),
        compiler_params=pltpu.CompilerParams(dimension_semantics=("parallel",)),
    )(xr)
    return out.reshape(N, 1, 1, C)


# ----------------------------------------------------------------------------
# Parameter init (deterministic, mirrors initialize_weights).
# Pytree leaves are ONLY arrays so the whole forward can be jitted;
# static structure (strides, shortcut presence, reduce) is derived from
# config / key presence at trace time.
# ----------------------------------------------------------------------------
def _bn_params(c):
    return dict(gamma=jnp.ones((c,), jnp.float32), beta=jnp.zeros((c,), jnp.float32),
                mean=jnp.zeros((c,), jnp.float32), var=jnp.ones((c,), jnp.float32))


def _conv_w(key, cout, cin_per_group, k):
    std = (2.0 / (cout * k * k)) ** 0.5  # kaiming_normal_, mode='fan_out'
    return jax.random.normal(key, (cout, cin_per_group, k, k), jnp.float32) * std


def init_block_params(key, cin, cout, cardinality):
    expansion = 2
    bc = cardinality * cout // expansion
    k1, k2, k3, k4 = jax.random.split(key, 4)
    p = dict(
        conv1_w=_conv_w(k1, bc, cin, 1), bn1=_bn_params(bc),
        conv2_w=_conv_w(k2, bc, bc // cardinality, 3), bn2=_bn_params(bc),
        conv3_w=_conv_w(k3, cout, bc, 1), bn3=_bn_params(cout),
    )
    if cin != cout:  # shortcut presence is encoded by key presence (static under jit)
        p['sc_w'] = _conv_w(k4, cout, cin, 1)
        p['sc_bn'] = _bn_params(cout)
    return p


def init_encoder_params(key, config):
    mc, dc = config['model_config'], config['data_config']
    base, card, expansion = mc['base_channels'], mc['cardinality'], 2
    n_ch = [base, base * expansion, base * 2 * expansion,
            base * 4 * expansion, base * 8 * expansion]
    keys = jax.random.split(key, 8)
    params = dict(conv_w=_conv_w(keys[0], n_ch[0], dc['color_channels'], 7),
                  bn=_bn_params(n_ch[0]))

    def make_stage(skey, cin, cout, nblocks):
        bkeys = jax.random.split(skey, nblocks)
        blocks = []
        for idx in range(nblocks):
            ci = cin if idx == 0 else cout
            blocks.append(init_block_params(bkeys[idx], ci, cout, card))
        return blocks

    params['stage1'] = make_stage(keys[1], n_ch[0], n_ch[1], 3)
    params['stage2'] = make_stage(keys[2], n_ch[1], n_ch[2], 4)
    params['stage3'] = make_stage(keys[3], n_ch[2], n_ch[3], 6)
    params['stage4'] = make_stage(keys[4], n_ch[3], n_ch[4], 3)

    out_dim = mc['output_dim']
    feat = out_dim * out_dim * n_ch[4]          # == prod(feature_size[1:])
    if mc['latent_dim'] != out_dim * out_dim * expansion * 512:   # self.reduce
        params['fc_w'] = jax.random.normal(keys[5], (mc['latent_dim'], feat),
                                           jnp.float32) * 0.02
        params['fc_b'] = jnp.zeros((mc['latent_dim'],), jnp.float32)  # bias zeroed
    return params


# ----------------------------------------------------------------------------
# Forward pass (Pallas, jittable)
# ----------------------------------------------------------------------------
_STAGE_STRIDES = dict(stage1=1, stage2=2, stage3=2, stage4=2)


def block_forward(x, p, cardinality, stride):
    y = conv_bn_act(x, p['conv1_w'], p['bn1'], stride=1, padding=0, relu=True)
    y = grouped_conv_bn_act(y, p['conv2_w'], p['bn2'], stride=stride,
                            padding=1, groups=cardinality, relu=True)
    if 'sc_w' in p:
        sc = conv_bn_act(x, p['sc_w'], p['sc_bn'], stride=stride,
                         padding=0, relu=False)
    else:
        sc = x
    # conv3 + bn3 + residual add + relu fused into one Pallas kernel
    return conv_bn_act(y, p['conv3_w'], p['bn3'], stride=1, padding=0,
                       relu=True, residual=sc)


def encoder_forward(x_nchw, params, config):
    card = config['model_config']['cardinality']
    out_dim = config['model_config']['output_dim']
    # TODO(synk): general adaptive_avg_pool2d bins not implemented; output_dim=1
    # (global average) is the supported case.
    assert out_dim == 1
    x = jnp.transpose(x_nchw, (0, 2, 3, 1)).astype(jnp.bfloat16)  # NCHW -> NHWC, bf16
    x = conv_bn_act(x, params['conv_w'], params['bn'], stride=2, padding=3, relu=True)
    x = maxpool2d(x, 3, 2, 1)
    for stage in ('stage1', 'stage2', 'stage3', 'stage4'):
        for idx, bp in enumerate(params[stage]):
            stride = _STAGE_STRIDES[stage] if idx == 0 else 1
            x = block_forward(x, bp, card, stride)
    x = global_avg_pool(x)                                        # (N,1,1,C) f32
    x = jnp.transpose(x, (0, 3, 1, 2)).reshape(x.shape[0], -1)    # NCHW flatten order
    if 'fc_w' in params:
        ones = jnp.ones((params['fc_w'].shape[0],), jnp.float32)
        x = matmul_affine(x, params['fc_w'].T, ones, params['fc_b'],
                          relu=False, out_dtype=jnp.float32)
    return x.astype(jnp.float32)


# ----------------------------------------------------------------------------
# Pure-JAX f32 reference (for correctness check)
# ----------------------------------------------------------------------------
def _ref_conv(x, w, stride, padding, groups=1):
    w_hwio = jnp.transpose(w, (2, 3, 1, 0))
    return lax.conv_general_dilated(x, w_hwio, (stride, stride),
                                    [(padding, padding), (padding, padding)],
                                    dimension_numbers=('NHWC', 'HWIO', 'NHWC'),
                                    feature_group_count=groups)


def _ref_bn(x, bn):
    scale, shift = _bn_scale_shift(bn)
    return x * scale + shift


def _ref_block(x, p, card, stride):
    y = jax.nn.relu(_ref_bn(_ref_conv(x, p['conv1_w'], 1, 0), p['bn1']))
    y = jax.nn.relu(_ref_bn(_ref_conv(y, p['conv2_w'], stride, 1, groups=card), p['bn2']))
    y = _ref_bn(_ref_conv(y, p['conv3_w'], 1, 0), p['bn3'])
    sc = _ref_bn(_ref_conv(x, p['sc_w'], stride, 0), p['sc_bn']) if 'sc_w' in p else x
    return jax.nn.relu(y + sc)


def encoder_reference(x_nchw, params, config):
    card = config['model_config']['cardinality']
    x = jnp.transpose(x_nchw, (0, 2, 3, 1)).astype(jnp.float32)
    x = jax.nn.relu(_ref_bn(_ref_conv(x, params['conv_w'], 2, 3), params['bn']))
    x = lax.reduce_window(x, -jnp.inf, lax.max, (1, 3, 3, 1), (1, 2, 2, 1),
                          [(0, 0), (1, 1), (1, 1), (0, 0)])
    for stage in ('stage1', 'stage2', 'stage3', 'stage4'):
        for idx, bp in enumerate(params[stage]):
            stride = _STAGE_STRIDES[stage] if idx == 0 else 1
            x = _ref_block(x, bp, card, stride)
    x = jnp.mean(x, axis=(1, 2), keepdims=True)
    x = jnp.transpose(x, (0, 3, 1, 2)).reshape(x.shape[0], -1)
    if 'fc_w' in params:
        x = x @ params['fc_w'].T + params['fc_b']
    return x


# ----------------------------------------------------------------------------
if __name__ == "__main__":
    config = dict(
        model_config=dict(base_channels=4, cardinality=2, output_dim=1, latent_dim=16),
        data_config=dict(color_channels=3, image_size=32),
    )
    key = jax.random.PRNGKey(0)
    pkey, xkey = jax.random.split(key)
    params = init_encoder_params(pkey, config)
    x = jax.random.normal(xkey, (2, 3, 32, 32), jnp.float32)

    fwd = jax.jit(functools.partial(encoder_forward, config=config))
    ref_fn = jax.jit(functools.partial(encoder_reference, config=config))

    out = jax.block_until_ready(fwd(x, params))
    ref = jax.block_until_ready(ref_fn(x, params))

    assert out.shape == (2, config['model_config']['latent_dim'])
    abs_err = float(jnp.max(jnp.abs(out - ref)))
    rel_err = float(jnp.linalg.norm(out - ref) / (jnp.linalg.norm(ref) + 1e-6))
    # bf16 MXU operands + bf16 inter-layer activations -> use abs OR relative tolerance.
    assert abs_err < 5e-2 or rel_err < 5e-2, f"mismatch vs reference: abs={abs_err} rel={rel_err}"
    print("KERNEL_OK")
</pallas_src>

<mosaic_0001>
module attributes {stable_mosaic.version = 11 : i64} {
  func.func @_gmm1_kernel(%arg0: i32, %arg1: i32, %arg2: i32, %arg3: memref<1x512x256xbf16, #tpu.memory_space<vmem>>, %arg4: memref<1x256x128xbf16, #tpu.memory_space<vmem>>, %arg5: memref<1x1x128xf32, #tpu.memory_space<vmem>>, %arg6: memref<1x1x128xf32, #tpu.memory_space<vmem>>, %arg7: memref<1x512x128xbf16, #tpu.memory_space<vmem>>) attributes {dimension_semantics = [#tpu.dimension_semantics<parallel>, #tpu.dimension_semantics<parallel>, #tpu.dimension_semantics<parallel>], iteration_bounds = array<i64: 1, 1, 1>, scalar_prefetch = 0 : i64, scratch_operands = 0 : i64, tpu.core_type = #tpu.core_type<tc>, window_params = [{transform_indices = @transform_0, window_bounds = array<i64: 1, 512, 256>}, {transform_indices = @transform_1, window_bounds = array<i64: 1, 256, 128>}, {transform_indices = @transform_2, window_bounds = array<i64: 1, 1, 128>}, {transform_indices = @transform_3, window_bounds = array<i64: 1, 1, 128>}, {transform_indices = @transform_4, window_bounds = array<i64: 1, 512, 128>}]} {
    %c0 = arith.constant 0 : index
    %c0_0 = arith.constant 0 : index
    %c0_1 = arith.constant 0 : index
    %0 = vector.load %arg3[%c0, %c0_0, %c0_1] : memref<1x512x256xbf16, #tpu.memory_space<vmem>>, vector<1x512x256xbf16>
    %1 = vector.shape_cast %0 : vector<1x512x256xbf16> to vector<512x256xbf16>
    %c0_2 = arith.constant 0 : index
    %c0_3 = arith.constant 0 : index
    %c0_4 = arith.constant 0 : index
    %2 = vector.load %arg4[%c0_2, %c0_3, %c0_4] : memref<1x256x128xbf16, #tpu.memory_space<vmem>>, vector<1x256x128xbf16>
    %3 = vector.shape_cast %2 : vector<1x256x128xbf16> to vector<256x128xbf16>
    %cst = arith.constant dense<0.000000e+00> : vector<512x128xf32>
    %4 = tpu.matmul %1, %3, %cst {dimension_numbers = #tpu.dot_dimension_numbers<[1], [0], [0], [1], [0, 0, 1, 1], [], []>} : vector<512x256xbf16>, vector<256x128xbf16>, vector<512x128xf32> -> vector<512x128xf32>
    %c0_5 = arith.constant 0 : index
    %c0_6 = arith.constant 0 : index
    %c0_7 = arith.constant 0 : index
    %5 = vector.load %arg5[%c0_5, %c0_6, %c0_7] : memref<1x1x128xf32, #tpu.memory_space<vmem>>, vector<1x1x128xf32>
    %6 = vector.shape_cast %5 : vector<1x1x128xf32> to vector<1x128xf32>
    %7 = vector.broadcast %6 : vector<1x128xf32> to vector<512x128xf32>
    %8 = arith.mulf %4, %7 : vector<512x128xf32>
    %c0_8 = arith.constant 0 : index
    %c0_9 = arith.constant 0 : index
    %c0_10 = arith.constant 0 : index
    %9 = vector.load %arg6[%c0_8, %c0_9, %c0_10] : memref<1x1x128xf32, #tpu.memory_space<vmem>>, vector<1x1x128xf32>
    %10 = vector.shape_cast %9 : vector<1x1x128xf32> to vector<1x128xf32>
    %11 = vector.broadcast %10 : vector<1x128xf32> to vector<512x128xf32>
    %12 = arith.addf %8, %11 : vector<512x128xf32>
    %cst_11 = arith.constant 0.000000e+00 : f32
    %13 = vector.broadcast %cst_11 : f32 to vector<512x128xf32>
    %14 = arith.maximumf %12, %13 : vector<512x128xf32>
    %15 = arith.truncf %14 : vector<512x128xf32> to vector<512x128xbf16>
    %c0_12 = arith.constant 0 : index
    %c0_13 = arith.constant 0 : index
    %c0_14 = arith.constant 0 : index
    %16 = vector.load %arg7[%c0_12, %c0_13, %c0_14] : memref<1x512x128xbf16, #tpu.memory_space<vmem>>, vector<1x512x128xbf16>
    %17 = vector.shape_cast %16 : vector<1x512x128xbf16> to vector<512x128xbf16>
    %18 = vector.shape_cast %15 : vector<512x128xbf16> to vector<1x512x128xbf16>
    tpu.vector_store %arg7[%c0_12, %c0_13, %c0_14], %18 {strides = array<i32>} : memref<1x512x128xbf16, #tpu.memory_space<vmem>>, vector<1x512x128xbf16>,
    return
  }
  func.func @transform_0(%arg0: i32, %arg1: i32, %arg2: i32) -> (i32, i32, i32) {
    %c0_i32 = arith.constant 0 : i32
    %c0_i32_0 = arith.constant 0 : i32
    return %arg0, %arg1, %c0_i32 : i32, i32, i32
  }
  func.func @transform_1(%arg0: i32, %arg1: i32, %arg2: i32) -> (i32, i32, i32) {
    %c0_i32 = arith.constant 0 : i32
    %c0_i32_0 = arith.constant 0 : i32
    return %arg0, %c0_i32, %arg2 : i32, i32, i32
  }
  func.func @transform_2(%arg0: i32, %arg1: i32, %arg2: i32) -> (i32, i32, i32) {
    %c0_i32 = arith.constant 0 : i32
    %c0_i32_0 = arith.constant 0 : i32
    return %arg0, %c0_i32, %arg2 : i32, i32, i32
  }
  func.func @transform_3(%arg0: i32, %arg1: i32, %arg2: i32) -> (i32, i32, i32) {
    %c0_i32 = arith.constant 0 : i32
    %c0_i32_0 = arith.constant 0 : i32
    return %arg0, %c0_i32, %arg2 : i32, i32, i32
  }
  func.func @transform_4(%arg0: i32, %arg1: i32, %arg2: i32) -> (i32, i32, i32) {
    %c0_i32 = arith.constant 0 : i32
    return %arg0, %arg1, %arg2 : i32, i32, i32
  }
}

module attributes {stable_mosaic.version = 11 : i64} {
  func.func @_maxpool_kernel(%arg0: i32, %arg1: memref<9x128x4xbf16, #tpu.memory_space<vmem>>, %arg2: memref<128x4xbf16, #tpu.memory_space<vmem>>) attributes {dimension_semantics = [#tpu.dimension_semantics<parallel>], iteration_bounds = array<i64: 1>, scalar_prefetch = 0 : i64, scratch_operands = 0 : i64, tpu.core_type = #tpu.core_type<tc>, window_params = [{transform_indices = @transform_0, window_bounds = array<i64: 9, 128, 4>}, {transform_indices = @transform_1, window_bounds = array<i64: 128, 4>}]} {
    %c0 = arith.constant 0 : index
    %c0_0 = arith.constant 0 : index
    %c0_1 = arith.constant 0 : index
    %0 = vector.load %arg1[%c0, %c0_0, %c0_1] : memref<9x128x4xbf16, #tpu.memory_space<vmem>>, vector<9x128x4xbf16>
    %cst = arith.constant dense<0xFF80> : vector<128x4xbf16>
    %1 = vector.multi_reduction <maximumf>, %0, %cst [0] : vector<9x128x4xbf16> to vector<128x4xbf16>
    %c0_2 = arith.constant 0 : index
    %c0_3 = arith.constant 0 : index
    %2 = vector.load %arg2[%c0_2, %c0_3] : memref<128x4xbf16, #tpu.memory_space<vmem>>, vector<128x4xbf16>
    tpu.vector_store %arg2[%c0_2, %c0_3], %1 {strides = array<i32>} : memref<128x4xbf16, #tpu.memory_space<vmem>>, vector<128x4xbf16>,
    return
  }
  func.func @transform_0(%arg0: i32) -> (i32, i32, i32) {
    %c0_i32 = arith.constant 0 : i32
    %c0_i32_0 = arith.constant 0 : i32
    %c0_i32_1 = arith.constant 0 : i32
    return %c0_i32, %arg0, %c0_i32_0 : i32, i32, i32
  }
  func.func @transform_1(%arg0: i32) -> (i32, i32) {
    %c0_i32 = arith.constant 0 : i32
    %c0_i32_0 = arith.constant 0 : i32
    return %arg0, %c0_i32 : i32, i32
  }
}

module attributes {stable_mosaic.version = 11 : i64} {
  func.func @_gmm1_kernel(%arg0: i32, %arg1: i32, %arg2: i32, %arg3: memref<1x128x128xbf16, #tpu.memory_space<vmem>>, %arg4: memref<1x128x128xbf16, #tpu.memory_space<vmem>>, %arg5: memref<1x1x128xf32, #tpu.memory_space<vmem>>, %arg6: memref<1x1x128xf32, #tpu.memory_space<vmem>>, %arg7: memref<1x128x128xbf16, #tpu.memory_space<vmem>>) attributes {dimension_semantics = [#tpu.dimension_semantics<parallel>, #tpu.dimension_semantics<parallel>, #tpu.dimension_semantics<parallel>], iteration_bounds = array<i64: 1, 1, 1>, scalar_prefetch = 0 : i64, scratch_operands = 0 : i64, tpu.core_type = #tpu.core_type<tc>, window_params = [{transform_indices = @transform_0, window_bounds = array<i64: 1, 128, 128>}, {transform_indices = @transform_1, window_bounds = array<i64: 1, 128, 128>}, {transform_indices = @transform_2, window_bounds = array<i64: 1, 1, 128>}, {transform_indices = @transform_3, window_bounds = array<i64: 1, 1, 128>}, {transform_indices = @transform_4, window_bounds = array<i64: 1, 128, 128>}]} {
    %c0 = arith.constant 0 : index
    %c0_0 = arith.constant 0 : index
    %c0_1 = arith.constant 0 : index
    %0 = vector.load %arg3[%c0, %c0_0, %c0_1] : memref<1x128x128xbf16, #tpu.memory_space<vmem>>, vector<1x128x128xbf16>
    %1 = vector.shape_cast %0 : vector<1x128x128xbf16> to vector<128x128xbf16>
    %c0_2 = arith.constant 0 : index
    %c0_3 = arith.constant 0 : index
    %c0_4 = arith.constant 0 : index
    %2 = vector.load %arg4[%c0_2, %c0_3, %c0_4] : memref<1x128x128xbf16, #tpu.memory_space<vmem>>, vector<1x128x128xbf16>
    %3 = vector.shape_cast %2 : vector<1x128x128xbf16> to vector<128x128xbf16>
    %cst = arith.constant dense<0.000000e+00> : vector<128x128xf32>
    %4 = tpu.matmul %1, %3, %cst {dimension_numbers = #tpu.dot_dimension_numbers<[1], [0], [0], [1], [0, 0, 1, 1], [], []>} : vector<128x128xbf16>, vector<128x128xbf16>, vector<128x128xf32> -> vector<128x128xf32>
    %c0_5 = arith.constant 0 : index
    %c0_6 = arith.constant 0 : index
    %c0_7 = arith.constant 0 : index
    %5 = vector.load %arg5[%c0_5, %c0_6, %c0_7] : memref<1x1x128xf32, #tpu.memory_space<vmem>>, vector<1x1x128xf32>
    %6 = vector.shape_cast %5 : vector<1x1x128xf32> to vector<1x128xf32>
    %7 = vector.broadcast %6 : vector<1x128xf32> to vector<128x128xf32>
    %8 = arith.mulf %4, %7 : vector<128x128xf32>
    %c0_8 = arith.constant 0 : index
    %c0_9 = arith.constant 0 : index
    %c0_10 = arith.constant 0 : index
    %9 = vector.load %arg6[%c0_8, %c0_9, %c0_10] : memref<1x1x128xf32, #tpu.memory_space<vmem>>, vector<1x1x128xf32>
    %10 = vector.shape_cast %9 : vector<1x1x128xf32> to vector<1x128xf32>
    %11 = vector.broadcast %10 : vector<1x128xf32> to vector<128x128xf32>
    %12 = arith.addf %8, %11 : vector<128x128xf32>
    %cst_11 = arith.constant 0.000000e+00 : f32
    %13 = vector.broadcast %cst_11 : f32 to vector<128x128xf32>
    %14 = arith.maximumf %12, %13 : vector<128x128xf32>
    %15 = arith.truncf %14 : vector<128x128xf32> to vector<128x128xbf16>
    %c0_12 = arith.constant 0 : index
    %c0_13 = arith.constant 0 : index
    %c0_14 = arith.constant 0 : index
    %16 = vector.load %arg7[%c0_12, %c0_13, %c0_14] : memref<1x128x128xbf16, #tpu.memory_space<vmem>>, vector<1x128x128xbf16>
    %17 = vector.shape_cast %16 : vector<1x128x128xbf16> to vector<128x128xbf16>
    %18 = vector.shape_cast %15 : vector<128x128xbf16> to vector<1x128x128xbf16>
    tpu.vector_store %arg7[%c0_12, %c0_13, %c0_14], %18 {strides = array<i32>} : memref<1x128x128xbf16, #tpu.memory_space<vmem>>, vector<1x128x128xbf16>,
    return
  }
  func.func @transform_0(%arg0: i32, %arg1: i32, %arg2: i32) -> (i32, i32, i32) {
    %c0_i32 = arith.constant 0 : i32
    %c0_i32_0 = arith.constant 0 : i32
    return %arg0, %arg1, %c0_i32 : i32, i32, i32
  }
  func.func @transform_1(%arg0: i32, %arg1: i32, %arg2: i32) -> (i32, i32, i32) {
    %c0_i32 = arith.constant 0 : i32
    %c0_i32_0 = arith.constant 0 : i32
    return %arg0, %c0_i32, %arg2 : i32, i32, i32
  }
  func.func @transform_2(%arg0: i32, %arg1: i32, %arg2: i32) -> (i32, i32, i32) {
    %c0_i32 = arith.constant 0 : i32
    %c0_i32_0 = arith.constant 0 : i32
    return %arg0, %c0_i32, %arg2 : i32, i32, i32
  }
  func.func @transform_3(%arg0: i32, %arg1: i32, %arg2: i32) -> (i32, i32, i32) {
    %c0_i32 = arith.constant 0 : i32
    %c0_i32_0 = arith.constant 0 : i32
    return %arg0, %c0_i32, %arg2 : i32, i32, i32
  }
  func.func @transform_4(%arg0: i32, %arg1: i32, %arg2: i32) -> (i32, i32, i32) {
    %c0_i32 = arith.constant 0 : i32
    return %arg0, %arg1, %arg2 : i32, i32, i32
  }
}

module attributes {stable_mosaic.version = 11 : i64} {
  func.func @_gmm1_kernel(%arg0: i32, %arg1: i32, %arg2: i32, %arg3: memref<1x128x128xbf16, #tpu.memory_space<vmem>>, %arg4: memref<1x128x128xbf16, #tpu.memory_space<vmem>>, %arg5: memref<1x1x128xf32, #tpu.memory_space<vmem>>, %arg6: memref<1x1x128xf32, #tpu.memory_space<vmem>>, %arg7: memref<1x128x128xbf16, #tpu.memory_space<vmem>>) attributes {dimension_semantics = [#tpu.dimension_semantics<parallel>, #tpu.dimension_semantics<parallel>, #tpu.dimension_semantics<parallel>], iteration_bounds = array<i64: 2, 1, 1>, scalar_prefetch = 0 : i64, scratch_operands = 0 : i64, tpu.core_type = #tpu.core_type<tc>, window_params = [{transform_indices = @transform_0, window_bounds = array<i64: 1, 128, 128>}, {transform_indices = @transform_1, window_bounds = array<i64: 1, 128, 128>}, {transform_indices = @transform_2, window_bounds = array<i64: 1, 1, 128>}, {transform_indices = @transform_3, window_bounds = array<i64: 1, 1, 128>}, {transform_indices = @transform_4, window_bounds = array<i64: 1, 128, 128>}]} {
    %c0 = arith.constant 0 : index
    %c0_0 = arith.constant 0 : index
    %c0_1 = arith.constant 0 : index
    %0 = vector.load %arg3[%c0, %c0_0, %c0_1] : memref<1x128x128xbf16, #tpu.memory_space<vmem>>, vector<1x128x128xbf16>
    %1 = vector.shape_cast %0 : vector<1x128x128xbf16> to vector<128x128xbf16>
    %c0_2 = arith.constant 0 : index
    %c0_3 = arith.constant 0 : index
    %c0_4 = arith.constant 0 : index
    %2 = vector.load %arg4[%c0_2, %c0_3, %c0_4] : memref<1x128x128xbf16, #tpu.memory_space<vmem>>, vector<1x128x128xbf16>
    %3 = vector.shape_cast %2 : vector<1x128x128xbf16> to vector<128x128xbf16>
    %cst = arith.constant dense<0.000000e+00> : vector<128x128xf32>
    %4 = tpu.matmul %1, %3, %cst {dimension_numbers = #tpu.dot_dimension_numbers<[1], [0], [0], [1], [0, 0, 1, 1], [], []>} : vector<128x128xbf16>, vector<128x128xbf16>, vector<128x128xf32> -> vector<128x128xf32>
    %c0_5 = arith.constant 0 : index
    %c0_6 = arith.constant 0 : index
    %c0_7 = arith.constant 0 : index
    %5 = vector.load %arg5[%c0_5, %c0_6, %c0_7] : memref<1x1x128xf32, #tpu.memory_space<vmem>>, vector<1x1x128xf32>
    %6 = vector.shape_cast %5 : vector<1x1x128xf32> to vector<1x128xf32>
    %7 = vector.broadcast %6 : vector<1x128xf32> to vector<128x128xf32>
    %8 = arith.mulf %4, %7 : vector<128x128xf32>
    %c0_8 = arith.constant 0 : index
    %c0_9 = arith.constant 0 : index
    %c0_10 = arith.constant 0 : index
    %9 = vector.load %arg6[%c0_8, %c0_9, %c0_10] : memref<1x1x128xf32, #tpu.memory_space<vmem>>, vector<1x1x128xf32>
    %10 = vector.shape_cast %9 : vector<1x1x128xf32> to vector<1x128xf32>
    %11 = vector.broadcast %10 : vector<1x128xf32> to vector<128x128xf32>
    %12 = arith.addf %8, %11 : vector<128x128xf32>
    %cst_11 = arith.constant 0.000000e+00 : f32
    %13 = vector.broadcast %cst_11 : f32 to vector<128x128xf32>
    %14 = arith.maximumf %12, %13 : vector<128x128xf32>
    %15 = arith.truncf %14 : vector<128x128xf32> to vector<128x128xbf16>
    %c0_12 = arith.constant 0 : index
    %c0_13 = arith.constant 0 : index
    %c0_14 = arith.constant 0 : index
    %16 = vector.load %arg7[%c0_12, %c0_13, %c0_14] : memref<1x128x128xbf16, #tpu.memory_space<vmem>>, vector<1x128x128xbf16>
    %17 = vector.shape_cast %16 : vector<1x128x128xbf16> to vector<128x128xbf16>
    %18 = vector.shape_cast %15 : vector<128x128xbf16> to vector<1x128x128xbf16>
    tpu.vector_store %arg7[%c0_12, %c0_13, %c0_14], %18 {strides = array<i32>} : memref<1x128x128xbf16, #tpu.memory_space<vmem>>, vector<1x128x128xbf16>,
    return
  }
  func.func @transform_0(%arg0: i32, %arg1: i32, %arg2: i32) -> (i32, i32, i32) {
    %c0_i32 = arith.constant 0 : i32
    %c0_i32_0 = arith.constant 0 : i32
    return %arg0, %arg1, %c0_i32 : i32, i32, i32
  }
  func.func @transform_1(%arg0: i32, %arg1: i32, %arg2: i32) -> (i32, i32, i32) {
    %c0_i32 = arith.constant 0 : i32
    %c0_i32_0 = arith.constant 0 : i32
    return %arg0, %c0_i32, %arg2 : i32, i32, i32
  }
  func.func @transform_2(%arg0: i32, %arg1: i32, %arg2: i32) -> (i32, i32, i32) {
    %c0_i32 = arith.constant 0 : i32
    %c0_i32_0 = arith.constant 0 : i32
    return %arg0, %c0_i32, %arg2 : i32, i32, i32
  }
  func.func @transform_3(%arg0: i32, %arg1: i32, %arg2: i32) -> (i32, i32, i32) {
    %c0_i32 = arith.constant 0 : i32
    %c0_i32_0 = arith.constant 0 : i32
    return %arg0, %c0_i32, %arg2 : i32, i32, i32
  }
  func.func @transform_4(%arg0: i32, %arg1: i32, %arg2: i32) -> (i32, i32, i32) {
    %c0_i32 = arith.constant 0 : i32
    return %arg0, %arg1, %arg2 : i32, i32, i32
  }
}

module attributes {stable_mosaic.version = 11 : i64} {
  func.func @_gmm1_kernel(%arg0: i32, %arg1: i32, %arg2: i32, %arg3: memref<1x128x128xbf16, #tpu.memory_space<vmem>>, %arg4: memref<1x128x128xbf16, #tpu.memory_space<vmem>>, %arg5: memref<1x1x128xf32, #tpu.memory_space<vmem>>, %arg6: memref<1x1x128xf32, #tpu.memory_space<vmem>>, %arg7: memref<1x128x128xbf16, #tpu.memory_space<vmem>>) attributes {dimension_semantics = [#tpu.dimension_semantics<parallel>, #tpu.dimension_semantics<parallel>, #tpu.dimension_semantics<parallel>], iteration_bounds = array<i64: 1, 1, 1>, scalar_prefetch = 0 : i64, scratch_operands = 0 : i64, tpu.core_type = #tpu.core_type<tc>, window_params = [{transform_indices = @transform_0, window_bounds = array<i64: 1, 128, 128>}, {transform_indices = @transform_1, window_bounds = array<i64: 1, 128, 128>}, {transform_indices = @transform_2, window_bounds = array<i64: 1, 1, 128>}, {transform_indices = @transform_3, window_bounds = array<i64: 1, 1, 128>}, {transform_indices = @transform_4, window_bounds = array<i64: 1, 128, 128>}]} {
    %c0 = arith.constant 0 : index
    %c0_0 = arith.constant 0 : index
    %c0_1 = arith.constant 0 : index
    %0 = vector.load %arg3[%c0, %c0_0, %c0_1] : memref<1x128x128xbf16, #tpu.memory_space<vmem>>, vector<1x128x128xbf16>
    %1 = vector.shape_cast %0 : vector<1x128x128xbf16> to vector<128x128xbf16>
    %c0_2 = arith.constant 0 : index
    %c0_3 = arith.constant 0 : index
    %c0_4 = arith.constant 0 : index
    %2 = vector.load %arg4[%c0_2, %c0_3, %c0_4] : memref<1x128x128xbf16, #tpu.memory_space<vmem>>, vector<1x128x128xbf16>
    %3 = vector.shape_cast %2 : vector<1x128x128xbf16> to vector<128x128xbf16>
    %cst = arith.constant dense<0.000000e+00> : vector<128x128xf32>
    %4 = tpu.matmul %1, %3, %cst {dimension_numbers = #tpu.dot_dimension_numbers<[1], [0], [0], [1], [0, 0, 1, 1], [], []>} : vector<128x128xbf16>, vector<128x128xbf16>, vector<128x128xf32> -> vector<128x128xf32>
    %c0_5 = arith.constant 0 : index
    %c0_6 = arith.constant 0 : index
    %c0_7 = arith.constant 0 : index
    %5 = vector.load %arg5[%c0_5, %c0_6, %c0_7] : memref<1x1x128xf32, #tpu.memory_space<vmem>>, vector<1x1x128xf32>
    %6 = vector.shape_cast %5 : vector<1x1x128xf32> to vector<1x128xf32>
    %7 = vector.broadcast %6 : vector<1x128xf32> to vector<128x128xf32>
    %8 = arith.mulf %4, %7 : vector<128x128xf32>
    %c0_8 = arith.constant 0 : index
    %c0_9 = arith.constant 0 : index
    %c0_10 = arith.constant 0 : index
    %9 = vector.load %arg6[%c0_8, %c0_9, %c0_10] : memref<1x1x128xf32, #tpu.memory_space<vmem>>, vector<1x1x128xf32>
    %10 = vector.shape_cast %9 : vector<1x1x128xf32> to vector<1x128xf32>
    %11 = vector.broadcast %10 : vector<1x128xf32> to vector<128x128xf32>
    %12 = arith.addf %8, %11 : vector<128x128xf32>
    %13 = arith.truncf %12 : vector<128x128xf32> to vector<128x128xbf16>
    %c0_11 = arith.constant 0 : index
    %c0_12 = arith.constant 0 : index
    %c0_13 = arith.constant 0 : index
    %14 = vector.load %arg7[%c0_11, %c0_12, %c0_13] : memref<1x128x128xbf16, #tpu.memory_space<vmem>>, vector<1x128x128xbf16>
    %15 = vector.shape_cast %14 : vector<1x128x128xbf16> to vector<128x128xbf16>
    %16 = vector.shape_cast %13 : vector<128x128xbf16> to vector<1x128x128xbf16>
    tpu.vector_store %arg7[%c0_11, %c0_12, %c0_13], %16 {strides = array<i32>} : memref<1x128x128xbf16, #tpu.memory_space<vmem>>, vector<1x128x128xbf16>,
    return
  }
  func.func @transform_0(%arg0: i32, %arg1: i32, %arg2: i32) -> (i32, i32, i32) {
    %c0_i32 = arith.constant 0 : i32
    %c0_i32_0 = arith.constant 0 : i32
    return %arg0, %arg1, %c0_i32 : i32, i32, i32
  }
  func.func @transform_1(%arg0: i32, %arg1: i32, %arg2: i32) -> (i32, i32, i32) {
    %c0_i32 = arith.constant 0 : i32
    %c0_i32_0 = arith.constant 0 : i32
    return %arg0, %c0_i32, %arg2 : i32, i32, i32
  }
  func.func @transform_2(%arg0: i32, %arg1: i32, %arg2: i32) -> (i32, i32, i32) {
    %c0_i32 = arith.constant 0 : i32
    %c0_i32_0 = arith.constant 0 : i32
    return %arg0, %c0_i32, %arg2 : i32, i32, i32
  }
  func.func @transform_3(%arg0: i32, %arg1: i32, %arg2: i32) -> (i32, i32, i32) {
    %c0_i32 = arith.constant 0 : i32
    %c0_i32_0 = arith.constant 0 : i32
    return %arg0, %c0_i32, %arg2 : i32, i32, i32
  }
  func.func @transform_4(%arg0: i32, %arg1: i32, %arg2: i32) -> (i32, i32, i32) {
    %c0_i32 = arith.constant 0 : i32
    return %arg0, %arg1, %arg2 : i32, i32, i32
  }
}

module attributes {stable_mosaic.version = 11 : i64} {
  func.func @_gmm1_res_kernel(%arg0: i32, %arg1: i32, %arg2: i32, %arg3: memref<1x128x128xbf16, #tpu.memory_space<vmem>>, %arg4: memref<1x128x128xbf16, #tpu.memory_space<vmem>>, %arg5: memref<1x1x128xf32, #tpu.memory_space<vmem>>, %arg6: memref<1x1x128xf32, #tpu.memory_space<vmem>>, %arg7: memref<1x128x128xbf16, #tpu.memory_space<vmem>>, %arg8: memref<1x128x128xbf16, #tpu.memory_space<vmem>>) attributes {dimension_semantics = [#tpu.dimension_semantics<parallel>, #tpu.dimension_semantics<parallel>, #tpu.dimension_semantics<parallel>], iteration_bounds = array<i64: 1, 1, 1>, scalar_prefetch = 0 : i64, scratch_operands = 0 : i64, tpu.core_type = #tpu.core_type<tc>, window_params = [{transform_indices = @transform_0, window_bounds = array<i64: 1, 128, 128>}, {transform_indices = @transform_1, window_bounds = array<i64: 1, 128, 128>}, {transform_indices = @transform_2, window_bounds = array<i64: 1, 1, 128>}, {transform_indices = @transform_3, window_bounds = array<i64: 1, 1, 128>}, {transform_indices = @transform_4, window_bounds = array<i64: 1, 128, 128>}, {transform_indices = @transform_5, window_bounds = array<i64: 1, 128, 128>}]} {
    %c0 = arith.constant 0 : index
    %c0_0 = arith.constant 0 : index
    %c0_1 = arith.constant 0 : index
    %0 = vector.load %arg3[%c0, %c0_0, %c0_1] : memref<1x128x128xbf16, #tpu.memory_space<vmem>>, vector<1x128x128xbf16>
    %1 = vector.shape_cast %0 : vector<1x128x128xbf16> to vector<128x128xbf16>
    %c0_2 = arith.constant 0 : index
    %c0_3 = arith.constant 0 : index
    %c0_4 = arith.constant 0 : index
    %2 = vector.load %arg4[%c0_2, %c0_3, %c0_4] : memref<1x128x128xbf16, #tpu.memory_space<vmem>>, vector<1x128x128xbf16>
    %3 = vector.shape_cast %2 : vector<1x128x128xbf16> to vector<128x128xbf16>
    %cst = arith.constant dense<0.000000e+00> : vector<128x128xf32>
    %4 = tpu.matmul %1, %3, %cst {dimension_numbers = #tpu.dot_dimension_numbers<[1], [0], [0], [1], [0, 0, 1, 1], [], []>} : vector<128x128xbf16>, vector<128x128xbf16>, vector<128x128xf32> -> vector<128x128xf32>
    %c0_5 = arith.constant 0 : index
    %c0_6 = arith.constant 0 : index
    %c0_7 = arith.constant 0 : index
    %5 = vector.load %arg5[%c0_5, %c0_6, %c0_7] : memref<1x1x128xf32, #tpu.memory_space<vmem>>, vector<1x1x128xf32>
    %6 = vector.shape_cast %5 : vector<1x1x128xf32> to vector<1x128xf32>
    %7 = vector.broadcast %6 : vector<1x128xf32> to vector<128x128xf32>
    %8 = arith.mulf %4, %7 : vector<128x128xf32>
    %c0_8 = arith.constant 0 : index
    %c0_9 = arith.constant 0 : index
    %c0_10 = arith.constant 0 : index
    %9 = vector.load %arg6[%c0_8, %c0_9, %c0_10] : memref<1x1x128xf32, #tpu.memory_space<vmem>>, vector<1x1x128xf32>
    %10 = vector.shape_cast %9 : vector<1x1x128xf32> to vector<1x128xf32>
    %11 = vector.broadcast %10 : vector<1x128xf32> to vector<128x128xf32>
    %12 = arith.addf %8, %11 : vector<128x128xf32>
    %c0_11 = arith.constant 0 : index
    %c0_12 = arith.constant 0 : index
    %c0_13 = arith.constant 0 : index
    %13 = vector.load %arg7[%c0_11, %c0_12, %c0_13] : memref<1x128x128xbf16, #tpu.memory_space<vmem>>, vector<1x128x128xbf16>
    %14 = vector.shape_cast %13 : vector<1x128x128xbf16> to vector<128x128xbf16>
    %15 = arith.extf %14 : vector<128x128xbf16> to vector<128x128xf32>
    %16 = arith.addf %12, %15 : vector<128x128xf32>
    %cst_14 = arith.constant 0.000000e+00 : f32
    %17 = vector.broadcast %cst_14 : f32 to vector<128x128xf32>
    %18 = arith.maximumf %16, %17 : vector<128x128xf32>
    %19 = arith.truncf %18 : vector<128x128xf32> to vector<128x128xbf16>
    %c0_15 = arith.constant 0 : index
    %c0_16 = arith.constant 0 : index
    %c0_17 = arith.constant 0 : index
    %20 = vector.load %arg8[%c0_15, %c0_16, %c0_17] : memref<1x128x128xbf16, #tpu.memory_space<vmem>>, vector<1x128x128xbf16>
    %21 = vector.shape_cast %20 : vector<1x128x128xbf16> to vector<128x128xbf16>
    %22 = vector.shape_cast %19 : vector<128x128xbf16> to vector<1x128x128xbf16>
    tpu.vector_store %arg8[%c0_15, %c0_16, %c0_17], %22 {strides = array<i32>} : memref<1x128x128xbf16, #tpu.memory_space<vmem>>, vector<1x128x128xbf16>,
    return
  }
  func.func @transform_0(%arg0: i32, %arg1: i32, %arg2: i32) -> (i32, i32, i32) {
    %c0_i32 = arith.constant 0 : i32
    %c0_i32_0 = arith.constant 0 : i32
    return %arg0, %arg1, %c0_i32 : i32, i32, i32
  }
  func.func @transform_1(%arg0: i32, %arg1: i32, %arg2: i32) -> (i32, i32, i32) {
    %c0_i32 = arith.constant 0 : i32
    %c0_i32_0 = arith.constant 0 : i32
    return %arg0, %c0_i32, %arg2 : i32, i32, i32
  }
  func.func @transform_2(%arg0: i32, %arg1: i32, %arg2: i32) -> (i32, i32, i32) {
    %c0_i32 = arith.constant 0 : i32
    %c0_i32_0 = arith.constant 0 : i32
    return %arg0, %c0_i32, %arg2 : i32, i32, i32
  }
  func.func @transform_3(%arg0: i32, %arg1: i32, %arg2: i32) -> (i32, i32, i32) {
    %c0_i32 = arith.constant 0 : i32
    %c0_i32_0 = arith.constant 0 : i32
    return %arg0, %c0_i32, %arg2 : i32, i32, i32
  }
  func.func @transform_4(%arg0: i32, %arg1: i32, %arg2: i32) -> (i32, i32, i32) {
    %c0_i32 = arith.constant 0 : i32
    return %arg0, %arg1, %arg2 : i32, i32, i32
  }
  func.func @transform_5(%arg0: i32, %arg1: i32, %arg2: i32) -> (i32, i32, i32) {
    %c0_i32 = arith.constant 0 : i32
    return %arg0, %arg1, %arg2 : i32, i32, i32
  }
}

module attributes {stable_mosaic.version = 11 : i64} {
  func.func @_gmm1_kernel(%arg0: i32, %arg1: i32, %arg2: i32, %arg3: memref<1x32x128xbf16, #tpu.memory_space<vmem>>, %arg4: memref<1x128x128xbf16, #tpu.memory_space<vmem>>, %arg5: memref<1x1x128xf32, #tpu.memory_space<vmem>>, %arg6: memref<1x1x128xf32, #tpu.memory_space<vmem>>, %arg7: memref<1x32x128xbf16, #tpu.memory_space<vmem>>) attributes {dimension_semantics = [#tpu.dimension_semantics<parallel>, #tpu.dimension_semantics<parallel>, #tpu.dimension_semantics<parallel>], iteration_bounds = array<i64: 2, 1, 1>, scalar_prefetch = 0 : i64, scratch_operands = 0 : i64, tpu.core_type = #tpu.core_type<tc>, window_params = [{transform_indices = @transform_0, window_bounds = array<i64: 1, 32, 128>}, {transform_indices = @transform_1, window_bounds = array<i64: 1, 128, 128>}, {transform_indices = @transform_2, window_bounds = array<i64: 1, 1, 128>}, {transform_indices = @transform_3, window_bounds = array<i64: 1, 1, 128>}, {transform_indices = @transform_4, window_bounds = array<i64: 1, 32, 128>}]} {
    %c0 = arith.constant 0 : index
    %c0_0 = arith.constant 0 : index
    %c0_1 = arith.constant 0 : index
    %0 = vector.load %arg3[%c0, %c0_0, %c0_1] : memref<1x32x128xbf16, #tpu.memory_space<vmem>>, vector<1x32x128xbf16>
    %1 = vector.shape_cast %0 : vector<1x32x128xbf16> to vector<32x128xbf16>
    %c0_2 = arith.constant 0 : index
    %c0_3 = arith.constant 0 : index
    %c0_4 = arith.constant 0 : index
    %2 = vector.load %arg4[%c0_2, %c0_3, %c0_4] : memref<1x128x128xbf16, #tpu.memory_space<vmem>>, vector<1x128x128xbf16>
    %3 = vector.shape_cast %2 : vector<1x128x128xbf16> to vector<128x128xbf16>
    %cst = arith.constant dense<0.000000e+00> : vector<32x128xf32>
    %4 = tpu.matmul %1, %3, %cst {dimension_numbers = #tpu.dot_dimension_numbers<[1], [0], [0], [1], [0, 0, 1, 1], [], []>} : vector<32x128xbf16>, vector<128x128xbf16>, vector<32x128xf32> -> vector<32x128xf32>
    %c0_5 = arith.constant 0 : index
    %c0_6 = arith.constant 0 : index
    %c0_7 = arith.constant 0 : index
    %5 = vector.load %arg5[%c0_5, %c0_6, %c0_7] : memref<1x1x128xf32, #tpu.memory_space<vmem>>, vector<1x1x128xf32>
    %6 = vector.shape_cast %5 : vector<1x1x128xf32> to vector<1x128xf32>
    %7 = vector.broadcast %6 : vector<1x128xf32> to vector<32x128xf32>
    %8 = arith.mulf %4, %7 : vector<32x128xf32>
    %c0_8 = arith.constant 0 : index
    %c0_9 = arith.constant 0 : index
    %c0_10 = arith.constant 0 : index
    %9 = vector.load %arg6[%c0_8, %c0_9, %c0_10] : memref<1x1x128xf32, #tpu.memory_space<vmem>>, vector<1x1x128xf32>
    %10 = vector.shape_cast %9 : vector<1x1x128xf32> to vector<1x128xf32>
    %11 = vector.broadcast %10 : vector<1x128xf32> to vector<32x128xf32>
    %12 = arith.addf %8, %11 : vector<32x128xf32>
    %cst_11 = arith.constant 0.000000e+00 : f32
    %13 = vector.broadcast %cst_11 : f32 to vector<32x128xf32>
    %14 = arith.maximumf %12, %13 : vector<32x128xf32>
    %15 = arith.truncf %14 : vector<32x128xf32> to vector<32x128xbf16>
    %c0_12 = arith.constant 0 : index
    %c0_13 = arith.constant 0 : index
    %c0_14 = arith.constant 0 : index
    %16 = vector.load %arg7[%c0_12, %c0_13, %c0_14] : memref<1x32x128xbf16, #tpu.memory_space<vmem>>, vector<1x32x128xbf16>
    %17 = vector.shape_cast %16 : vector<1x32x128xbf16> to vector<32x128xbf16>
    %18 = vector.shape_cast %15 : vector<32x128xbf16> to vector<1x32x128xbf16>
    tpu.vector_store %arg7[%c0_12, %c0_13, %c0_14], %18 {strides = array<i32>} : memref<1x32x128xbf16, #tpu.memory_space<vmem>>, vector<1x32x128xbf16>,
    return
  }
  func.func @transform_0(%arg0: i32, %arg1: i32, %arg2: i32) -> (i32, i32, i32) {
    %c0_i32 = arith.constant 0 : i32
    %c0_i32_0 = arith.constant 0 : i32
    return %arg0, %arg1, %c0_i32 : i32, i32, i32
  }
  func.func @transform_1(%arg0: i32, %arg1: i32, %arg2: i32) -> (i32, i32, i32) {
    %c0_i32 = arith.constant 0 : i32
    %c0_i32_0 = arith.constant 0 : i32
    return %arg0, %c0_i32, %arg2 : i32, i32, i32
  }
  func.func @transform_2(%arg0: i32, %arg1: i32, %arg2: i32) -> (i32, i32, i32) {
    %c0_i32 = arith.constant 0 : i32
    %c0_i32_0 = arith.constant 0 : i32
    return %arg0, %c0_i32, %arg2 : i32, i32, i32
  }
  func.func @transform_3(%arg0: i32, %arg1: i32, %arg2: i32) -> (i32, i32, i32) {
    %c0_i32 = arith.constant 0 : i32
    %c0_i32_0 = arith.constant 0 : i32
    return %arg0, %c0_i32, %arg2 : i32, i32, i32
  }
  func.func @transform_4(%arg0: i32, %arg1: i32, %arg2: i32) -> (i32, i32, i32) {
    %c0_i32 = arith.constant 0 : i32
    return %arg0, %arg1, %arg2 : i32, i32, i32
  }
}

module attributes {stable_mosaic.version = 11 : i64} {
  func.func @_gmm1_kernel(%arg0: i32, %arg1: i32, %arg2: i32, %arg3: memref<1x32x128xbf16, #tpu.memory_space<vmem>>, %arg4: memref<1x128x128xbf16, #tpu.memory_space<vmem>>, %arg5: memref<1x1x128xf32, #tpu.memory_space<vmem>>, %arg6: memref<1x1x128xf32, #tpu.memory_space<vmem>>, %arg7: memref<1x32x128xbf16, #tpu.memory_space<vmem>>) attributes {dimension_semantics = [#tpu.dimension_semantics<parallel>, #tpu.dimension_semantics<parallel>, #tpu.dimension_semantics<parallel>], iteration_bounds = array<i64: 1, 1, 1>, scalar_prefetch = 0 : i64, scratch_operands = 0 : i64, tpu.core_type = #tpu.core_type<tc>, window_params = [{transform_indices = @transform_0, window_bounds = array<i64: 1, 32, 128>}, {transform_indices = @transform_1, window_bounds = array<i64: 1, 128, 128>}, {transform_indices = @transform_2, window_bounds = array<i64: 1, 1, 128>}, {transform_indices = @transform_3, window_bounds = array<i64: 1, 1, 128>}, {transform_indices = @transform_4, window_bounds = array<i64: 1, 32, 128>}]} {
    %c0 = arith.constant 0 : index
    %c0_0 = arith.constant 0 : index
    %c0_1 = arith.constant 0 : index
    %0 = vector.load %arg3[%c0, %c0_0, %c0_1] : memref<1x32x128xbf16, #tpu.memory_space<vmem>>, vector<1x32x128xbf16>
    %1 = vector.shape_cast %0 : vector<1x32x128xbf16> to vector<32x128xbf16>
    %c0_2 = arith.constant 0 : index
    %c0_3 = arith.constant 0 : index
    %c0_4 = arith.constant 0 : index
    %2 = vector.load %arg4[%c0_2, %c0_3, %c0_4] : memref<1x128x128xbf16, #tpu.memory_space<vmem>>, vector<1x128x128xbf16>
    %3 = vector.shape_cast %2 : vector<1x128x128xbf16> to vector<128x128xbf16>
    %cst = arith.constant dense<0.000000e+00> : vector<32x128xf32>
    %4 = tpu.matmul %1, %3, %cst {dimension_numbers = #tpu.dot_dimension_numbers<[1], [0], [0], [1], [0, 0, 1, 1], [], []>} : vector<32x128xbf16>, vector<128x128xbf16>, vector<32x128xf32> -> vector<32x128xf32>
    %c0_5 = arith.constant 0 : index
    %c0_6 = arith.constant 0 : index
    %c0_7 = arith.constant 0 : index
    %5 = vector.load %arg5[%c0_5, %c0_6, %c0_7] : memref<1x1x128xf32, #tpu.memory_space<vmem>>, vector<1x1x128xf32>
    %6 = vector.shape_cast %5 : vector<1x1x128xf32> to vector<1x128xf32>
    %7 = vector.broadcast %6 : vector<1x128xf32> to vector<32x128xf32>
    %8 = arith.mulf %4, %7 : vector<32x128xf32>
    %c0_8 = arith.constant 0 : index
    %c0_9 = arith.constant 0 : index
    %c0_10 = arith.constant 0 : index
    %9 = vector.load %arg6[%c0_8, %c0_9, %c0_10] : memref<1x1x128xf32, #tpu.memory_space<vmem>>, vector<1x1x128xf32>
    %10 = vector.shape_cast %9 : vector<1x1x128xf32> to vector<1x128xf32>
    %11 = vector.broadcast %10 : vector<1x128xf32> to vector<32x128xf32>
    %12 = arith.addf %8, %11 : vector<32x128xf32>
    %13 = arith.truncf %12 : vector<32x128xf32> to vector<32x128xbf16>
    %c0_11 = arith.constant 0 : index
    %c0_12 = arith.constant 0 : index
    %c0_13 = arith.constant 0 : index
    %14 = vector.load %arg7[%c0_11, %c0_12, %c0_13] : memref<1x32x128xbf16, #tpu.memory_space<vmem>>, vector<1x32x128xbf16>
    %15 = vector.shape_cast %14 : vector<1x32x128xbf16> to vector<32x128xbf16>
    %16 = vector.shape_cast %13 : vector<32x128xbf16> to vector<1x32x128xbf16>
    tpu.vector_store %arg7[%c0_11, %c0_12, %c0_13], %16 {strides = array<i32>} : memref<1x32x128xbf16, #tpu.memory_space<vmem>>, vector<1x32x128xbf16>,
    return
  }
  func.func @transform_0(%arg0: i32, %arg1: i32, %arg2: i32) -> (i32, i32, i32) {
    %c0_i32 = arith.constant 0 : i32
    %c0_i32_0 = arith.constant 0 : i32
    return %arg0, %arg1, %c0_i32 : i32, i32, i32
  }
  func.func @transform_1(%arg0: i32, %arg1: i32, %arg2: i32) -> (i32, i32, i32) {
    %c0_i32 = arith.constant 0 : i32
    %c0_i32_0 = arith.constant 0 : i32
    return %arg0, %c0_i32, %arg2 : i32, i32, i32
  }
  func.func @transform_2(%arg0: i32, %arg1: i32, %arg2: i32) -> (i32, i32, i32) {
    %c0_i32 = arith.constant 0 : i32
    %c0_i32_0 = arith.constant 0 : i32
    return %arg0, %c0_i32, %arg2 : i32, i32, i32
  }
  func.func @transform_3(%arg0: i32, %arg1: i32, %arg2: i32) -> (i32, i32, i32) {
    %c0_i32 = arith.constant 0 : i32
    %c0_i32_0 = arith.constant 0 : i32
    return %arg0, %c0_i32, %arg2 : i32, i32, i32
  }
  func.func @transform_4(%arg0: i32, %arg1: i32, %arg2: i32) -> (i32, i32, i32) {
    %c0_i32 = arith.constant 0 : i32
    return %arg0, %arg1, %arg2 : i32, i32, i32
  }
}

module attributes {stable_mosaic.version = 11 : i64} {
  func.func @_gmm1_kernel(%arg0: i32, %arg1: i32, %arg2: i32, %arg3: memref<1x32x128xbf16, #tpu.memory_space<vmem>>, %arg4: memref<1x128x128xbf16, #tpu.memory_space<vmem>>, %arg5: memref<1x1x128xf32, #tpu.memory_space<vmem>>, %arg6: memref<1x1x128xf32, #tpu.memory_space<vmem>>, %arg7: memref<1x32x128xbf16, #tpu.memory_space<vmem>>) attributes {dimension_semantics = [#tpu.dimension_semantics<parallel>, #tpu.dimension_semantics<parallel>, #tpu.dimension_semantics<parallel>], iteration_bounds = array<i64: 1, 1, 1>, scalar_prefetch = 0 : i64, scratch_operands = 0 : i64, tpu.core_type = #tpu.core_type<tc>, window_params = [{transform_indices = @transform_0, window_bounds = array<i64: 1, 32, 128>}, {transform_indices = @transform_1, window_bounds = array<i64: 1, 128, 128>}, {transform_indices = @transform_2, window_bounds = array<i64: 1, 1, 128>}, {transform_indices = @transform_3, window_bounds = array<i64: 1, 1, 128>}, {transform_indices = @transform_4, window_bounds = array<i64: 1, 32, 128>}]} {
    %c0 = arith.constant 0 : index
    %c0_0 = arith.constant 0 : index
    %c0_1 = arith.constant 0 : index
    %0 = vector.load %arg3[%c0, %c0_0, %c0_1] : memref<1x32x128xbf16, #tpu.memory_space<vmem>>, vector<1x32x128xbf16>
    %1 = vector.shape_cast %0 : vector<1x32x128xbf16> to vector<32x128xbf16>
    %c0_2 = arith.constant 0 : index
    %c0_3 = arith.constant 0 : index
    %c0_4 = arith.constant 0 : index
    %2 = vector.load %arg4[%c0_2, %c0_3, %c0_4] : memref<1x128x128xbf16, #tpu.memory_space<vmem>>, vector<1x128x128xbf16>
    %3 = vector.shape_cast %2 : vector<1x128x128xbf16> to vector<128x128xbf16>
    %cst = arith.constant dense<0.000000e+00> : vector<32x128xf32>
    %4 = tpu.matmul %1, %3, %cst {dimension_numbers = #tpu.dot_dimension_numbers<[1], [0], [0], [1], [0, 0, 1, 1], [], []>} : vector<32x128xbf16>, vector<128x128xbf16>, vector<32x128xf32> -> vector<32x128xf32>
    %c0_5 = arith.constant 0 : index
    %c0_6 = arith.constant 0 : index
    %c0_7 = arith.constant 0 : index
    %5 = vector.load %arg5[%c0_5, %c0_6, %c0_7] : memref<1x1x128xf32, #tpu.memory_space<vmem>>, vector<1x1x128xf32>
    %6 = vector.shape_cast %5 : vector<1x1x128xf32> to vector<1x128xf32>
    %7 = vector.broadcast %6 : vector<1x128xf32> to vector<32x128xf32>
    %8 = arith.mulf %4, %7 : vector<32x128xf32>
    %c0_8 = arith.constant 0 : index
    %c0_9 = arith.constant 0 : index
    %c0_10 = arith.constant 0 : index
    %9 = vector.load %arg6[%c0_8, %c0_9, %c0_10] : memref<1x1x128xf32, #tpu.memory_space<vmem>>, vector<1x1x128xf32>
    %10 = vector.shape_cast %9 : vector<1x1x128xf32> to vector<1x128xf32>
    %11 = vector.broadcast %10 : vector<1x128xf32> to vector<32x128xf32>
    %12 = arith.addf %8, %11 : vector<32x128xf32>
    %cst_11 = arith.constant 0.000000e+00 : f32
    %13 = vector.broadcast %cst_11 : f32 to vector<32x128xf32>
    %14 = arith.maximumf %12, %13 : vector<32x128xf32>
    %15 = arith.truncf %14 : vector<32x128xf32> to vector<32x128xbf16>
    %c0_12 = arith.constant 0 : index
    %c0_13 = arith.constant 0 : index
    %c0_14 = arith.constant 0 : index
    %16 = vector.load %arg7[%c0_12, %c0_13, %c0_14] : memref<1x32x128xbf16, #tpu.memory_space<vmem>>, vector<1x32x128xbf16>
    %17 = vector.shape_cast %16 : vector<1x32x128xbf16> to vector<32x128xbf16>
    %18 = vector.shape_cast %15 : vector<32x128xbf16> to vector<1x32x128xbf16>
    tpu.vector_store %arg7[%c0_12, %c0_13, %c0_14], %18 {strides = array<i32>} : memref<1x32x128xbf16, #tpu.memory_space<vmem>>, vector<1x32x128xbf16>,
    return
  }
  func.func @transform_0(%arg0: i32, %arg1: i32, %arg2: i32) -> (i32, i32, i32) {
    %c0_i32 = arith.constant 0 : i32
    %c0_i32_0 = arith.constant 0 : i32
    return %arg0, %arg1, %c0_i32 : i32, i32, i32
  }
  func.func @transform_1(%arg0: i32, %arg1: i32, %arg2: i32) -> (i32, i32, i32) {
    %c0_i32 = arith.constant 0 : i32
    %c0_i32_0 = arith.constant 0 : i32
    return %arg0, %c0_i32, %arg2 : i32, i32, i32
  }
  func.func @transform_2(%arg0: i32, %arg1: i32, %arg2: i32) -> (i32, i32, i32) {
    %c0_i32 = arith.constant 0 : i32
    %c0_i32_0 = arith.constant 0 : i32
    return %arg0, %c0_i32, %arg2 : i32, i32, i32
  }
  func.func @transform_3(%arg0: i32, %arg1: i32, %arg2: i32) -> (i32, i32, i32) {
    %c0_i32 = arith.constant 0 : i32
    %c0_i32_0 = arith.constant 0 : i32
    return %arg0, %c0_i32, %arg2 : i32, i32, i32
  }
  func.func @transform_4(%arg0: i32, %arg1: i32, %arg2: i32) -> (i32, i32, i32) {
    %c0_i32 = arith.constant 0 : i32
    return %arg0, %arg1, %arg2 : i32, i32, i32
  }
}

module attributes {stable_mosaic.version = 11 : i64} {
  func.func @_gmm1_res_kernel(%arg0: i32, %arg1: i32, %arg2: i32, %arg3: memref<1x32x128xbf16, #tpu.memory_space<vmem>>, %arg4: memref<1x128x128xbf16, #tpu.memory_space<vmem>>, %arg5: memref<1x1x128xf32, #tpu.memory_space<vmem>>, %arg6: memref<1x1x128xf32, #tpu.memory_space<vmem>>, %arg7: memref<1x32x128xbf16, #tpu.memory_space<vmem>>, %arg8: memref<1x32x128xbf16, #tpu.memory_space<vmem>>) attributes {dimension_semantics = [#tpu.dimension_semantics<parallel>, #tpu.dimension_semantics<parallel>, #tpu.dimension_semantics<parallel>], iteration_bounds = array<i64: 1, 1, 1>, scalar_prefetch = 0 : i64, scratch_operands = 0 : i64, tpu.core_type = #tpu.core_type<tc>, window_params = [{transform_indices = @transform_0, window_bounds = array<i64: 1, 32, 128>}, {transform_indices = @transform_1, window_bounds = array<i64: 1, 128, 128>}, {transform_indices = @transform_2, window_bounds = array<i64: 1, 1, 128>}, {transform_indices = @transform_3, window_bounds = array<i64: 1, 1, 128>}, {transform_indices = @transform_4, window_bounds = array<i64: 1, 32, 128>}, {transform_indices = @transform_5, window_bounds = array<i64: 1, 32, 128>}]} {
    %c0 = arith.constant 0 : index
    %c0_0 = arith.constant 0 : index
    %c0_1 = arith.constant 0 : index
    %0 = vector.load %arg3[%c0, %c0_0, %c0_1] : memref<1x32x128xbf16, #tpu.memory_space<vmem>>, vector<1x32x128xbf16>
    %1 = vector.shape_cast %0 : vector<1x32x128xbf16> to vector<32x128xbf16>
    %c0_2 = arith.constant 0 : index
    %c0_3 = arith.constant 0 : index
    %c0_4 = arith.constant 0 : index
    %2 = vector.load %arg4[%c0_2, %c0_3, %c0_4] : memref<1x128x128xbf16, #tpu.memory_space<vmem>>, vector<1x128x128xbf16>
    %3 = vector.shape_cast %2 : vector<1x128x128xbf16> to vector<128x128xbf16>
    %cst = arith.constant dense<0.000000e+00> : vector<32x128xf32>
    %4 = tpu.matmul %1, %3, %cst {dimension_numbers = #tpu.dot_dimension_numbers<[1], [0], [0], [1], [0, 0, 1, 1], [], []>} : vector<32x128xbf16>, vector<128x128xbf16>, vector<32x128xf32> -> vector<32x128xf32>
    %c0_5 = arith.constant 0 : index
    %c0_6 = arith.constant 0 : index
    %c0_7 = arith.constant 0 : index
    %5 = vector.load %arg5[%c0_5, %c0_6, %c0_7] : memref<1x1x128xf32, #tpu.memory_space<vmem>>, vector<1x1x128xf32>
    %6 = vector.shape_cast %5 : vector<1x1x128xf32> to vector<1x128xf32>
    %7 = vector.broadcast %6 : vector<1x128xf32> to vector<32x128xf32>
    %8 = arith.mulf %4, %7 : vector<32x128xf32>
    %c0_8 = arith.constant 0 : index
    %c0_9 = arith.constant 0 : index
    %c0_10 = arith.constant 0 : index
    %9 = vector.load %arg6[%c0_8, %c0_9, %c0_10] : memref<1x1x128xf32, #tpu.memory_space<vmem>>, vector<1x1x128xf32>
    %10 = vector.shape_cast %9 : vector<1x1x128xf32> to vector<1x128xf32>
    %11 = vector.broadcast %10 : vector<1x128xf32> to vector<32x128xf32>
    %12 = arith.addf %8, %11 : vector<32x128xf32>
    %c0_11 = arith.constant 0 : index
    %c0_12 = arith.constant 0 : index
    %c0_13 = arith.constant 0 : index
    %13 = vector.load %arg7[%c0_11, %c0_12, %c0_13] : memref<1x32x128xbf16, #tpu.memory_space<vmem>>, vector<1x32x128xbf16>
    %14 = vector.shape_cast %13 : vector<1x32x128xbf16> to vector<32x128xbf16>
    %15 = arith.extf %14 : vector<32x128xbf16> to vector<32x128xf32>
    %16 = arith.addf %12, %15 : vector<32x128xf32>
    %cst_14 = arith.constant 0.000000e+00 : f32
    %17 = vector.broadcast %cst_14 : f32 to vector<32x128xf32>
    %18 = arith.maximumf %16, %17 : vector<32x128xf32>
    %19 = arith.truncf %18 : vector<32x128xf32> to vector<32x128xbf16>
    %c0_15 = arith.constant 0 : index
    %c0_16 = arith.constant 0 : index
    %c0_17 = arith.constant 0 : index
    %20 = vector.load %arg8[%c0_15, %c0_16, %c0_17] : memref<1x32x128xbf16, #tpu.memory_space<vmem>>, vector<1x32x128xbf16>
    %21 = vector.shape_cast %20 : vector<1x32x128xbf16> to vector<32x128xbf16>
    %22 = vector.shape_cast %19 : vector<32x128xbf16> to vector<1x32x128xbf16>
    tpu.vector_store %arg8[%c0_15, %c0_16, %c0_17], %22 {strides = array<i32>} : memref<1x32x128xbf16, #tpu.memory_space<vmem>>, vector<1x32x128xbf16>,
    return
  }
  func.func @transform_0(%arg0: i32, %arg1: i32, %arg2: i32) -> (i32, i32, i32) {
    %c0_i32 = arith.constant 0 : i32
    %c0_i32_0 = arith.constant 0 : i32
    return %arg0, %arg1, %c0_i32 : i32, i32, i32
  }
  func.func @transform_1(%arg0: i32, %arg1: i32, %arg2: i32) -> (i32, i32, i32) {
    %c0_i32 = arith.constant 0 : i32
    %c0_i32_0 = arith.constant 0 : i32
    return %arg0, %c0_i32, %arg2 : i32, i32, i32
  }
  func.func @transform_2(%arg0: i32, %arg1: i32, %arg2: i32) -> (i32, i32, i32) {
    %c0_i32 = arith.constant 0 : i32
    %c0_i32_0 = arith.constant 0 : i32
    return %arg0, %c0_i32, %arg2 : i32, i32, i32
  }
  func.func @transform_3(%arg0: i32, %arg1: i32, %arg2: i32) -> (i32, i32, i32) {
    %c0_i32 = arith.constant 0 : i32
    %c0_i32_0 = arith.constant 0 : i32
    return %arg0, %c0_i32, %arg2 : i32, i32, i32
  }
  func.func @transform_4(%arg0: i32, %arg1: i32, %arg2: i32) -> (i32, i32, i32) {
    %c0_i32 = arith.constant 0 : i32
    return %arg0, %arg1, %arg2 : i32, i32, i32
  }
  func.func @transform_5(%arg0: i32, %arg1: i32, %arg2: i32) -> (i32, i32, i32) {
    %c0_i32 = arith.constant 0 : i32
    return %arg0, %arg1, %arg2 : i32, i32, i32
  }
}

module attributes {stable_mosaic.version = 11 : i64} {
  func.func @_gmm1_kernel(%arg0: i32, %arg1: i32, %arg2: i32, %arg3: memref<1x8x256xbf16, #tpu.memory_space<vmem>>, %arg4: memref<1x256x128xbf16, #tpu.memory_space<vmem>>, %arg5: memref<1x1x128xf32, #tpu.memory_space<vmem>>, %arg6: memref<1x1x128xf32, #tpu.memory_space<vmem>>, %arg7: memref<1x8x128xbf16, #tpu.memory_space<vmem>>) attributes {dimension_semantics = [#tpu.dimension_semantics<parallel>, #tpu.dimension_semantics<parallel>, #tpu.dimension_semantics<parallel>], iteration_bounds = array<i64: 2, 1, 1>, scalar_prefetch = 0 : i64, scratch_operands = 0 : i64, tpu.core_type = #tpu.core_type<tc>, window_params = [{transform_indices = @transform_0, window_bounds = array<i64: 1, 8, 256>}, {transform_indices = @transform_1, window_bounds = array<i64: 1, 256, 128>}, {transform_indices = @transform_2, window_bounds = array<i64: 1, 1, 128>}, {transform_indices = @transform_3, window_bounds = array<i64: 1, 1, 128>}, {transform_indices = @transform_4, window_bounds = array<i64: 1, 8, 128>}]} {
    %c0 = arith.constant 0 : index
    %c0_0 = arith.constant 0 : index
    %c0_1 = arith.constant 0 : index
    %0 = vector.load %arg3[%c0, %c0_0, %c0_1] : memref<1x8x256xbf16, #tpu.memory_space<vmem>>, vector<1x8x256xbf16>
    %1 = vector.shape_cast %0 : vector<1x8x256xbf16> to vector<8x256xbf16>
    %c0_2 = arith.constant 0 : index
    %c0_3 = arith.constant 0 : index
    %c0_4 = arith.constant 0 : index
    %2 = vector.load %arg4[%c0_2, %c0_3, %c0_4] : memref<1x256x128xbf16, #tpu.memory_space<vmem>>, vector<1x256x128xbf16>
    %3 = vector.shape_cast %2 : vector<1x256x128xbf16> to vector<256x128xbf16>
    %cst = arith.constant dense<0.000000e+00> : vector<8x128xf32>
    %4 = tpu.matmul %1, %3, %cst {dimension_numbers = #tpu.dot_dimension_numbers<[1], [0], [0], [1], [0, 0, 1, 1], [], []>} : vector<8x256xbf16>, vector<256x128xbf16>, vector<8x128xf32> -> vector<8x128xf32>
    %c0_5 = arith.constant 0 : index
    %c0_6 = arith.constant 0 : index
    %c0_7 = arith.constant 0 : index
    %5 = vector.load %arg5[%c0_5, %c0_6, %c0_7] : memref<1x1x128xf32, #tpu.memory_space<vmem>>, vector<1x1x128xf32>
    %6 = vector.shape_cast %5 : vector<1x1x128xf32> to vector<1x128xf32>
    %7 = vector.broadcast %6 : vector<1x128xf32> to vector<8x128xf32>
    %8 = arith.mulf %4, %7 : vector<8x128xf32>
    %c0_8 = arith.constant 0 : index
    %c0_9 = arith.constant 0 : index
    %c0_10 = arith.constant 0 : index
    %9 = vector.load %arg6[%c0_8, %c0_9, %c0_10] : memref<1x1x128xf32, #tpu.memory_space<vmem>>, vector<1x1x128xf32>
    %10 = vector.shape_cast %9 : vector<1x1x128xf32> to vector<1x128xf32>
    %11 = vector.broadcast %10 : vector<1x128xf32> to vector<8x128xf32>
    %12 = arith.addf %8, %11 : vector<8x128xf32>
    %cst_11 = arith.constant 0.000000e+00 : f32
    %13 = vector.broadcast %cst_11 : f32 to vector<8x128xf32>
    %14 = arith.maximumf %12, %13 : vector<8x128xf32>
    %15 = arith.truncf %14 : vector<8x128xf32> to vector<8x128xbf16>
    %c0_12 = arith.constant 0 : index
    %c0_13 = arith.constant 0 : index
    %c0_14 = arith.constant 0 : index
    %16 = vector.load %arg7[%c0_12, %c0_13, %c0_14] : memref<1x8x128xbf16, #tpu.memory_space<vmem>>, vector<1x8x128xbf16>
    %17 = vector.shape_cast %16 : vector<1x8x128xbf16> to vector<8x128xbf16>
    %18 = vector.shape_cast %15 : vector<8x128xbf16> to vector<1x8x128xbf16>
    tpu.vector_store %arg7[%c0_12, %c0_13, %c0_14], %18 {strides = array<i32>} : memref<1x8x128xbf16, #tpu.memory_space<vmem>>, vector<1x8x128xbf16>,
    return
  }
  func.func @transform_0(%arg0: i32, %arg1: i32, %arg2: i32) -> (i32, i32, i32) {
    %c0_i32 = arith.constant 0 : i32
    %c0_i32_0 = arith.constant 0 : i32
    return %arg0, %arg1, %c0_i32 : i32, i32, i32
  }
  func.func @transform_1(%arg0: i32, %arg1: i32, %arg2: i32) -> (i32, i32, i32) {
    %c0_i32 = arith.constant 0 : i32
    %c0_i32_0 = arith.constant 0 : i32
    return %arg0, %c0_i32, %arg2 : i32, i32, i32
  }
  func.func @transform_2(%arg0: i32, %arg1: i32, %arg2: i32) -> (i32, i32, i32) {
    %c0_i32 = arith.constant 0 : i32
    %c0_i32_0 = arith.constant 0 : i32
    return %arg0, %c0_i32, %arg2 : i32, i32, i32
  }
  func.func @transform_3(%arg0: i32, %arg1: i32, %arg2: i32) -> (i32, i32, i32) {
    %c0_i32 = arith.constant 0 : i32
    %c0_i32_0 = arith.constant 0 : i32
    return %arg0, %c0_i32, %arg2 : i32, i32, i32
  }
  func.func @transform_4(%arg0: i32, %arg1: i32, %arg2: i32) -> (i32, i32, i32) {
    %c0_i32 = arith.constant 0 : i32
    return %arg0, %arg1, %arg2 : i32, i32, i32
  }
}

module attributes {stable_mosaic.version = 11 : i64} {
  func.func @_gmm1_kernel(%arg0: i32, %arg1: i32, %arg2: i32, %arg3: memref<1x8x128xbf16, #tpu.memory_space<vmem>>, %arg4: memref<1x128x128xbf16, #tpu.memory_space<vmem>>, %arg5: memref<1x1x128xf32, #tpu.memory_space<vmem>>, %arg6: memref<1x1x128xf32, #tpu.memory_space<vmem>>, %arg7: memref<1x8x128xbf16, #tpu.memory_space<vmem>>) attributes {dimension_semantics = [#tpu.dimension_semantics<parallel>, #tpu.dimension_semantics<parallel>, #tpu.dimension_semantics<parallel>], iteration_bounds = array<i64: 1, 1, 1>, scalar_prefetch = 0 : i64, scratch_operands = 0 : i64, tpu.core_type = #tpu.core_type<tc>, window_params = [{transform_indices = @transform_0, window_bounds = array<i64: 1, 8, 128>}, {transform_indices = @transform_1, window_bounds = array<i64: 1, 128, 128>}, {transform_indices = @transform_2, window_bounds = array<i64: 1, 1, 128>}, {transform_indices = @transform_3, window_bounds = array<i64: 1, 1, 128>}, {transform_indices = @transform_4, window_bounds = array<i64: 1, 8, 128>}]} {
    %c0 = arith.constant 0 : index
    %c0_0 = arith.constant 0 : index
    %c0_1 = arith.constant 0 : index
    %0 = vector.load %arg3[%c0, %c0_0, %c0_1] : memref<1x8x128xbf16, #tpu.memory_space<vmem>>, vector<1x8x128xbf16>
    %1 = vector.shape_cast %0 : vector<1x8x128xbf16> to vector<8x128xbf16>
    %c0_2 = arith.constant 0 : index
    %c0_3 = arith.constant 0 : index
    %c0_4 = arith.constant 0 : index
    %2 = vector.load %arg4[%c0_2, %c0_3, %c0_4] : memref<1x128x128xbf16, #tpu.memory_space<vmem>>, vector<1x128x128xbf16>
    %3 = vector.shape_cast %2 : vector<1x128x128xbf16> to vector<128x128xbf16>
    %cst = arith.constant dense<0.000000e+00> : vector<8x128xf32>
    %4 = tpu.matmul %1, %3, %cst {dimension_numbers = #tpu.dot_dimension_numbers<[1], [0], [0], [1], [0, 0, 1, 1], [], []>} : vector<8x128xbf16>, vector<128x128xbf16>, vector<8x128xf32> -> vector<8x128xf32>
    %c0_5 = arith.constant 0 : index
    %c0_6 = arith.constant 0 : index
    %c0_7 = arith.constant 0 : index
    %5 = vector.load %arg5[%c0_5, %c0_6, %c0_7] : memref<1x1x128xf32, #tpu.memory_space<vmem>>, vector<1x1x128xf32>
    %6 = vector.shape_cast %5 : vector<1x1x128xf32> to vector<1x128xf32>
    %7 = vector.broadcast %6 : vector<1x128xf32> to vector<8x128xf32>
    %8 = arith.mulf %4, %7 : vector<8x128xf32>
    %c0_8 = arith.constant 0 : index
    %c0_9 = arith.constant 0 : index
    %c0_10 = arith.constant 0 : index
    %9 = vector.load %arg6[%c0_8, %c0_9, %c0_10] : memref<1x1x128xf32, #tpu.memory_space<vmem>>, vector<1x1x128xf32>
    %10 = vector.shape_cast %9 : vector<1x1x128xf32> to vector<1x128xf32>
    %11 = vector.broadcast %10 : vector<1x128xf32> to vector<8x128xf32>
    %12 = arith.addf %8, %11 : vector<8x128xf32>
    %13 = arith.truncf %12 : vector<8x128xf32> to vector<8x128xbf16>
    %c0_11 = arith.constant 0 : index
    %c0_12 = arith.constant 0 : index
    %c0_13 = arith.constant 0 : index
    %14 = vector.load %arg7[%c0_11, %c0_12, %c0_13] : memref<1x8x128xbf16, #tpu.memory_space<vmem>>, vector<1x8x128xbf16>
    %15 = vector.shape_cast %14 : vector<1x8x128xbf16> to vector<8x128xbf16>
    %16 = vector.shape_cast %13 : vector<8x128xbf16> to vector<1x8x128xbf16>
    tpu.vector_store %arg7[%c0_11, %c0_12, %c0_13], %16 {strides = array<i32>} : memref<1x8x128xbf16, #tpu.memory_space<vmem>>, vector<1x8x128xbf16>,
    return
  }
  func.func @transform_0(%arg0: i32, %arg1: i32, %arg2: i32) -> (i32, i32, i32) {
    %c0_i32 = arith.constant 0 : i32
    %c0_i32_0 = arith.constant 0 : i32
    return %arg0, %arg1, %c0_i32 : i32, i32, i32
  }
  func.func @transform_1(%arg0: i32, %arg1: i32, %arg2: i32) -> (i32, i32, i32) {
    %c0_i32 = arith.constant 0 : i32
    %c0_i32_0 = arith.constant 0 : i32
    return %arg0, %c0_i32, %arg2 : i32, i32, i32
  }
  func.func @transform_2(%arg0: i32, %arg1: i32, %arg2: i32) -> (i32, i32, i32) {
    %c0_i32 = arith.constant 0 : i32
    %c0_i32_0 = arith.constant 0 : i32
    return %arg0, %c0_i32, %arg2 : i32, i32, i32
  }
  func.func @transform_3(%arg0: i32, %arg1: i32, %arg2: i32) -> (i32, i32, i32) {
    %c0_i32 = arith.constant 0 : i32
    %c0_i32_0 = arith.constant 0 : i32
    return %arg0, %c0_i32, %arg2 : i32, i32, i32
  }
  func.func @transform_4(%arg0: i32, %arg1: i32, %arg2: i32) -> (i32, i32, i32) {
    %c0_i32 = arith.constant 0 : i32
    return %arg0, %arg1, %arg2 : i32, i32, i32
  }
}

module attributes {stable_mosaic.version = 11 : i64} {
  func.func @_gmm1_kernel(%arg0: i32, %arg1: i32, %arg2: i32, %arg3: memref<1x8x128xbf16, #tpu.memory_space<vmem>>, %arg4: memref<1x128x128xbf16, #tpu.memory_space<vmem>>, %arg5: memref<1x1x128xf32, #tpu.memory_space<vmem>>, %arg6: memref<1x1x128xf32, #tpu.memory_space<vmem>>, %arg7: memref<1x8x128xbf16, #tpu.memory_space<vmem>>) attributes {dimension_semantics = [#tpu.dimension_semantics<parallel>, #tpu.dimension_semantics<parallel>, #tpu.dimension_semantics<parallel>], iteration_bounds = array<i64: 1, 1, 1>, scalar_prefetch = 0 : i64, scratch_operands = 0 : i64, tpu.core_type = #tpu.core_type<tc>, window_params = [{transform_indices = @transform_0, window_bounds = array<i64: 1, 8, 128>}, {transform_indices = @transform_1, window_bounds = array<i64: 1, 128, 128>}, {transform_indices = @transform_2, window_bounds = array<i64: 1, 1, 128>}, {transform_indices = @transform_3, window_bounds = array<i64: 1, 1, 128>}, {transform_indices = @transform_4, window_bounds = array<i64: 1, 8, 128>}]} {
    %c0 = arith.constant 0 : index
    %c0_0 = arith.constant 0 : index
    %c0_1 = arith.constant 0 : index
    %0 = vector.load %arg3[%c0, %c0_0, %c0_1] : memref<1x8x128xbf16, #tpu.memory_space<vmem>>, vector<1x8x128xbf16>
    %1 = vector.shape_cast %0 : vector<1x8x128xbf16> to vector<8x128xbf16>
    %c0_2 = arith.constant 0 : index
    %c0_3 = arith.constant 0 : index
    %c0_4 = arith.constant 0 : index
    %2 = vector.load %arg4[%c0_2, %c0_3, %c0_4] : memref<1x128x128xbf16, #tpu.memory_space<vmem>>, vector<1x128x128xbf16>
    %3 = vector.shape_cast %2 : vector<1x128x128xbf16> to vector<128x128xbf16>
    %cst = arith.constant dense<0.000000e+00> : vector<8x128xf32>
    %4 = tpu.matmul %1, %3, %cst {dimension_numbers = #tpu.dot_dimension_numbers<[1], [0], [0], [1], [0, 0, 1, 1], [], []>} : vector<8x128xbf16>, vector<128x128xbf16>, vector<8x128xf32> -> vector<8x128xf32>
    %c0_5 = arith.constant 0 : index
    %c0_6 = arith.constant 0 : index
    %c0_7 = arith.constant 0 : index
    %5 = vector.load %arg5[%c0_5, %c0_6, %c0_7] : memref<1x1x128xf32, #tpu.memory_space<vmem>>, vector<1x1x128xf32>
    %6 = vector.shape_cast %5 : vector<1x1x128xf32> to vector<1x128xf32>
    %7 = vector.broadcast %6 : vector<1x128xf32> to vector<8x128xf32>
    %8 = arith.mulf %4, %7 : vector<8x128xf32>
    %c0_8 = arith.constant 0 : index
    %c0_9 = arith.constant 0 : index
    %c0_10 = arith.constant 0 : index
    %9 = vector.load %arg6[%c0_8, %c0_9, %c0_10] : memref<1x1x128xf32, #tpu.memory_space<vmem>>, vector<1x1x128xf32>
    %10 = vector.shape_cast %9 : vector<1x1x128xf32> to vector<1x128xf32>
    %11 = vector.broadcast %10 : vector<1x128xf32> to vector<8x128xf32>
    %12 = arith.addf %8, %11 : vector<8x128xf32>
    %cst_11 = arith.constant 0.000000e+00 : f32
    %13 = vector.broadcast %cst_11 : f32 to vector<8x128xf32>
    %14 = arith.maximumf %12, %13 : vector<8x128xf32>
    %15 = arith.truncf %14 : vector<8x128xf32> to vector<8x128xbf16>
    %c0_12 = arith.constant 0 : index
    %c0_13 = arith.constant 0 : index
    %c0_14 = arith.constant 0 : index
    %16 = vector.load %arg7[%c0_12, %c0_13, %c0_14] : memref<1x8x128xbf16, #tpu.memory_space<vmem>>, vector<1x8x128xbf16>
    %17 = vector.shape_cast %16 : vector<1x8x128xbf16> to vector<8x128xbf16>
    %18 = vector.shape_cast %15 : vector<8x128xbf16> to vector<1x8x128xbf16>
    tpu.vector_store %arg7[%c0_12, %c0_13, %c0_14], %18 {strides = array<i32>} : memref<1x8x128xbf16, #tpu.memory_space<vmem>>, vector<1x8x128xbf16>,
    return
  }
  func.func @transform_0(%arg0: i32, %arg1: i32, %arg2: i32) -> (i32, i32, i32) {
    %c0_i32 = arith.constant 0 : i32
    %c0_i32_0 = arith.constant 0 : i32
    return %arg0, %arg1, %c0_i32 : i32, i32, i32
  }
  func.func @transform_1(%arg0: i32, %arg1: i32, %arg2: i32) -> (i32, i32, i32) {
    %c0_i32 = arith.constant 0 : i32
    %c0_i32_0 = arith.constant 0 : i32
    return %arg0, %c0_i32, %arg2 : i32, i32, i32
  }
  func.func @transform_2(%arg0: i32, %arg1: i32, %arg2: i32) -> (i32, i32, i32) {
    %c0_i32 = arith.constant 0 : i32
    %c0_i32_0 = arith.constant 0 : i32
    return %arg0, %c0_i32, %arg2 : i32, i32, i32
  }
  func.func @transform_3(%arg0: i32, %arg1: i32, %arg2: i32) -> (i32, i32, i32) {
    %c0_i32 = arith.constant 0 : i32
    %c0_i32_0 = arith.constant 0 : i32
    return %arg0, %c0_i32, %arg2 : i32, i32, i32
  }
  func.func @transform_4(%arg0: i32, %arg1: i32, %arg2: i32) -> (i32, i32, i32) {
    %c0_i32 = arith.constant 0 : i32
    return %arg0, %arg1, %arg2 : i32, i32, i32
  }
}

module attributes {stable_mosaic.version = 11 : i64} {
  func.func @_gmm1_res_kernel(%arg0: i32, %arg1: i32, %arg2: i32, %arg3: memref<1x8x128xbf16, #tpu.memory_space<vmem>>, %arg4: memref<1x128x128xbf16, #tpu.memory_space<vmem>>, %arg5: memref<1x1x128xf32, #tpu.memory_space<vmem>>, %arg6: memref<1x1x128xf32, #tpu.memory_space<vmem>>, %arg7: memref<1x8x128xbf16, #tpu.memory_space<vmem>>, %arg8: memref<1x8x128xbf16, #tpu.memory_space<vmem>>) attributes {dimension_semantics = [#tpu.dimension_semantics<parallel>, #tpu.dimension_semantics<parallel>, #tpu.dimension_semantics<parallel>], iteration_bounds = array<i64: 1, 1, 1>, scalar_prefetch = 0 : i64, scratch_operands = 0 : i64, tpu.core_type = #tpu.core_type<tc>, window_params = [{transform_indices = @transform_0, window_bounds = array<i64: 1, 8, 128>}, {transform_indices = @transform_1, window_bounds = array<i64: 1, 128, 128>}, {transform_indices = @transform_2, window_bounds = array<i64: 1, 1, 128>}, {transform_indices = @transform_3, window_bounds = array<i64: 1, 1, 128>}, {transform_indices = @transform_4, window_bounds = array<i64: 1, 8, 128>}, {transform_indices = @transform_5, window_bounds = array<i64: 1, 8, 128>}]} {
    %c0 = arith.constant 0 : index
    %c0_0 = arith.constant 0 : index
    %c0_1 = arith.constant 0 : index
    %0 = vector.load %arg3[%c0, %c0_0, %c0_1] : memref<1x8x128xbf16, #tpu.memory_space<vmem>>, vector<1x8x128xbf16>
    %1 = vector.shape_cast %0 : vector<1x8x128xbf16> to vector<8x128xbf16>
    %c0_2 = arith.constant 0 : index
    %c0_3 = arith.constant 0 : index
    %c0_4 = arith.constant 0 : index
    %2 = vector.load %arg4[%c0_2, %c0_3, %c0_4] : memref<1x128x128xbf16, #tpu.memory_space<vmem>>, vector<1x128x128xbf16>
    %3 = vector.shape_cast %2 : vector<1x128x128xbf16> to vector<128x128xbf16>
    %cst = arith.constant dense<0.000000e+00> : vector<8x128xf32>
    %4 = tpu.matmul %1, %3, %cst {dimension_numbers = #tpu.dot_dimension_numbers<[1], [0], [0], [1], [0, 0, 1, 1], [], []>} : vector<8x128xbf16>, vector<128x128xbf16>, vector<8x128xf32> -> vector<8x128xf32>
    %c0_5 = arith.constant 0 : index
    %c0_6 = arith.constant 0 : index
    %c0_7 = arith.constant 0 : index
    %5 = vector.load %arg5[%c0_5, %c0_6, %c0_7] : memref<1x1x128xf32, #tpu.memory_space<vmem>>, vector<1x1x128xf32>
    %6 = vector.shape_cast %5 : vector<1x1x128xf32> to vector<1x128xf32>
    %7 = vector.broadcast %6 : vector<1x128xf32> to vector<8x128xf32>
    %8 = arith.mulf %4, %7 : vector<8x128xf32>
    %c0_8 = arith.constant 0 : index
    %c0_9 = arith.constant 0 : index
    %c0_10 = arith.constant 0 : index
    %9 = vector.load %arg6[%c0_8, %c0_9, %c0_10] : memref<1x1x128xf32, #tpu.memory_space<vmem>>, vector<1x1x128xf32>
    %10 = vector.shape_cast %9 : vector<1x1x128xf32> to vector<1x128xf32>
    %11 = vector.broadcast %10 : vector<1x128xf32> to vector<8x128xf32>
    %12 = arith.addf %8, %11 : vector<8x128xf32>
    %c0_11 = arith.constant 0 : index
    %c0_12 = arith.constant 0 : index
    %c0_13 = arith.constant 0 : index
    %13 = vector.load %arg7[%c0_11, %c0_12, %c0_13] : memref<1x8x128xbf16, #tpu.memory_space<vmem>>, vector<1x8x128xbf16>
    %14 = vector.shape_cast %13 : vector<1x8x128xbf16> to vector<8x128xbf16>
    %15 = arith.extf %14 : vector<8x128xbf16> to vector<8x128xf32>
    %16 = arith.addf %12, %15 : vector<8x128xf32>
    %cst_14 = arith.constant 0.000000e+00 : f32
    %17 = vector.broadcast %cst_14 : f32 to vector<8x128xf32>
    %18 = arith.maximumf %16, %17 : vector<8x128xf32>
    %19 = arith.truncf %18 : vector<8x128xf32> to vector<8x128xbf16>
    %c0_15 = arith.constant 0 : index
    %c0_16 = arith.constant 0 : index
    %c0_17 = arith.constant 0 : index
    %20 = vector.load %arg8[%c0_15, %c0_16, %c0_17] : memref<1x8x128xbf16, #tpu.memory_space<vmem>>, vector<1x8x128xbf16>
    %21 = vector.shape_cast %20 : vector<1x8x128xbf16> to vector<8x128xbf16>
    %22 = vector.shape_cast %19 : vector<8x128xbf16> to vector<1x8x128xbf16>
    tpu.vector_store %arg8[%c0_15, %c0_16, %c0_17], %22 {strides = array<i32>} : memref<1x8x128xbf16, #tpu.memory_space<vmem>>, vector<1x8x128xbf16>,
    return
  }
  func.func @transform_0(%arg0: i32, %arg1: i32, %arg2: i32) -> (i32, i32, i32) {
    %c0_i32 = arith.constant 0 : i32
    %c0_i32_0 = arith.constant 0 : i32
    return %arg0, %arg1, %c0_i32 : i32, i32, i32
  }
  func.func @transform_1(%arg0: i32, %arg1: i32, %arg2: i32) -> (i32, i32, i32) {
    %c0_i32 = arith.constant 0 : i32
    %c0_i32_0 = arith.constant 0 : i32
    return %arg0, %c0_i32, %arg2 : i32, i32, i32
  }
  func.func @transform_2(%arg0: i32, %arg1: i32, %arg2: i32) -> (i32, i32, i32) {
    %c0_i32 = arith.constant 0 : i32
    %c0_i32_0 = arith.constant 0 : i32
    return %arg0, %c0_i32, %arg2 : i32, i32, i32
  }
  func.func @transform_3(%arg0: i32, %arg1: i32, %arg2: i32) -> (i32, i32, i32) {
    %c0_i32 = arith.constant 0 : i32
    %c0_i32_0 = arith.constant 0 : i32
    return %arg0, %c0_i32, %arg2 : i32, i32, i32
  }
  func.func @transform_4(%arg0: i32, %arg1: i32, %arg2: i32) -> (i32, i32, i32) {
    %c0_i32 = arith.constant 0 : i32
    return %arg0, %arg1, %arg2 : i32, i32, i32
  }
  func.func @transform_5(%arg0: i32, %arg1: i32, %arg2: i32) -> (i32, i32, i32) {
    %c0_i32 = arith.constant 0 : i32
    return %arg0, %arg1, %arg2 : i32, i32, i32
  }
}

module attributes {stable_mosaic.version = 11 : i64} {
  func.func @_gmm1_kernel(%arg0: i32, %arg1: i32, %arg2: i32, %arg3: memref<1x8x384xbf16, #tpu.memory_space<vmem>>, %arg4: memref<1x384x128xbf16, #tpu.memory_space<vmem>>, %arg5: memref<1x1x128xf32, #tpu.memory_space<vmem>>, %arg6: memref<1x1x128xf32, #tpu.memory_space<vmem>>, %arg7: memref<1x8x128xbf16, #tpu.memory_space<vmem>>) attributes {dimension_semantics = [#tpu.dimension_semantics<parallel>, #tpu.dimension_semantics<parallel>, #tpu.dimension_semantics<parallel>], iteration_bounds = array<i64: 2, 1, 1>, scalar_prefetch = 0 : i64, scratch_operands = 0 : i64, tpu.core_type = #tpu.core_type<tc>, window_params = [{transform_indices = @transform_0, window_bounds = array<i64: 1, 8, 384>}, {transform_indices = @transform_1, window_bounds = array<i64: 1, 384, 128>}, {transform_indices = @transform_2, window_bounds = array<i64: 1, 1, 128>}, {transform_indices = @transform_3, window_bounds = array<i64: 1, 1, 128>}, {transform_indices = @transform_4, window_bounds = array<i64: 1, 8, 128>}]} {
    %c0 = arith.constant 0 : index
    %c0_0 = arith.constant 0 : index
    %c0_1 = arith.constant 0 : index
    %0 = vector.load %arg3[%c0, %c0_0, %c0_1] : memref<1x8x384xbf16, #tpu.memory_space<vmem>>, vector<1x8x384xbf16>
    %1 = vector.shape_cast %0 : vector<1x8x384xbf16> to vector<8x384xbf16>
    %c0_2 = arith.constant 0 : index
    %c0_3 = arith.constant 0 : index
    %c0_4 = arith.constant 0 : index
    %2 = vector.load %arg4[%c0_2, %c0_3, %c0_4] : memref<1x384x128xbf16, #tpu.memory_space<vmem>>, vector<1x384x128xbf16>
    %3 = vector.shape_cast %2 : vector<1x384x128xbf16> to vector<384x128xbf16>
    %cst = arith.constant dense<0.000000e+00> : vector<8x128xf32>
    %4 = tpu.matmul %1, %3, %cst {dimension_numbers = #tpu.dot_dimension_numbers<[1], [0], [0], [1], [0, 0, 1, 1], [], []>} : vector<8x384xbf16>, vector<384x128xbf16>, vector<8x128xf32> -> vector<8x128xf32>
    %c0_5 = arith.constant 0 : index
    %c0_6 = arith.constant 0 : index
    %c0_7 = arith.constant 0 : index
    %5 = vector.load %arg5[%c0_5, %c0_6, %c0_7] : memref<1x1x128xf32, #tpu.memory_space<vmem>>, vector<1x1x128xf32>
    %6 = vector.shape_cast %5 : vector<1x1x128xf32> to vector<1x128xf32>
    %7 = vector.broadcast %6 : vector<1x128xf32> to vector<8x128xf32>
    %8 = arith.mulf %4, %7 : vector<8x128xf32>
    %c0_8 = arith.constant 0 : index
    %c0_9 = arith.constant 0 : index
    %c0_10 = arith.constant 0 : index
    %9 = vector.load %arg6[%c0_8, %c0_9, %c0_10] : memref<1x1x128xf32, #tpu.memory_space<vmem>>, vector<1x1x128xf32>
    %10 = vector.shape_cast %9 : vector<1x1x128xf32> to vector<1x128xf32>
    %11 = vector.broadcast %10 : vector<1x128xf32> to vector<8x128xf32>
    %12 = arith.addf %8, %11 : vector<8x128xf32>
    %cst_11 = arith.constant 0.000000e+00 : f32
    %13 = vector.broadcast %cst_11 : f32 to vector<8x128xf32>
    %14 = arith.maximumf %12, %13 : vector<8x128xf32>
    %15 = arith.truncf %14 : vector<8x128xf32> to vector<8x128xbf16>
    %c0_12 = arith.constant 0 : index
    %c0_13 = arith.constant 0 : index
    %c0_14 = arith.constant 0 : index
    %16 = vector.load %arg7[%c0_12, %c0_13, %c0_14] : memref<1x8x128xbf16, #tpu.memory_space<vmem>>, vector<1x8x128xbf16>
    %17 = vector.shape_cast %16 : vector<1x8x128xbf16> to vector<8x128xbf16>
    %18 = vector.shape_cast %15 : vector<8x128xbf16> to vector<1x8x128xbf16>
    tpu.vector_store %arg7[%c0_12, %c0_13, %c0_14], %18 {strides = array<i32>} : memref<1x8x128xbf16, #tpu.memory_space<vmem>>, vector<1x8x128xbf16>,
    return
  }
  func.func @transform_0(%arg0: i32, %arg1: i32, %arg2: i32) -> (i32, i32, i32) {
    %c0_i32 = arith.constant 0 : i32
    %c0_i32_0 = arith.constant 0 : i32
    return %arg0, %arg1, %c0_i32 : i32, i32, i32
  }
  func.func @transform_1(%arg0: i32, %arg1: i32, %arg2: i32) -> (i32, i32, i32) {
    %c0_i32 = arith.constant 0 : i32
    %c0_i32_0 = arith.constant 0 : i32
    return %arg0, %c0_i32, %arg2 : i32, i32, i32
  }
  func.func @transform_2(%arg0: i32, %arg1: i32, %arg2: i32) -> (i32, i32, i32) {
    %c0_i32 = arith.constant 0 : i32
    %c0_i32_0 = arith.constant 0 : i32
    return %arg0, %c0_i32, %arg2 : i32, i32, i32
  }
  func.func @transform_3(%arg0: i32, %arg1: i32, %arg2: i32) -> (i32, i32, i32) {
    %c0_i32 = arith.constant 0 : i32
    %c0_i32_0 = arith.constant 0 : i32
    return %arg0, %c0_i32, %arg2 : i32, i32, i32
  }
  func.func @transform_4(%arg0: i32, %arg1: i32, %arg2: i32) -> (i32, i32, i32) {
    %c0_i32 = arith.constant 0 : i32
    return %arg0, %arg1, %arg2 : i32, i32, i32
  }
}

module attributes {stable_mosaic.version = 11 : i64} {
  func.func @_avgpool_kernel(%arg0: i32, %arg1: memref<1x1x64xbf16, #tpu.memory_space<vmem>>, %arg2: memref<1x1x64xf32, #tpu.memory_space<vmem>>) attributes {dimension_semantics = [#tpu.dimension_semantics<parallel>], iteration_bounds = array<i64: 2>, scalar_prefetch = 0 : i64, scratch_operands = 0 : i64, tpu.core_type = #tpu.core_type<tc>, window_params = [{transform_indices = @transform_0, window_bounds = array<i64: 1, 1, 64>}, {transform_indices = @transform_1, window_bounds = array<i64: 1, 1, 64>}]} {
    %c0 = arith.constant 0 : index
    %c0_0 = arith.constant 0 : index
    %c0_1 = arith.constant 0 : index
    %0 = vector.load %arg1[%c0, %c0_0, %c0_1] : memref<1x1x64xbf16, #tpu.memory_space<vmem>>, vector<1x1x64xbf16>
    %1 = vector.shape_cast %0 : vector<1x1x64xbf16> to vector<1x64xbf16>
    %2 = arith.extf %1 : vector<1x64xbf16> to vector<1x64xf32>
    %cst = arith.constant dense<0.000000e+00> : vector<64xf32>
    %3 = vector.multi_reduction <add>, %2, %cst [0] : vector<1x64xf32> to vector<64xf32>
    %4 = vector.shape_cast %3 : vector<64xf32> to vector<1x64xf32>
    %cst_2 = arith.constant 1.000000e+00 : f32
    %5 = vector.broadcast %cst_2 : f32 to vector<1x64xf32>
    %6 = arith.divf %4, %5 : vector<1x64xf32>
    %c0_3 = arith.constant 0 : index
    %c0_4 = arith.constant 0 : index
    %c0_5 = arith.constant 0 : index
    %7 = vector.load %arg2[%c0_3, %c0_4, %c0_5] : memref<1x1x64xf32, #tpu.memory_space<vmem>>, vector<1x1x64xf32>
    %8 = vector.shape_cast %7 : vector<1x1x64xf32> to vector<1x64xf32>
    %9 = vector.shape_cast %6 : vector<1x64xf32> to vector<1x1x64xf32>
    tpu.vector_store %arg2[%c0_3, %c0_4, %c0_5], %9 {strides = array<i32>} : memref<1x1x64xf32, #tpu.memory_space<vmem>>, vector<1x1x64xf32>,
    return
  }
  func.func @transform_0(%arg0: i32) -> (i32, i32, i32) {
    %c0_i32 = arith.constant 0 : i32
    %c0_i32_0 = arith.constant 0 : i32
    %c0_i32_1 = arith.constant 0 : i32
    return %arg0, %c0_i32, %c0_i32_0 : i32, i32, i32
  }
  func.func @transform_1(%arg0: i32) -> (i32, i32, i32) {
    %c0_i32 = arith.constant 0 : i32
    %c0_i32_0 = arith.constant 0 : i32
    %c0_i32_1 = arith.constant 0 : i32
    return %arg0, %c0_i32, %c0_i32_0 : i32, i32, i32
  }
}

module attributes {stable_mosaic.version = 11 : i64} {
  func.func @_gmm1_kernel(%arg0: i32, %arg1: i32, %arg2: i32, %arg3: memref<1x8x128xbf16, #tpu.memory_space<vmem>>, %arg4: memref<1x128x128xbf16, #tpu.memory_space<vmem>>, %arg5: memref<1x1x128xf32, #tpu.memory_space<vmem>>, %arg6: memref<1x1x128xf32, #tpu.memory_space<vmem>>, %arg7: memref<1x8x128xf32, #tpu.memory_space<vmem>>) attributes {dimension_semantics = [#tpu.dimension_semantics<parallel>, #tpu.dimension_semantics<parallel>, #tpu.dimension_semantics<parallel>], iteration_bounds = array<i64: 1, 1, 1>, scalar_prefetch = 0 : i64, scratch_operands = 0 : i64, tpu.core_type = #tpu.core_type<tc>, window_params = [{transform_indices = @transform_0, window_bounds = array<i64: 1, 8, 128>}, {transform_indices = @transform_1, window_bounds = array<i64: 1, 128, 128>}, {transform_indices = @transform_2, window_bounds = array<i64: 1, 1, 128>}, {transform_indices = @transform_3, window_bounds = array<i64: 1, 1, 128>}, {transform_indices = @transform_4, window_bounds = array<i64: 1, 8, 128>}]} {
    %c0 = arith.constant 0 : index
    %c0_0 = arith.constant 0 : index
    %c0_1 = arith.constant 0 : index
    %0 = vector.load %arg3[%c0, %c0_0, %c0_1] : memref<1x8x128xbf16, #tpu.memory_space<vmem>>, vector<1x8x128xbf16>
    %1 = vector.shape_cast %0 : vector<1x8x128xbf16> to vector<8x128xbf16>
    %c0_2 = arith.constant 0 : index
    %c0_3 = arith.constant 0 : index
    %c0_4 = arith.constant 0 : index
    %2 = vector.load %arg4[%c0_2, %c0_3, %c0_4] : memref<1x128x128xbf16, #tpu.memory_space<vmem>>, vector<1x128x128xbf16>
    %3 = vector.shape_cast %2 : vector<1x128x128xbf16> to vector<128x128xbf16>
    %cst = arith.constant dense<0.000000e+00> : vector<8x128xf32>
    %4 = tpu.matmul %1, %3, %cst {dimension_numbers = #tpu.dot_dimension_numbers<[1], [0], [0], [1], [0, 0, 1, 1], [], []>} : vector<8x128xbf16>, vector<128x128xbf16>, vector<8x128xf32> -> vector<8x128xf32>
    %c0_5 = arith.constant 0 : index
    %c0_6 = arith.constant 0 : index
    %c0_7 = arith.constant 0 : index
    %5 = vector.load %arg5[%c0_5, %c0_6, %c0_7] : memref<1x1x128xf32, #tpu.memory_space<vmem>>, vector<1x1x128xf32>
    %6 = vector.shape_cast %5 : vector<1x1x128xf32> to vector<1x128xf32>
    %7 = vector.broadcast %6 : vector<1x128xf32> to vector<8x128xf32>
    %8 = arith.mulf %4, %7 : vector<8x128xf32>
    %c0_8 = arith.constant 0 : index
    %c0_9 = arith.constant 0 : index
    %c0_10 = arith.constant 0 : index
    %9 = vector.load %arg6[%c0_8, %c0_9, %c0_10] : memref<1x1x128xf32, #tpu.memory_space<vmem>>, vector<1x1x128xf32>
    %10 = vector.shape_cast %9 : vector<1x1x128xf32> to vector<1x128xf32>
    %11 = vector.broadcast %10 : vector<1x128xf32> to vector<8x128xf32>
    %12 = arith.addf %8, %11 : vector<8x128xf32>
    %c0_11 = arith.constant 0 : index
    %c0_12 = arith.constant 0 : index
    %c0_13 = arith.constant 0 : index
    %13 = vector.load %arg7[%c0_11, %c0_12, %c0_13] : memref<1x8x128xf32, #tpu.memory_space<vmem>>, vector<1x8x128xf32>
    %14 = vector.shape_cast %13 : vector<1x8x128xf32> to vector<8x128xf32>
    %15 = vector.shape_cast %12 : vector<8x128xf32> to vector<1x8x128xf32>
    tpu.vector_store %arg7[%c0_11, %c0_12, %c0_13], %15 {strides = array<i32>} : memref<1x8x128xf32, #tpu.memory_space<vmem>>, vector<1x8x128xf32>,
    return
  }
  func.func @transform_0(%arg0: i32, %arg1: i32, %arg2: i32) -> (i32, i32, i32) {
    %c0_i32 = arith.constant 0 : i32
    %c0_i32_0 = arith.constant 0 : i32
    return %arg0, %arg1, %c0_i32 : i32, i32, i32
  }
  func.func @transform_1(%arg0: i32, %arg1: i32, %arg2: i32) -> (i32, i32, i32) {
    %c0_i32 = arith.constant 0 : i32
    %c0_i32_0 = arith.constant 0 : i32
    return %arg0, %c0_i32, %arg2 : i32, i32, i32
  }
  func.func @transform_2(%arg0: i32, %arg1: i32, %arg2: i32) -> (i32, i32, i32) {
    %c0_i32 = arith.constant 0 : i32
    %c0_i32_0 = arith.constant 0 : i32
    return %arg0, %c0_i32, %arg2 : i32, i32, i32
  }
  func.func @transform_3(%arg0: i32, %arg1: i32, %arg2: i32) -> (i32, i32, i32) {
    %c0_i32 = arith.constant 0 : i32
    %c0_i32_0 = arith.constant 0 : i32
    return %arg0, %c0_i32, %arg2 : i32, i32, i32
  }
  func.func @transform_4(%arg0: i32, %arg1: i32, %arg2: i32) -> (i32, i32, i32) {
    %c0_i32 = arith.constant 0 : i32
    return %arg0, %arg1, %arg2 : i32, i32, i32
  }
}

</mosaic_0001>

<bundles_post_ra>
// kernel: encoder_forward.56
= control target key start
LH: loop header
LB: loop body
LE: loop exit
PB: predicated region body
PF: predicated region fallthrough
CT: control target
= control target key end

     0   :  { %v1895_v0 = vmov 0   ;;  %s2427_s1 = inlined_call_operand.vmem [shape: bf16[1,256,128], index: 1, kind: input, shape index: {}]   ;;  %s2428_s0 = inlined_call_operand.vmem [shape: bf16[1,512,256], index: 0, kind: input, shape index: {}]   ;;  %s2429_s2 = inlined_call_operand.vmem [shape: f32[1,1,128], index: 2, kind: input, shape index: {}]   ;;  %s2430_s3 = inlined_call_operand.vmem [shape: f32[1,1,128], index: 3, kind: input, shape index: {}]   ;;  %s2431_s4 = inlined_call_operand.vmem [shape: bf16[1,512,128], index: 4, kind: output, shape index: {}]  }
   0x1   :  { %530 = vmatprep.subr.bf16.mxu0 %v1895_v0  ;;  %1750 = vmatprep.subr.bf16.mxu1 %v1895_v0  ;;  %v1783_v1 = vld [vmem:[%s2427_s1] sm:$0xff]   ;;  %v1784_v2 = vld [vmem:[%s2427_s1 + $0x8] sm:$0xff]   ;;  %v1785_v3 = vld [vmem:[%s2427_s1 + $0x10] sm:$0xff]  }
   0x2   :  { %531 = vmatpush1.bf16.msra.mxu0 %v1783_v1  ;;  %1766 = vmatpush1.bf16.msra.mxu1 %v1783_v1  ;;  %v1786_v4 = vld [vmem:[%s2427_s1 + $0x18] sm:$0xff]   ;;  %v1787_v5 = vld [vmem:[%s2427_s1 + $0x20] sm:$0xff]   ;;  %v1788_v7 = vld [vmem:[%s2427_s1 + $0x28] sm:$0xff]  }
   0x3   :  { %532 = vmatprep.subr.bf16.mxu0 %v1895_v0  ;;  %1751 = vmatprep.subr.bf16.mxu1 %v1895_v0  ;;  %v1801_v6 = vld [vmem:[%s2428_s0 + $0x4] ss:$8 sps:$4 sm:$0xff]   ;;  %v1789_v9 = vld [vmem:[%s2427_s1 + $0x30] sm:$0xff]   ;;  %v1790_v10 = vld [vmem:[%s2427_s1 + $0x38] sm:$0xff]  }
   0x4   :  { %v1804_v8 = vld [vmem:[%s2428_s0 + $0x104] ss:$8 sps:$4 sm:$0xff]   ;;  %562 = vmatprep.mubr.bf16.mxu0 %v1801_v6  ;;  %v1793_v13 = vld [vmem:[%s2427_s1 + $0x50] sm:$0xff]   ;;  %v1794_v14 = vld [vmem:[%s2427_s1 + $0x58] sm:$0xff]  }
   0x5   :  { %690 = vmatprep.mubr.bf16.mxu1 %v1804_v8  ;;  %v1791_v11 = vld [vmem:[%s2427_s1 + $0x40] sm:$0xff]   ;;  %v1792_v12 = vld [vmem:[%s2427_s1 + $0x48] sm:$0xff]   ;;  %v1797_v17 = vld [vmem:[%s2427_s1 + $0x70] sm:$0xff]  }
   0x6   :  { %533 = vmatpush1.bf16.msra.mxu0 %v1784_v2  ;;  %1767 = vmatpush1.bf16.msra.mxu1 %v1784_v2  ;;  %v1795_v15 = vld [vmem:[%s2427_s1 + $0x60] sm:$0xff]   ;;  %v1796_v16 = vld [vmem:[%s2427_s1 + $0x68] sm:$0xff]   ;;  %v1798_v18 = vld [vmem:[%s2427_s1 + $0x78] sm:$0xff]  }
   0x7   :  { %534 = vmatprep.subr.bf16.mxu0 %v1895_v0  ;;  %1752 = vmatprep.subr.bf16.mxu1 %v1895_v0  ;;  %v1799_v19 = vld [vmem:[%s2428_s0] ss:$8 sps:$4 sm:$0xff]   ;;  %v1805_v21 = vld [vmem:[%s2428_s0 + $0x14] ss:$8 sps:$4 sm:$0xff]   ;;  %v1809_v23 = vld [vmem:[%s2428_s0 + $0x10] ss:$8 sps:$4 sm:$0xff]  }
   0x8   :  { %v1802_v20 = vld [vmem:[%s2428_s0 + $0x100] ss:$8 sps:$4 sm:$0xff]   ;;  %v1807_v22 = vld [vmem:[%s2428_s0 + $0x114] ss:$8 sps:$4 sm:$0xff]   ;;  %v1810_v24 = vld [vmem:[%s2428_s0 + $0x110] ss:$8 sps:$4 sm:$0xff]  }
   0x9   :  { %v1811_v25 = vld [vmem:[%s2428_s0 + $0x24] ss:$8 sps:$4 sm:$0xff]   ;;  %v1815_v27 = vld [vmem:[%s2428_s0 + $0x20] ss:$8 sps:$4 sm:$0xff]   ;;  %v1817_v29 = vld [vmem:[%s2428_s0 + $0x34] ss:$8 sps:$4 sm:$0xff]  }
   0xa   :  { %535 = vmatpush1.bf16.msra.mxu0 %v1785_v3  ;;  %1768 = vmatpush1.bf16.msra.mxu1 %v1785_v3  ;;  %v1813_v26 = vld [vmem:[%s2428_s0 + $0x124] ss:$8 sps:$4 sm:$0xff]   ;;  %v1816_v28 = vld [vmem:[%s2428_s0 + $0x120] ss:$8 sps:$4 sm:$0xff]   ;;  %v1819_v30 = vld [vmem:[%s2428_s0 + $0x134] ss:$8 sps:$4 sm:$0xff]  }
   0xb   :  { %536 = vmatprep.subr.bf16.mxu0 %v1895_v0  ;;  %1753 = vmatprep.subr.bf16.mxu1 %v1895_v0  ;;  %v1821_v31 = vld [vmem:[%s2428_s0 + $0x30] ss:$8 sps:$4 sm:$0xff]   ;;  %v1823_v33 = vld [vmem:[%s2428_s0 + $0x44] ss:$8 sps:$4 sm:$0xff]   ;;  %v1827_v35 = vld [vmem:[%s2428_s0 + $0x40] ss:$8 sps:$4 sm:$0xff]  }
   0xc   :  { %v1822_v32 = vld [vmem:[%s2428_s0 + $0x130] ss:$8 sps:$4 sm:$0xff]   ;;  %v1825_v34 = vld [vmem:[%s2428_s0 + $0x144] ss:$8 sps:$4 sm:$0xff]   ;;  %v1828_v36 = vld [vmem:[%s2428_s0 + $0x140] ss:$8 sps:$4 sm:$0xff]  }
   0xd   :  { %v1829_v37 = vld [vmem:[%s2428_s0 + $0x54] ss:$8 sps:$4 sm:$0xff]   ;;  %v1833_v39 = vld [vmem:[%s2428_s0 + $0x50] ss:$8 sps:$4 sm:$0xff]   ;;  %v1835_v41 = vld [vmem:[%s2428_s0 + $0x64] ss:$8 sps:$4 sm:$0xff]  }
   0xe   :  { %537 = vmatpush1.bf16.msra.mxu0 %v1786_v4  ;;  %1769 = vmatpush1.bf16.msra.mxu1 %v1786_v4  ;;  %v1831_v38 = vld [vmem:[%s2428_s0 + $0x154] ss:$8 sps:$4 sm:$0xff]   ;;  %v1834_v40 = vld [vmem:[%s2428_s0 + $0x150] ss:$8 sps:$4 sm:$0xff]   ;;  %v1837_v42 = vld [vmem:[%s2428_s0 + $0x164] ss:$8 sps:$4 sm:$0xff]  }
   0xf   :  { %538 = vmatprep.subr.bf16.mxu0 %v1895_v0  ;;  %1754 = vmatprep.subr.bf16.mxu1 %v1895_v0  ;;  %v1839_v43 = vld [vmem:[%s2428_s0 + $0x60] ss:$8 sps:$4 sm:$0xff]   ;;  %v1841_v45 = vld [vmem:[%s2428_s0 + $0x74] ss:$8 sps:$4 sm:$0xff]   ;;  %v1845_v47 = vld [vmem:[%s2428_s0 + $0x70] ss:$8 sps:$4 sm:$0xff]  }
  0x10   :  { %v1840_v44 = vld [vmem:[%s2428_s0 + $0x160] ss:$8 sps:$4 sm:$0xff]   ;;  %v1843_v46 = vld [vmem:[%s2428_s0 + $0x174] ss:$8 sps:$4 sm:$0xff]   ;;  %v1846_v48 = vld [vmem:[%s2428_s0 + $0x170] ss:$8 sps:$4 sm:$0xff]  }
  0x11   :  { %v1847_v49 = vld [vmem:[%s2428_s0 + $0x84] ss:$8 sps:$4 sm:$0xff]   ;;  %v1851_v51 = vld [vmem:[%s2428_s0 + $0x80] ss:$8 sps:$4 sm:$0xff]   ;;  %v1853_v53 = vld [vmem:[%s2428_s0 + $0x94] ss:$8 sps:$4 sm:$0xff]  }
  0x12   :  { %539 = vmatpush1.bf16.msra.mxu0 %v1787_v5  ;;  %1770 = vmatpush1.bf16.msra.mxu1 %v1787_v5  ;;  %v1849_v50 = vld [vmem:[%s2428_s0 + $0x184] ss:$8 sps:$4 sm:$0xff]   ;;  %v1852_v52 = vld [vmem:[%s2428_s0 + $0x180] ss:$8 sps:$4 sm:$0xff]   ;;  %v1855_v54 = vld [vmem:[%s2428_s0 + $0x194] ss:$8 sps:$4 sm:$0xff]  }
  0x13   :  { %540 = vmatprep.subr.bf16.mxu0 %v1895_v0  ;;  %1755 = vmatprep.subr.bf16.mxu1 %v1895_v0  ;;  %v1857_v55 = vld [vmem:[%s2428_s0 + $0x90] ss:$8 sps:$4 sm:$0xff]   ;;  %v1859_v57 = vld [vmem:[%s2428_s0 + $0xa4] ss:$8 sps:$4 sm:$0xff]   ;;  %v1863_v59 = vld [vmem:[%s2428_s0 + $0xa0] ss:$8 sps:$4 sm:$0xff]  }
  0x14   :  { %v1858_v56 = vld [vmem:[%s2428_s0 + $0x190] ss:$8 sps:$4 sm:$0xff]   ;;  %v1861_v58 = vld [vmem:[%s2428_s0 + $0x1a4] ss:$8 sps:$4 sm:$0xff]   ;;  %v1864_v60 = vld [vmem:[%s2428_s0 + $0x1a0] ss:$8 sps:$4 sm:$0xff]  }
  0x15   :  { %v1865_v61 = vld [vmem:[%s2428_s0 + $0xb4] ss:$8 sps:$4 sm:$0xff]   ;;  %v1869_v63 = vld [vmem:[%s2428_s0 + $0xb0] ss:$8 sps:$4 sm:$0xff]   ;;  %v1871_v1 = vld [vmem:[%s2428_s0 + $0xc4] ss:$8 sps:$4 sm:$0xff]  }
  0x16   :  { %541 = vmatpush1.bf16.msra.mxu0 %v1788_v7  ;;  %1771 = vmatpush1.bf16.msra.mxu1 %v1788_v7  ;;  %v1867_v62 = vld [vmem:[%s2428_s0 + $0x1b4] ss:$8 sps:$4 sm:$0xff]   ;;  %v1873_v2 = vld [vmem:[%s2428_s0 + $0x1c4] ss:$8 sps:$4 sm:$0xff]   ;;  %v1875_v3 = vld [vmem:[%s2428_s0 + $0xc0] ss:$8 sps:$4 sm:$0xff]  }
  0x17   :  { %542 = vmatprep.subr.bf16.mxu0 %v1895_v0  ;;  %1756 = vmatprep.subr.bf16.mxu1 %v1895_v0  ;;  %v1876_v4 = vld [vmem:[%s2428_s0 + $0x1c0] ss:$8 sps:$4 sm:$0xff]   ;;  %v1877_v5 = vld [vmem:[%s2428_s0 + $0xd4] ss:$8 sps:$4 sm:$0xff]   ;;  %v1881_v7 = vld [vmem:[%s2428_s0 + $0xd0] ss:$8 sps:$4 sm:$0xff]  }
  0x18   :  { %v1879_v6 = vld [vmem:[%s2428_s0 + $0x1d4] ss:$8 sps:$4 sm:$0xff]   ;;  %v1882_v8 = vld [vmem:[%s2428_s0 + $0x1d0] ss:$8 sps:$4 sm:$0xff]  }
  0x1a   :  { %543 = vmatpush1.bf16.msra.mxu0 %v1789_v9  ;;  %1772 = vmatpush1.bf16.msra.mxu1 %v1789_v9  ;;  %v1883_v9 = vld [vmem:[%s2428_s0 + $0xe4] ss:$8 sps:$4 sm:$0xff]  }
  0x1b   :  { %544 = vmatprep.subr.bf16.mxu0 %v1895_v0  ;;  %1757 = vmatprep.subr.bf16.mxu1 %v1895_v0 }
  0x1e   :  { %545 = vmatpush1.bf16.msra.mxu0 %v1790_v10  ;;  %1773 = vmatpush1.bf16.msra.mxu1 %v1790_v10  ;;  %v1885_v10 = vld [vmem:[%s2428_s0 + $0x1e4] ss:$8 sps:$4 sm:$0xff]  }
  0x1f   :  { %546 = vmatprep.subr.bf16.mxu0 %v1895_v0  ;;  %1758 = vmatprep.subr.bf16.mxu1 %v1895_v0 }
  0x22   :  { %547 = vmatpush1.bf16.msra.mxu0 %v1791_v11  ;;  %1774 = vmatpush1.bf16.msra.mxu1 %v1791_v11  ;;  %v1887_v11 = vld [vmem:[%s2428_s0 + $0xe0] ss:$8 sps:$4 sm:$0xff]  }
  0x23   :  { %548 = vmatprep.subr.bf16.mxu0 %v1895_v0  ;;  %1759 = vmatprep.subr.bf16.mxu1 %v1895_v0 }
  0x26   :  { %549 = vmatpush1.bf16.msra.mxu0 %v1792_v12  ;;  %1775 = vmatpush1.bf16.msra.mxu1 %v1792_v12  ;;  %v1888_v12 = vld [vmem:[%s2428_s0 + $0x1e0] ss:$8 sps:$4 sm:$0xff]  }
  0x27   :  { %550 = vmatprep.subr.bf16.mxu0 %v1895_v0  ;;  %1760 = vmatprep.subr.bf16.mxu1 %v1895_v0 }
  0x2a   :  { %551 = vmatpush1.bf16.msra.mxu0 %v1793_v13  ;;  %1776 = vmatpush1.bf16.msra.mxu1 %v1793_v13  ;;  %v1889_v13 = vld [vmem:[%s2428_s0 + $0xf4] ss:$8 sps:$4 sm:$0xff]  }
  0x2b   :  { %552 = vmatprep.subr.bf16.mxu0 %v1895_v0  ;;  %1761 = vmatprep.subr.bf16.mxu1 %v1895_v0 }
  0x2e   :  { %553 = vmatpush1.bf16.msra.mxu0 %v1794_v14  ;;  %1777 = vmatpush1.bf16.msra.mxu1 %v1794_v14  ;;  %v1891_v14 = vld [vmem:[%s2428_s0 + $0x1f4] ss:$8 sps:$4 sm:$0xff]  }
  0x2f   :  { %554 = vmatprep.subr.bf16.mxu0 %v1895_v0  ;;  %1762 = vmatprep.subr.bf16.mxu1 %v1895_v0 }
  0x32   :  { %555 = vmatpush1.bf16.msra.mxu0 %v1795_v15  ;;  %1778 = vmatpush1.bf16.msra.mxu1 %v1795_v15  ;;  %v1893_v15 = vld [vmem:[%s2428_s0 + $0xf0] ss:$8 sps:$4 sm:$0xff]  }
  0x33   :  { %556 = vmatprep.subr.bf16.mxu0 %v1895_v0  ;;  %1763 = vmatprep.subr.bf16.mxu1 %v1895_v0 }
  0x36   :  { %557 = vmatpush1.bf16.msra.mxu0 %v1796_v16  ;;  %1779 = vmatpush1.bf16.msra.mxu1 %v1796_v16  ;;  %v1894_v16 = vld [vmem:[%s2428_s0 + $0x1f0] ss:$8 sps:$4 sm:$0xff]  }
  0x37   :  { %558 = vmatprep.subr.bf16.mxu0 %v1895_v0  ;;  %1764 = vmatprep.subr.bf16.mxu1 %v1895_v0 }
  0x3a   :  { %559 = vmatpush1.bf16.msra.mxu0 %v1797_v17  ;;  %1780 = vmatpush1.bf16.msra.mxu1 %v1797_v17  ;;  %v2196_v17 = vld [vmem:[%s2429_s2] ss:$0 sm:$0xff] }
  0x3b   :  { %560 = vmatprep.subr.bf16.mxu0 %v1895_v0  ;;  %1765 = vmatprep.subr.bf16.mxu1 %v1895_v0  ;;  %v1870_v0 = vld [vmem:[%s2428_s0 + $0x1b0] ss:$8 sps:$4 sm:$0xff]  }
  0x3e   :  { %561 = vmatpush1.bf16.msra.mxu0 %v1798_v18  ;;  %1781 = vmatpush1.bf16.msra.mxu1 %v1798_v18 }
  0x41   :  { %563 = vmatmul.mubr.bf16.vlgmr.msra.gmra.mrb[0].mxu0 %v1799_v19  ;;  %691 = vmatmul.mubr.bf16.vlgmr.msra.gmra.mrb[0].mxu1 %v1802_v20  ;;  %v2201_v19 = vld [vmem:[%s2430_s3] ss:$0 sm:$0xff] }
  0x42   :  { %570 = vmatprep.mubr.bf16.mxu0 %v1805_v21  ;;  %698 = vmatprep.mubr.bf16.mxu1 %v1807_v22 }
  0x49   :  { %571 = vmatmul.mubr.bf16.gmra.mrb[4].mxu0 %v1809_v23  ;;  %699 = vmatmul.mubr.bf16.gmra.mrb[4].mxu1 %v1810_v24 }
  0x4a   :  { %578 = vmatprep.mubr.bf16.mxu0 %v1811_v25  ;;  %706 = vmatprep.mubr.bf16.mxu1 %v1813_v26 }
  0x51   :  { %579 = vmatmul.mubr.bf16.gmra.mrb[8].mxu0 %v1815_v27  ;;  %707 = vmatmul.mubr.bf16.gmra.mrb[8].mxu1 %v1816_v28 }
  0x52   :  { %586 = vmatprep.mubr.bf16.mxu0 %v1817_v29  ;;  %714 = vmatprep.mubr.bf16.mxu1 %v1819_v30 }
  0x59   :  { %587 = vmatmul.mubr.bf16.gmra.mrb[12].mxu0 %v1821_v31  ;;  %715 = vmatmul.mubr.bf16.gmra.mrb[12].mxu1 %v1822_v32 }
  0x5a   :  { %594 = vmatprep.mubr.bf16.mxu0 %v1823_v33  ;;  %722 = vmatprep.mubr.bf16.mxu1 %v1825_v34 }
  0x61   :  { %595 = vmatmul.mubr.bf16.gmra.mrb[16].mxu0 %v1827_v35  ;;  %723 = vmatmul.mubr.bf16.gmra.mrb[16].mxu1 %v1828_v36 }
  0x62   :  { %602 = vmatprep.mubr.bf16.mxu0 %v1829_v37  ;;  %730 = vmatprep.mubr.bf16.mxu1 %v1831_v38 }
  0x69   :  { %603 = vmatmul.mubr.bf16.gmra.mrb[20].mxu0 %v1833_v39  ;;  %731 = vmatmul.mubr.bf16.gmra.mrb[20].mxu1 %v1834_v40 }
  0x6a   :  { %610 = vmatprep.mubr.bf16.mxu0 %v1835_v41  ;;  %738 = vmatprep.mubr.bf16.mxu1 %v1837_v42 }
  0x71   :  { %611 = vmatmul.mubr.bf16.gmra.mrb[24].mxu0 %v1839_v43  ;;  %739 = vmatmul.mubr.bf16.gmra.mrb[24].mxu1 %v1840_v44 }
  0x72   :  { %618 = vmatprep.mubr.bf16.mxu0 %v1841_v45  ;;  %746 = vmatprep.mubr.bf16.mxu1 %v1843_v46 }
  0x79   :  { %619 = vmatmul.mubr.bf16.gmra.mrb[28].mxu0 %v1845_v47  ;;  %747 = vmatmul.mubr.bf16.gmra.mrb[28].mxu1 %v1846_v48 }
  0x7a   :  { %626 = vmatprep.mubr.bf16.mxu0 %v1847_v49  ;;  %754 = vmatprep.mubr.bf16.mxu1 %v1849_v50 }
  0x81   :  { %627 = vmatmul.mubr.bf16.gmra.mrb[32].mxu0 %v1851_v51  ;;  %755 = vmatmul.mubr.bf16.gmra.mrb[32].mxu1 %v1852_v52 }
  0x82   :  { %634 = vmatprep.mubr.bf16.mxu0 %v1853_v53  ;;  %762 = vmatprep.mubr.bf16.mxu1 %v1855_v54 }
  0x89   :  { %635 = vmatmul.mubr.bf16.gmra.mrb[36].mxu0 %v1857_v55  ;;  %763 = vmatmul.mubr.bf16.gmra.mrb[36].mxu1 %v1858_v56 }
  0x8a   :  { %642 = vmatprep.mubr.bf16.mxu0 %v1859_v57  ;;  %770 = vmatprep.mubr.bf16.mxu1 %v1861_v58 }
  0x91   :  { %643 = vmatmul.mubr.bf16.gmra.mrb[40].mxu0 %v1863_v59  ;;  %771 = vmatmul.mubr.bf16.gmra.mrb[40].mxu1 %v1864_v60 }
  0x92   :  { %650 = vmatprep.mubr.bf16.mxu0 %v1865_v61  ;;  %778 = vmatprep.mubr.bf16.mxu1 %v1867_v62 }
  0x99   :  { %651 = vmatmul.mubr.bf16.gmra.mrb[44].mxu0 %v1869_v63  ;;  %779 = vmatmul.mubr.bf16.gmra.mrb[44].mxu1 %v1870_v0 }
  0x9a   :  { %658 = vmatprep.mubr.bf16.mxu0 %v1871_v1  ;;  %786 = vmatprep.mubr.bf16.mxu1 %v1873_v2 }
  0xa1   :  { %659 = vmatmul.mubr.bf16.gmra.mrb[48].mxu0 %v1875_v3  ;;  %787 = vmatmul.mubr.bf16.gmra.mrb[48].mxu1 %v1876_v4 }
  0xa2   :  { %666 = vmatprep.mubr.bf16.mxu0 %v1877_v5  ;;  %794 = vmatprep.mubr.bf16.mxu1 %v1879_v6 }
  0xa9   :  { %667 = vmatmul.mubr.bf16.gmra.mrb[52].mxu0 %v1881_v7  ;;  %795 = vmatmul.mubr.bf16.gmra.mrb[52].mxu1 %v1882_v8 }
  0xaa   :  { %674 = vmatprep.mubr.bf16.mxu0 %v1883_v9  ;;  %802 = vmatprep.mubr.bf16.mxu1 %v1885_v10 }
  0xb1   :  { %675 = vmatmul.mubr.bf16.gmra.mrb[56].mxu0 %v1887_v11  ;;  %803 = vmatmul.mubr.bf16.gmra.mrb[56].mxu1 %v1888_v12 }
  0xb2   :  { %682 = vmatprep.mubr.bf16.mxu0 %v1889_v13  ;;  %810 = vmatprep.mubr.bf16.mxu1 %v1891_v14 }
  0xb9   :  { %683 = vmatmul.mubr.bf16.gmra.mrb[60].mxu0 %v1893_v15  ;;  %811 = vmatmul.mubr.bf16.gmra.mrb[60].mxu1 %v1894_v16 }
 0x114   :  { %v564_v18 = vpop.f32.mrb[0].mxu0  ;;  %v692_v20 = vpop.f32.mrb[0].mxu1 }
 0x115   :  { %v826_v21 = vmul.f32 %v2196_v17, %v564_v18  ;;  %v858_v22 = vmul.f32 %v2196_v17, %v692_v20  ;;  %v566_v23 = vpop.f32.mrb[1].mxu0  ;;  %v694_v24 = vpop.f32.mrb[1].mxu1 }
 0x116   :  { %v567_v25 = vpop.f32.mrb[2].mxu0  ;;  %v695_v26 = vpop.f32.mrb[2].mxu1 }
 0x117   :  { %v897_v27 = vadd.f32 %v2201_v19, %v826_v21  ;;  %v929_v28 = vadd.f32 %v2201_v19, %v858_v22  ;;  %v827_v29 = vmul.f32 %v2196_v17, %v567_v25  ;;  %v859_v30 = vmul.f32 %v2196_v17, %v695_v26  ;;  %v569_v31 = vpop.f32.mrb[3].mxu0  ;;  %v697_v32 = vpop.f32.mrb[3].mxu1 }
 0x119   :  { %v898_v33 = vadd.f32 %v2201_v19, %v827_v29  ;;  %v930_v34 = vadd.f32 %v2201_v19, %v859_v30  ;;  %v961_v35 = vmax.f32 %v897_v27, 0.0  ;;  %v993_v36 = vmax.f32 %v929_v28, 0.0 }
 0x11b   :  { %v962_v37 = vmax.f32 %v898_v33, 0.0  ;;  %v994_v38 = vmax.f32 %v930_v34, 0.0 }
 0x11c   :  { %v572_v39 = vpop.f32.mrb[4].mxu0  ;;  %v700_v40 = vpop.f32.mrb[4].mxu1 }
 0x11d   :  { %v1562_v41 = vpack.c.bf16 %v962_v37, %v961_v35  ;;  %v1642_v42 = vpack.c.bf16 %v994_v38, %v993_v36  ;;  %v828_v43 = vmul.f32 %v2196_v17, %v572_v39  ;;  %v860_v44 = vmul.f32 %v2196_v17, %v700_v40  ;;  %v574_v45 = vpop.f32.mrb[5].mxu0  ;;  %v702_v46 = vpop.f32.mrb[5].mxu1 }
 0x11e   :  { %v575_v47 = vpop.f32.mrb[6].mxu0  ;;  %v703_v48 = vpop.f32.mrb[6].mxu1 }
 0x11f   :  { %1563 = vst [vmem:[%s2431_s4] sm:$0xff] %v1562_v41   ;;  %1734 = vst [vmem:[%s2431_s4 + $0x80] sm:$0xff] %v1642_v42   ;;  %v899_v49 = vadd.f32 %v2201_v19, %v828_v43  ;;  %v931_v50 = vadd.f32 %v2201_v19, %v860_v44  ;;  %v829_v51 = vmul.f32 %v2196_v17, %v575_v47  ;;  %v577_v53 = vpop.f32.mrb[7].mxu0  ;;  %v705_v54 = vpop.f32.mrb[7].mxu1 }
 0x120   :  { %v861_v52 = vmul.f32 %v2196_v17, %v703_v48 }
 0x121   :  { %v900_v55 = vadd.f32 %v2201_v19, %v829_v51  ;;  %v963_v57 = vmax.f32 %v899_v49, 0.0  ;;  %v995_v58 = vmax.f32 %v931_v50, 0.0 }
 0x122   :  { %v932_v56 = vadd.f32 %v2201_v19, %v861_v52 }
 0x123   :  { %v964_v59 = vmax.f32 %v900_v55, 0.0 }
 0x124   :  { %v996_v60 = vmax.f32 %v932_v56, 0.0  ;;  %v580_v61 = vpop.f32.mrb[8].mxu0  ;;  %v708_v62 = vpop.f32.mrb[8].mxu1 }
 0x125   :  { %v1567_v63 = vpack.c.bf16 %v964_v59, %v963_v57  ;;  %v830_v1 = vmul.f32 %v2196_v17, %v580_v61  ;;  %v862_v2 = vmul.f32 %v2196_v17, %v708_v62  ;;  %v582_v3 = vpop.f32.mrb[9].mxu0  ;;  %v710_v4 = vpop.f32.mrb[9].mxu1 }
 0x126   :  { %v1647_v0 = vpack.c.bf16 %v996_v60, %v995_v58  ;;  %v583_v5 = vpop.f32.mrb[10].mxu0  ;;  %v711_v6 = vpop.f32.mrb[10].mxu1 }
 0x127   :  { %1719 = vst [vmem:[%s2431_s4 + $0x8] sm:$0xff] %v1567_v63   ;;  %v901_v7 = vadd.f32 %v2201_v19, %v830_v1  ;;  %v933_v8 = vadd.f32 %v2201_v19, %v862_v2  ;;  %v831_v9 = vmul.f32 %v2196_v17, %v583_v5  ;;  %v863_v10 = vmul.f32 %v2196_v17, %v711_v6  ;;  %v585_v11 = vpop.f32.mrb[11].mxu0  ;;  %v713_v12 = vpop.f32.mrb[11].mxu1 }
 0x128   :  { %1735 = vst [vmem:[%s2431_s4 + $0x88] sm:$0xff] %v1647_v0  }
 0x129   :  { %v902_v13 = vadd.f32 %v2201_v19, %v831_v9  ;;  %v934_v14 = vadd.f32 %v2201_v19, %v863_v10  ;;  %v965_v15 = vmax.f32 %v901_v7, 0.0  ;;  %v997_v16 = vmax.f32 %v933_v8, 0.0 }
 0x12b   :  { %v966_v18 = vmax.f32 %v902_v13, 0.0  ;;  %v998_v20 = vmax.f32 %v934_v14, 0.0 }
 0x12c   :  { %v588_v21 = vpop.f32.mrb[12].mxu0  ;;  %v716_v22 = vpop.f32.mrb[12].mxu1 }
 0x12d   :  { %v1572_v23 = vpack.c.bf16 %v966_v18, %v965_v15  ;;  %v1652_v24 = vpack.c.bf16 %v998_v20, %v997_v16  ;;  %v832_v25 = vmul.f32 %v2196_v17, %v588_v21  ;;  %v864_v26 = vmul.f32 %v2196_v17, %v716_v22  ;;  %v590_v27 = vpop.f32.mrb[13].mxu0  ;;  %v718_v28 = vpop.f32.mrb[13].mxu1 }
 0x12e   :  { %v591_v29 = vpop.f32.mrb[14].mxu0  ;;  %v719_v30 = vpop.f32.mrb[14].mxu1 }
 0x12f   :  { %1720 = vst [vmem:[%s2431_s4 + $0x10] sm:$0xff] %v1572_v23   ;;  %1736 = vst [vmem:[%s2431_s4 + $0x90] sm:$0xff] %v1652_v24   ;;  %v903_v31 = vadd.f32 %v2201_v19, %v832_v25  ;;  %v935_v32 = vadd.f32 %v2201_v19, %v864_v26  ;;  %v833_v33 = vmul.f32 %v2196_v17, %v591_v29  ;;  %v593_v35 = vpop.f32.mrb[15].mxu0  ;;  %v721_v36 = vpop.f32.mrb[15].mxu1 }
 0x130   :  { %v865_v34 = vmul.f32 %v2196_v17, %v719_v30 }
 0x131   :  { %v904_v37 = vadd.f32 %v2201_v19, %v833_v33  ;;  %v967_v39 = vmax.f32 %v903_v31, 0.0  ;;  %v999_v40 = vmax.f32 %v935_v32, 0.0 }
 0x132   :  { %v936_v38 = vadd.f32 %v2201_v19, %v865_v34 }
 0x133   :  { %v968_v41 = vmax.f32 %v904_v37, 0.0 }
 0x134   :  { %v1000_v42 = vmax.f32 %v936_v38, 0.0  ;;  %v596_v43 = vpop.f32.mrb[16].mxu0  ;;  %v724_v44 = vpop.f32.mrb[16].mxu1 }
 0x135   :  { %v1577_v45 = vpack.c.bf16 %v968_v41, %v967_v39  ;;  %v834_v47 = vmul.f32 %v2196_v17, %v596_v43  ;;  %v866_v48 = vmul.f32 %v2196_v17, %v724_v44  ;;  %v598_v49 = vpop.f32.mrb[17].mxu0  ;;  %v726_v50 = vpop.f32.mrb[17].mxu1 }
 0x136   :  { %v1657_v46 = vpack.c.bf16 %v1000_v42, %v999_v40  ;;  %v599_v51 = vpop.f32.mrb[18].mxu0  ;;  %v727_v52 = vpop.f32.mrb[18].mxu1 }
 0x137   :  { %1721 = vst [vmem:[%s2431_s4 + $0x18] sm:$0xff] %v1577_v45   ;;  %v905_v53 = vadd.f32 %v2201_v19, %v834_v47  ;;  %v937_v54 = vadd.f32 %v2201_v19, %v866_v48  ;;  %v835_v55 = vmul.f32 %v2196_v17, %v599_v51  ;;  %v867_v56 = vmul.f32 %v2196_v17, %v727_v52  ;;  %v601_v57 = vpop.f32.mrb[19].mxu0  ;;  %v729_v58 = vpop.f32.mrb[19].mxu1 }
 0x138   :  { %1737 = vst [vmem:[%s2431_s4 + $0x98] sm:$0xff] %v1657_v46  }
 0x139   :  { %v906_v59 = vadd.f32 %v2201_v19, %v835_v55  ;;  %v938_v60 = vadd.f32 %v2201_v19, %v867_v56  ;;  %v969_v61 = vmax.f32 %v905_v53, 0.0  ;;  %v1001_v62 = vmax.f32 %v937_v54, 0.0 }
 0x13b   :  { %v970_v63 = vmax.f32 %v906_v59, 0.0  ;;  %v1002_v0 = vmax.f32 %v938_v60, 0.0 }
 0x13c   :  { %v604_v1 = vpop.f32.mrb[20].mxu0  ;;  %v732_v2 = vpop.f32.mrb[20].mxu1 }
 0x13d   :  { %v1582_v3 = vpack.c.bf16 %v970_v63, %v969_v61  ;;  %v1662_v4 = vpack.c.bf16 %v1002_v0, %v1001_v62  ;;  %v836_v5 = vmul.f32 %v2196_v17, %v604_v1  ;;  %v868_v6 = vmul.f32 %v2196_v17, %v732_v2  ;;  %v606_v7 = vpop.f32.mrb[21].mxu0  ;;  %v734_v8 = vpop.f32.mrb[21].mxu1 }
 0x13e   :  { %v607_v9 = vpop.f32.mrb[22].mxu0  ;;  %v735_v10 = vpop.f32.mrb[22].mxu1 }
 0x13f   :  { %1722 = vst [vmem:[%s2431_s4 + $0x20] sm:$0xff] %v1582_v3   ;;  %1738 = vst [vmem:[%s2431_s4 + $0xa0] sm:$0xff] %v1662_v4   ;;  %v907_v11 = vadd.f32 %v2201_v19, %v836_v5  ;;  %v939_v12 = vadd.f32 %v2201_v19, %v868_v6  ;;  %v837_v13 = vmul.f32 %v2196_v17, %v607_v9  ;;  %v609_v15 = vpop.f32.mrb[23].mxu0  ;;  %v737_v16 = vpop.f32.mrb[23].mxu1 }
 0x140   :  { %v869_v14 = vmul.f32 %v2196_v17, %v735_v10 }
 0x141   :  { %v908_v18 = vadd.f32 %v2201_v19, %v837_v13  ;;  %v971_v21 = vmax.f32 %v907_v11, 0.0  ;;  %v1003_v22 = vmax.f32 %v939_v12, 0.0 }
 0x142   :  { %v940_v20 = vadd.f32 %v2201_v19, %v869_v14 }
 0x143   :  { %v972_v23 = vmax.f32 %v908_v18, 0.0 }
 0x144   :  { %v1004_v24 = vmax.f32 %v940_v20, 0.0  ;;  %v612_v25 = vpop.f32.mrb[24].mxu0  ;;  %v740_v26 = vpop.f32.mrb[24].mxu1 }
 0x145   :  { %v1587_v27 = vpack.c.bf16 %v972_v23, %v971_v21  ;;  %v838_v29 = vmul.f32 %v2196_v17, %v612_v25  ;;  %v870_v30 = vmul.f32 %v2196_v17, %v740_v26  ;;  %v614_v31 = vpop.f32.mrb[25].mxu0  ;;  %v742_v32 = vpop.f32.mrb[25].mxu1 }
 0x146   :  { %v1667_v28 = vpack.c.bf16 %v1004_v24, %v1003_v22  ;;  %v615_v33 = vpop.f32.mrb[26].mxu0  ;;  %v743_v34 = vpop.f32.mrb[26].mxu1 }
 0x147   :  { %1723 = vst [vmem:[%s2431_s4 + $0x28] sm:$0xff] %v1587_v27   ;;  %v909_v35 = vadd.f32 %v2201_v19, %v838_v29  ;;  %v941_v36 = vadd.f32 %v2201_v19, %v870_v30  ;;  %v839_v37 = vmul.f32 %v2196_v17, %v615_v33  ;;  %v871_v38 = vmul.f32 %v2196_v17, %v743_v34  ;;  %v617_v39 = vpop.f32.mrb[27].mxu0  ;;  %v745_v40 = vpop.f32.mrb[27].mxu1 }
 0x148   :  { %1739 = vst [vmem:[%s2431_s4 + $0xa8] sm:$0xff] %v1667_v28  }
 0x149   :  { %v910_v41 = vadd.f32 %v2201_v19, %v839_v37  ;;  %v942_v42 = vadd.f32 %v2201_v19, %v871_v38  ;;  %v973_v43 = vmax.f32 %v909_v35, 0.0  ;;  %v1005_v44 = vmax.f32 %v941_v36, 0.0 }
 0x14b   :  { %v974_v45 = vmax.f32 %v910_v41, 0.0  ;;  %v1006_v46 = vmax.f32 %v942_v42, 0.0 }
 0x14c   :  { %v620_v47 = vpop.f32.mrb[28].mxu0  ;;  %v748_v48 = vpop.f32.mrb[28].mxu1 }
 0x14d   :  { %v1592_v49 = vpack.c.bf16 %v974_v45, %v973_v43  ;;  %v1672_v50 = vpack.c.bf16 %v1006_v46, %v1005_v44  ;;  %v840_v51 = vmul.f32 %v2196_v17, %v620_v47  ;;  %v872_v52 = vmul.f32 %v2196_v17, %v748_v48  ;;  %v622_v53 = vpop.f32.mrb[29].mxu0  ;;  %v750_v54 = vpop.f32.mrb[29].mxu1 }
 0x14e   :  { %v623_v55 = vpop.f32.mrb[30].mxu0  ;;  %v751_v56 = vpop.f32.mrb[30].mxu1 }
 0x14f   :  { %1724 = vst [vmem:[%s2431_s4 + $0x30] sm:$0xff] %v1592_v49   ;;  %1740 = vst [vmem:[%s2431_s4 + $0xb0] sm:$0xff] %v1672_v50   ;;  %v911_v57 = vadd.f32 %v2201_v19, %v840_v51  ;;  %v943_v58 = vadd.f32 %v2201_v19, %v872_v52  ;;  %v841_v59 = vmul.f32 %v2196_v17, %v623_v55  ;;  %v625_v61 = vpop.f32.mrb[31].mxu0  ;;  %v753_v62 = vpop.f32.mrb[31].mxu1 }
 0x150   :  { %v873_v60 = vmul.f32 %v2196_v17, %v751_v56 }
 0x151   :  { %v912_v63 = vadd.f32 %v2201_v19, %v841_v59  ;;  %v975_v1 = vmax.f32 %v911_v57, 0.0  ;;  %v1007_v2 = vmax.f32 %v943_v58, 0.0 }
 0x152   :  { %v944_v0 = vadd.f32 %v2201_v19, %v873_v60 }
 0x153   :  { %v976_v3 = vmax.f32 %v912_v63, 0.0 }
 0x154   :  { %v1008_v4 = vmax.f32 %v944_v0, 0.0  ;;  %v628_v5 = vpop.f32.mrb[32].mxu0  ;;  %v756_v6 = vpop.f32.mrb[32].mxu1 }
 0x155   :  { %v1597_v7 = vpack.c.bf16 %v976_v3, %v975_v1  ;;  %v842_v9 = vmul.f32 %v2196_v17, %v628_v5  ;;  %v874_v10 = vmul.f32 %v2196_v17, %v756_v6  ;;  %v630_v11 = vpop.f32.mrb[33].mxu0  ;;  %v758_v12 = vpop.f32.mrb[33].mxu1 }
 0x156   :  { %v1677_v8 = vpack.c.bf16 %v1008_v4, %v1007_v2  ;;  %v631_v13 = vpop.f32.mrb[34].mxu0  ;;  %v759_v14 = vpop.f32.mrb[34].mxu1 }
 0x157   :  { %1725 = vst [vmem:[%s2431_s4 + $0x38] sm:$0xff] %v1597_v7   ;;  %v913_v15 = vadd.f32 %v2201_v19, %v842_v9  ;;  %v945_v16 = vadd.f32 %v2201_v19, %v874_v10  ;;  %v843_v18 = vmul.f32 %v2196_v17, %v631_v13  ;;  %v875_v20 = vmul.f32 %v2196_v17, %v759_v14  ;;  %v633_v21 = vpop.f32.mrb[35].mxu0  ;;  %v761_v22 = vpop.f32.mrb[35].mxu1 }
 0x158   :  { %1741 = vst [vmem:[%s2431_s4 + $0xb8] sm:$0xff] %v1677_v8  }
 0x159   :  { %v914_v23 = vadd.f32 %v2201_v19, %v843_v18  ;;  %v946_v24 = vadd.f32 %v2201_v19, %v875_v20  ;;  %v977_v25 = vmax.f32 %v913_v15, 0.0  ;;  %v1009_v26 = vmax.f32 %v945_v16, 0.0 }
 0x15b   :  { %v978_v27 = vmax.f32 %v914_v23, 0.0  ;;  %v1010_v28 = vmax.f32 %v946_v24, 0.0 }
 0x15c   :  { %v636_v29 = vpop.f32.mrb[36].mxu0  ;;  %v764_v30 = vpop.f32.mrb[36].mxu1 }
 0x15d   :  { %v1602_v31 = vpack.c.bf16 %v978_v27, %v977_v25  ;;  %v1682_v32 = vpack.c.bf16 %v1010_v28, %v1009_v26  ;;  %v844_v33 = vmul.f32 %v2196_v17, %v636_v29  ;;  %v876_v34 = vmul.f32 %v2196_v17, %v764_v30  ;;  %v638_v35 = vpop.f32.mrb[37].mxu0  ;;  %v766_v36 = vpop.f32.mrb[37].mxu1 }
 0x15e   :  { %v639_v37 = vpop.f32.mrb[38].mxu0  ;;  %v767_v38 = vpop.f32.mrb[38].mxu1 }
 0x15f   :  { %1726 = vst [vmem:[%s2431_s4 + $0x40] sm:$0xff] %v1602_v31   ;;  %1742 = vst [vmem:[%s2431_s4 + $0xc0] sm:$0xff] %v1682_v32   ;;  %v915_v39 = vadd.f32 %v2201_v19, %v844_v33  ;;  %v947_v40 = vadd.f32 %v2201_v19, %v876_v34  ;;  %v845_v41 = vmul.f32 %v2196_v17, %v639_v37  ;;  %v641_v43 = vpop.f32.mrb[39].mxu0  ;;  %v769_v44 = vpop.f32.mrb[39].mxu1 }
 0x160   :  { %v877_v42 = vmul.f32 %v2196_v17, %v767_v38 }
 0x161   :  { %v916_v45 = vadd.f32 %v2201_v19, %v845_v41  ;;  %v979_v47 = vmax.f32 %v915_v39, 0.0  ;;  %v1011_v48 = vmax.f32 %v947_v40, 0.0 }
 0x162   :  { %v948_v46 = vadd.f32 %v2201_v19, %v877_v42 }
 0x163   :  { %v980_v49 = vmax.f32 %v916_v45, 0.0 }
 0x164   :  { %v1012_v50 = vmax.f32 %v948_v46, 0.0  ;;  %v644_v51 = vpop.f32.mrb[40].mxu0  ;;  %v772_v52 = vpop.f32.mrb[40].mxu1 }
 0x165   :  { %v1607_v53 = vpack.c.bf16 %v980_v49, %v979_v47  ;;  %v846_v55 = vmul.f32 %v2196_v17, %v644_v51  ;;  %v878_v56 = vmul.f32 %v2196_v17, %v772_v52  ;;  %v646_v57 = vpop.f32.mrb[41].mxu0  ;;  %v774_v58 = vpop.f32.mrb[41].mxu1 }
 0x166   :  { %v1687_v54 = vpack.c.bf16 %v1012_v50, %v1011_v48  ;;  %v647_v59 = vpop.f32.mrb[42].mxu0  ;;  %v775_v60 = vpop.f32.mrb[42].mxu1 }
 0x167   :  { %1727 = vst [vmem:[%s2431_s4 + $0x48] sm:$0xff] %v1607_v53   ;;  %v917_v61 = vadd.f32 %v2201_v19, %v846_v55  ;;  %v949_v62 = vadd.f32 %v2201_v19, %v878_v56  ;;  %v847_v63 = vmul.f32 %v2196_v17, %v647_v59  ;;  %v879_v0 = vmul.f32 %v2196_v17, %v775_v60  ;;  %v649_v1 = vpop.f32.mrb[43].mxu0  ;;  %v777_v2 = vpop.f32.mrb[43].mxu1 }
 0x168   :  { %1743 = vst [vmem:[%s2431_s4 + $0xc8] sm:$0xff] %v1687_v54  }
 0x169   :  { %v918_v3 = vadd.f32 %v2201_v19, %v847_v63  ;;  %v950_v4 = vadd.f32 %v2201_v19, %v879_v0  ;;  %v981_v5 = vmax.f32 %v917_v61, 0.0  ;;  %v1013_v6 = vmax.f32 %v949_v62, 0.0 }
 0x16b   :  { %v982_v7 = vmax.f32 %v918_v3, 0.0  ;;  %v1014_v8 = vmax.f32 %v950_v4, 0.0 }
 0x16c   :  { %v652_v9 = vpop.f32.mrb[44].mxu0  ;;  %v780_v10 = vpop.f32.mrb[44].mxu1 }
 0x16d   :  { %v1612_v11 = vpack.c.bf16 %v982_v7, %v981_v5  ;;  %v1692_v12 = vpack.c.bf16 %v1014_v8, %v1013_v6  ;;  %v848_v13 = vmul.f32 %v2196_v17, %v652_v9  ;;  %v880_v14 = vmul.f32 %v2196_v17, %v780_v10  ;;  %v654_v15 = vpop.f32.mrb[45].mxu0  ;;  %v782_v16 = vpop.f32.mrb[45].mxu1 }
 0x16e   :  { %v655_v18 = vpop.f32.mrb[46].mxu0  ;;  %v783_v20 = vpop.f32.mrb[46].mxu1 }
 0x16f   :  { %1728 = vst [vmem:[%s2431_s4 + $0x50] sm:$0xff] %v1612_v11   ;;  %1744 = vst [vmem:[%s2431_s4 + $0xd0] sm:$0xff] %v1692_v12   ;;  %v919_v21 = vadd.f32 %v2201_v19, %v848_v13  ;;  %v951_v22 = vadd.f32 %v2201_v19, %v880_v14  ;;  %v849_v23 = vmul.f32 %v2196_v17, %v655_v18  ;;  %v657_v25 = vpop.f32.mrb[47].mxu0  ;;  %v785_v26 = vpop.f32.mrb[47].mxu1 }
 0x170   :  { %v881_v24 = vmul.f32 %v2196_v17, %v783_v20 }
 0x171   :  { %v920_v27 = vadd.f32 %v2201_v19, %v849_v23  ;;  %v983_v29 = vmax.f32 %v919_v21, 0.0  ;;  %v1015_v30 = vmax.f32 %v951_v22, 0.0 }
 0x172   :  { %v952_v28 = vadd.f32 %v2201_v19, %v881_v24 }
 0x173   :  { %v984_v31 = vmax.f32 %v920_v27, 0.0 }
 0x174   :  { %v1016_v32 = vmax.f32 %v952_v28, 0.0  ;;  %v660_v33 = vpop.f32.mrb[48].mxu0  ;;  %v788_v34 = vpop.f32.mrb[48].mxu1 }
 0x175   :  { %v1617_v35 = vpack.c.bf16 %v984_v31, %v983_v29  ;;  %v850_v37 = vmul.f32 %v2196_v17, %v660_v33  ;;  %v882_v38 = vmul.f32 %v2196_v17, %v788_v34  ;;  %v662_v39 = vpop.f32.mrb[49].mxu0  ;;  %v790_v40 = vpop.f32.mrb[49].mxu1 }
 0x176   :  { %v1697_v36 = vpack.c.bf16 %v1016_v32, %v1015_v30  ;;  %v663_v41 = vpop.f32.mrb[50].mxu0  ;;  %v791_v42 = vpop.f32.mrb[50].mxu1 }
 0x177   :  { %1729 = vst [vmem:[%s2431_s4 + $0x58] sm:$0xff] %v1617_v35   ;;  %v921_v43 = vadd.f32 %v2201_v19, %v850_v37  ;;  %v953_v44 = vadd.f32 %v2201_v19, %v882_v38  ;;  %v851_v45 = vmul.f32 %v2196_v17, %v663_v41  ;;  %v883_v46 = vmul.f32 %v2196_v17, %v791_v42  ;;  %v665_v47 = vpop.f32.mrb[51].mxu0  ;;  %v793_v48 = vpop.f32.mrb[51].mxu1 }
 0x178   :  { %1745 = vst [vmem:[%s2431_s4 + $0xd8] sm:$0xff] %v1697_v36  }
 0x179   :  { %v922_v49 = vadd.f32 %v2201_v19, %v851_v45  ;;  %v954_v50 = vadd.f32 %v2201_v19, %v883_v46  ;;  %v985_v51 = vmax.f32 %v921_v43, 0.0  ;;  %v1017_v52 = vmax.f32 %v953_v44, 0.0 }
 0x17b   :  { %v986_v53 = vmax.f32 %v922_v49, 0.0  ;;  %v1018_v54 = vmax.f32 %v954_v50, 0.0 }
 0x17c   :  { %v668_v55 = vpop.f32.mrb[52].mxu0  ;;  %v796_v56 = vpop.f32.mrb[52].mxu1 }
 0x17d   :  { %v1622_v57 = vpack.c.bf16 %v986_v53, %v985_v51  ;;  %v1702_v58 = vpack.c.bf16 %v1018_v54, %v1017_v52  ;;  %v852_v59 = vmul.f32 %v2196_v17, %v668_v55  ;;  %v884_v60 = vmul.f32 %v2196_v17, %v796_v56  ;;  %v670_v61 = vpop.f32.mrb[53].mxu0  ;;  %v798_v62 = vpop.f32.mrb[53].mxu1 }
 0x17e   :  { %v671_v63 = vpop.f32.mrb[54].mxu0  ;;  %v799_v0 = vpop.f32.mrb[54].mxu1 }
 0x17f   :  { %1730 = vst [vmem:[%s2431_s4 + $0x60] sm:$0xff] %v1622_v57   ;;  %1746 = vst [vmem:[%s2431_s4 + $0xe0] sm:$0xff] %v1702_v58   ;;  %v923_v1 = vadd.f32 %v2201_v19, %v852_v59  ;;  %v955_v2 = vadd.f32 %v2201_v19, %v884_v60  ;;  %v853_v3 = vmul.f32 %v2196_v17, %v671_v63  ;;  %v673_v5 = vpop.f32.mrb[55].mxu0  ;;  %v801_v6 = vpop.f32.mrb[55].mxu1 }
 0x180   :  { %v885_v4 = vmul.f32 %v2196_v17, %v799_v0 }
 0x181   :  { %v924_v7 = vadd.f32 %v2201_v19, %v853_v3  ;;  %v987_v9 = vmax.f32 %v923_v1, 0.0  ;;  %v1019_v10 = vmax.f32 %v955_v2, 0.0 }
 0x182   :  { %v956_v8 = vadd.f32 %v2201_v19, %v885_v4 }
 0x183   :  { %v988_v11 = vmax.f32 %v924_v7, 0.0 }
 0x184   :  { %v1020_v12 = vmax.f32 %v956_v8, 0.0  ;;  %v676_v13 = vpop.f32.mrb[56].mxu0  ;;  %v804_v14 = vpop.f32.mrb[56].mxu1 }
 0x185   :  { %v1627_v15 = vpack.c.bf16 %v988_v11, %v987_v9  ;;  %v854_v18 = vmul.f32 %v2196_v17, %v676_v13  ;;  %v886_v20 = vmul.f32 %v2196_v17, %v804_v14  ;;  %v678_v21 = vpop.f32.mrb[57].mxu0  ;;  %v806_v22 = vpop.f32.mrb[57].mxu1 }
 0x186   :  { %v1707_v16 = vpack.c.bf16 %v1020_v12, %v1019_v10  ;;  %v679_v23 = vpop.f32.mrb[58].mxu0  ;;  %v807_v24 = vpop.f32.mrb[58].mxu1 }
 0x187   :  { %1731 = vst [vmem:[%s2431_s4 + $0x68] sm:$0xff] %v1627_v15   ;;  %v925_v25 = vadd.f32 %v2201_v19, %v854_v18  ;;  %v957_v26 = vadd.f32 %v2201_v19, %v886_v20  ;;  %v855_v27 = vmul.f32 %v2196_v17, %v679_v23  ;;  %v887_v28 = vmul.f32 %v2196_v17, %v807_v24  ;;  %v681_v29 = vpop.f32.mrb[59].mxu0  ;;  %v809_v30 = vpop.f32.mrb[59].mxu1 }
 0x188   :  { %1747 = vst [vmem:[%s2431_s4 + $0xe8] sm:$0xff] %v1707_v16  }
 0x189   :  { %v926_v31 = vadd.f32 %v2201_v19, %v855_v27  ;;  %v958_v32 = vadd.f32 %v2201_v19, %v887_v28  ;;  %v989_v33 = vmax.f32 %v925_v25, 0.0  ;;  %v1021_v34 = vmax.f32 %v957_v26, 0.0 }
 0x18b   :  { %v990_v35 = vmax.f32 %v926_v31, 0.0  ;;  %v1022_v36 = vmax.f32 %v958_v32, 0.0 }
 0x18c   :  { %v684_v37 = vpop.f32.mrb[60].mxu0  ;;  %v812_v38 = vpop.f32.mrb[60].mxu1 }
 0x18d   :  { %v1632_v39 = vpack.c.bf16 %v990_v35, %v989_v33  ;;  %v1712_v40 = vpack.c.bf16 %v1022_v36, %v1021_v34  ;;  %v856_v41 = vmul.f32 %v2196_v17, %v684_v37  ;;  %v888_v42 = vmul.f32 %v2196_v17, %v812_v38  ;;  %v686_v43 = vpop.f32.mrb[61].mxu0  ;;  %v814_v44 = vpop.f32.mrb[61].mxu1 }
 0x18e   :  { %v687_v45 = vpop.f32.mrb[62].mxu0  ;;  %v815_v46 = vpop.f32.mrb[62].mxu1 }
 0x18f   :  { %1732 = vst [vmem:[%s2431_s4 + $0x70] sm:$0xff] %v1632_v39   ;;  %1748 = vst [vmem:[%s2431_s4 + $0xf0] sm:$0xff] %v1712_v40   ;;  %v927_v47 = vadd.f32 %v2201_v19, %v856_v41  ;;  %v959_v48 = vadd.f32 %v2201_v19, %v888_v42  ;;  %v857_v49 = vmul.f32 %v2196_v17, %v687_v45  ;;  %v689_v51 = vpop.f32.mrb[63].mxu0  ;;  %v817_v52 = vpop.f32.mrb[63].mxu1 }
 0x190   :  { %v889_v50 = vmul.f32 %v2196_v17, %v815_v46 }
 0x191   :  { %v928_v53 = vadd.f32 %v2201_v19, %v857_v49  ;;  %v991_v55 = vmax.f32 %v927_v47, 0.0  ;;  %v1023_v56 = vmax.f32 %v959_v48, 0.0 }
 0x192   :  { %v960_v54 = vadd.f32 %v2201_v19, %v889_v50 }
 0x193   :  { %v992_v57 = vmax.f32 %v928_v53, 0.0 }
 0x194   :  { %v1024_v58 = vmax.f32 %v960_v54, 0.0 }
 0x195   :  { %v1637_v59 = vpack.c.bf16 %v992_v57, %v991_v55 }
 0x196   :  { %v1717_v60 = vpack.c.bf16 %v1024_v58, %v1023_v56 }
 0x197   :  { %1733 = vst [vmem:[%s2431_s4 + $0x78] sm:$0xff] %v1637_v59  }
 0x198   :  { %1749 = vst [vmem:[%s2431_s4 + $0xf8] sm:$0xff] %v1717_v60  }

// kernel: encoder_forward.57
= control target key start
LH: loop header
LB: loop body
LE: loop exit
PB: predicated region body
PF: predicated region fallthrough
CT: control target
= control target key end

     0   :  { %vm153_vm0 = vcmask 27648   ;;  %s1385_s0 = inlined_call_operand.vmem [shape: bf16[9,128,4], index: 0, kind: input, shape index: {}]   ;;  %s1386_s1 = inlined_call_operand.vmem [shape: bf16[128,4], index: 1, kind: output, shape index: {}]  }
   0x1   :  { %v9_v0 = vld [vmem:[%s1385_s0] sm:$0xf]  ;;  %v10_v12 = vld [vmem:[%s1385_s0 + $0x4] sm:$0xf]  ;;  %v11_v33 = vld [vmem:[%s1385_s0 + $0x8] sm:$0xf] }
   0x2   :  { %v25_v1 = vld [vmem:[%s1385_s0 + $0x40] sm:$0xf]  ;;  %v156_v4 = vsel %vm153_vm0, %v9_v0, 4286644096  ;;  %v26_v13 = vld [vmem:[%s1385_s0 + $0x44] sm:$0xf] }
   0x3   :  { %v41_v2 = vld [vmem:[%s1385_s0 + $0x80] sm:$0xf]  ;;  %v159_v5 = vsel %vm153_vm0, %v25_v1, 4286644096  ;;  %v42_v14 = vld [vmem:[%s1385_s0 + $0x84] sm:$0xf] }
   0x4   :  { %v57_v3 = vld [vmem:[%s1385_s0 + $0xc0] sm:$0xf]  ;;  %v163_v6 = vsel %vm153_vm0, %v41_v2, 4286644096  ;;  %v161_v8 = vmax.bf16 %v159_v5, %v156_v4  ;;  %v58_v19 = vld [vmem:[%s1385_s0 + $0xc4] sm:$0xf] }
   0x5   :  { %v73_v7 = vld [vmem:[%s1385_s0 + $0x100] sm:$0xf]  ;;  %v167_v10 = vsel %vm153_vm0, %v57_v3, 4286644096  ;;  %v191_v20 = vsel %vm153_vm0, %v10_v12, 4286644096 }
   0x6   :  { %v89_v9 = vld [vmem:[%s1385_s0 + $0x140] sm:$0xf]  ;;  %v165_v11 = vmax.bf16 %v163_v6, %v161_v8  ;;  %v171_v15 = vsel %vm153_vm0, %v73_v7, 4286644096  ;;  %v194_v21 = vsel %vm153_vm0, %v26_v13, 4286644096 }
   0x7   :  { %v105_v16 = vld [vmem:[%s1385_s0 + $0x180] sm:$0xf]  ;;  %v175_v18 = vsel %vm153_vm0, %v89_v9, 4286644096  ;;  %v198_v22 = vsel %vm153_vm0, %v42_v14, 4286644096  ;;  %v196_v27 = vmax.bf16 %v194_v21, %v191_v20 }
   0x8   :  { %v169_v17 = vmax.bf16 %v167_v10, %v165_v11  ;;  %v121_v23 = vld [vmem:[%s1385_s0 + $0x1c0] sm:$0xf]  ;;  %v74_v26 = vld [vmem:[%s1385_s0 + $0x104] sm:$0xf]  ;;  %v179_v28 = vsel %vm153_vm0, %v105_v16, 4286644096 }
   0x9   :  { %v137_v24 = vld [vmem:[%s1385_s0 + $0x200] sm:$0xf]  ;;  %v90_v29 = vld [vmem:[%s1385_s0 + $0x144] sm:$0xf]  ;;  %v202_v30 = vsel %vm153_vm0, %v58_v19, 4286644096  ;;  %v200_v32 = vmax.bf16 %v198_v22, %v196_v27 }
   0xa   :  { %v173_v25 = vmax.bf16 %v171_v15, %v169_v17  ;;  %v27_v34 = vld [vmem:[%s1385_s0 + $0x48] sm:$0xf]  ;;  %v183_v36 = vsel %vm153_vm0, %v121_v23, 4286644096  ;;  %v187_v37 = vsel %vm153_vm0, %v137_v24, 4286644096 }
   0xb   :  { %v43_v35 = vld [vmem:[%s1385_s0 + $0x88] sm:$0xf]  ;;  %v206_v38 = vsel %vm153_vm0, %v74_v26, 4286644096  ;;  %v106_v40 = vld [vmem:[%s1385_s0 + $0x184] sm:$0xf]  ;;  %v204_v41 = vmax.bf16 %v202_v30, %v200_v32 }
   0xc   :  { %v177_v31 = vmax.bf16 %v175_v18, %v173_v25  ;;  %v210_v42 = vsel %vm153_vm0, %v90_v29, 4286644096  ;;  %v59_v43 = vld [vmem:[%s1385_s0 + $0xc8] sm:$0xf]  ;;  %v226_v44 = vsel %vm153_vm0, %v11_v33, 4286644096 }
   0xd   :  { %v229_v45 = vsel %vm153_vm0, %v27_v34, 4286644096  ;;  %v233_v46 = vsel %vm153_vm0, %v43_v35, 4286644096  ;;  %v122_v48 = vld [vmem:[%s1385_s0 + $0x1c4] sm:$0xf]  ;;  %v208_v50 = vmax.bf16 %v206_v38, %v204_v41 }
   0xe   :  { %v181_v39 = vmax.bf16 %v179_v28, %v177_v31  ;;  %v138_v49 = vld [vmem:[%s1385_s0 + $0x204] sm:$0xf]  ;;  %v75_v51 = vld [vmem:[%s1385_s0 + $0x108] sm:$0xf]  ;;  %v231_v52 = vmax.bf16 %v229_v45, %v226_v44  ;;  %v214_v53 = vsel %vm153_vm0, %v106_v40, 4286644096 }
   0xf   :  { %v91_v54 = vld [vmem:[%s1385_s0 + $0x148] sm:$0xf]  ;;  %v237_v55 = vsel %vm153_vm0, %v59_v43, 4286644096  ;;  %v212_v57 = vmax.bf16 %v210_v42, %v208_v50  ;;  %v12_v59 = vld [vmem:[%s1385_s0 + $0xc] sm:$0xf] }
  0x10   :  { %v185_v47 = vmax.bf16 %v183_v36, %v181_v39  ;;  %v235_v58 = vmax.bf16 %v233_v46, %v231_v52  ;;  %v28_v60 = vld [vmem:[%s1385_s0 + $0x4c] sm:$0xf]  ;;  %v218_v62 = vsel %vm153_vm0, %v122_v48, 4286644096  ;;  %v222_v63 = vsel %vm153_vm0, %v138_v49, 4286644096 }
  0x11   :  { %v44_v61 = vld [vmem:[%s1385_s0 + $0x8c] sm:$0xf]  ;;  %v241_v0 = vsel %vm153_vm0, %v75_v51, 4286644096  ;;  %v216_v1 = vmax.bf16 %v214_v53, %v212_v57  ;;  %v107_v2 = vld [vmem:[%s1385_s0 + $0x188] sm:$0xf] }
  0x12   :  { %v189_v56 = vmax.bf16 %v187_v37, %v185_v47  ;;  %v239_v3 = vmax.bf16 %v237_v55, %v235_v58  ;;  %v245_v4 = vsel %vm153_vm0, %v91_v54, 4286644096  ;;  %v60_v5 = vld [vmem:[%s1385_s0 + $0xcc] sm:$0xf]  ;;  %v261_v6 = vsel %vm153_vm0, %v12_v59, 4286644096 }
  0x13   :  { %v264_v7 = vsel %vm153_vm0, %v28_v60, 4286644096  ;;  %v268_v8 = vsel %vm153_vm0, %v44_v61, 4286644096  ;;  %v220_v9 = vmax.bf16 %v218_v62, %v216_v1  ;;  %v123_v10 = vld [vmem:[%s1385_s0 + $0x1c8] sm:$0xf] }
  0x14   :  { %715 = vst.msk [vmem:[%s1386_s1] sm:$0xf] %vm153_vm0, %v189_v56  ;;  %v139_v11 = vld [vmem:[%s1385_s0 + $0x208] sm:$0xf]  ;;  %v243_v12 = vmax.bf16 %v241_v0, %v239_v3  ;;  %v76_v13 = vld [vmem:[%s1385_s0 + $0x10c] sm:$0xf]  ;;  %v266_v14 = vmax.bf16 %v264_v7, %v261_v6 }
  0x15   :  { %v249_v15 = vsel %vm153_vm0, %v107_v2, 4286644096  ;;  %v92_v16 = vld [vmem:[%s1385_s0 + $0x14c] sm:$0xf]  ;;  %v272_v17 = vsel %vm153_vm0, %v60_v5, 4286644096  ;;  %v224_v18 = vmax.bf16 %v222_v63, %v220_v9 }
  0x16   :  { %v247_v19 = vmax.bf16 %v245_v4, %v243_v12  ;;  %v270_v20 = vmax.bf16 %v268_v8, %v266_v14  ;;  %v13_v21 = vld [vmem:[%s1385_s0 + $0x10] sm:$0xf]  ;;  %v253_v24 = vsel %vm153_vm0, %v123_v10, 4286644096  ;;  %v257_v25 = vsel %vm153_vm0, %v139_v11, 4286644096 }
  0x17   :  { %v29_v22 = vld [vmem:[%s1385_s0 + $0x50] sm:$0xf]  ;;  %v276_v26 = vsel %vm153_vm0, %v76_v13, 4286644096  ;;  %716 = vst.msk [vmem:[%s1386_s1 + $0x4] sm:$0xf] %vm153_vm0, %v224_v18 }
  0x18   :  { %v45_v23 = vld [vmem:[%s1385_s0 + $0x90] sm:$0xf]  ;;  %v251_v27 = vmax.bf16 %v249_v15, %v247_v19  ;;  %v108_v28 = vld [vmem:[%s1385_s0 + $0x18c] sm:$0xf]  ;;  %v274_v29 = vmax.bf16 %v272_v17, %v270_v20  ;;  %v280_v30 = vsel %vm153_vm0, %v92_v16, 4286644096 }
  0x19   :  { %v61_v31 = vld [vmem:[%s1385_s0 + $0xd0] sm:$0xf]  ;;  %v296_v32 = vsel %vm153_vm0, %v13_v21, 4286644096  ;;  %v299_v33 = vsel %vm153_vm0, %v29_v22, 4286644096 }
  0x1a   :  { %v303_v34 = vsel %vm153_vm0, %v45_v23, 4286644096  ;;  %v255_v35 = vmax.bf16 %v253_v24, %v251_v27  ;;  %v124_v36 = vld [vmem:[%s1385_s0 + $0x1cc] sm:$0xf]  ;;  %v278_v38 = vmax.bf16 %v276_v26, %v274_v29  ;;  %v77_v39 = vld [vmem:[%s1385_s0 + $0x110] sm:$0xf]  ;;  %v301_v40 = vmax.bf16 %v299_v33, %v296_v32 }
  0x1b   :  { %v140_v37 = vld [vmem:[%s1385_s0 + $0x20c] sm:$0xf]  ;;  %v284_v41 = vsel %vm153_vm0, %v108_v28, 4286644096  ;;  %v93_v42 = vld [vmem:[%s1385_s0 + $0x150] sm:$0xf] }
  0x1c   :  { %v307_v43 = vsel %vm153_vm0, %v61_v31, 4286644096  ;;  %v259_v44 = vmax.bf16 %v257_v25, %v255_v35  ;;  %v282_v45 = vmax.bf16 %v280_v30, %v278_v38  ;;  %v305_v46 = vmax.bf16 %v303_v34, %v301_v40  ;;  %v14_v47 = vld [vmem:[%s1385_s0 + $0x14] sm:$0xf]  ;;  %v109_v54 = vld [vmem:[%s1385_s0 + $0x190] sm:$0xf] }
  0x1d   :  { %v30_v48 = vld [vmem:[%s1385_s0 + $0x54] sm:$0xf]  ;;  %v288_v50 = vsel %vm153_vm0, %v124_v36, 4286644096  ;;  %v292_v51 = vsel %vm153_vm0, %v140_v37, 4286644096 }
  0x1e   :  { %v46_v49 = vld [vmem:[%s1385_s0 + $0x94] sm:$0xf]  ;;  %v311_v52 = vsel %vm153_vm0, %v77_v39, 4286644096  ;;  %717 = vst.msk [vmem:[%s1386_s1 + $0x8] sm:$0xf] %vm153_vm0, %v259_v44  ;;  %v286_v53 = vmax.bf16 %v284_v41, %v282_v45  ;;  %v309_v55 = vmax.bf16 %v307_v43, %v305_v46 }
  0x1f   :  { %v315_v56 = vsel %vm153_vm0, %v93_v42, 4286644096  ;;  %v62_v57 = vld [vmem:[%s1385_s0 + $0xd4] sm:$0xf]  ;;  %v331_v58 = vsel %vm153_vm0, %v14_v47, 4286644096 }
  0x20   :  { %v334_v59 = vsel %vm153_vm0, %v30_v48, 4286644096  ;;  %v338_v60 = vsel %vm153_vm0, %v46_v49, 4286644096  ;;  %v290_v61 = vmax.bf16 %v288_v50, %v286_v53  ;;  %v125_v62 = vld [vmem:[%s1385_s0 + $0x1d0] sm:$0xf]  ;;  %v313_v0 = vmax.bf16 %v311_v52, %v309_v55 }
  0x21   :  { %v141_v63 = vld [vmem:[%s1385_s0 + $0x210] sm:$0xf]  ;;  %v78_v1 = vld [vmem:[%s1385_s0 + $0x114] sm:$0xf]  ;;  %v336_v2 = vmax.bf16 %v334_v59, %v331_v58  ;;  %v319_v3 = vsel %vm153_vm0, %v109_v54, 4286644096 }
  0x22   :  { %v94_v4 = vld [vmem:[%s1385_s0 + $0x154] sm:$0xf]  ;;  %v342_v5 = vsel %vm153_vm0, %v62_v57, 4286644096  ;;  %v294_v6 = vmax.bf16 %v292_v51, %v290_v61  ;;  %v317_v7 = vmax.bf16 %v315_v56, %v313_v0  ;;  %v15_v9 = vld [vmem:[%s1385_s0 + $0x18] sm:$0xf] }
  0x23   :  { %v340_v8 = vmax.bf16 %v338_v60, %v336_v2  ;;  %v31_v10 = vld [vmem:[%s1385_s0 + $0x58] sm:$0xf]  ;;  %v323_v12 = vsel %vm153_vm0, %v125_v62, 4286644096  ;;  %v327_v13 = vsel %vm153_vm0, %v141_v63, 4286644096 }
  0x24   :  { %v47_v11 = vld [vmem:[%s1385_s0 + $0x98] sm:$0xf]  ;;  %v346_v14 = vsel %vm153_vm0, %v78_v1, 4286644096  ;;  %718 = vst.msk [vmem:[%s1386_s1 + $0xc] sm:$0xf] %vm153_vm0, %v294_v6  ;;  %v321_v15 = vmax.bf16 %v319_v3, %v317_v7 }
  0x25   :  { %v110_v16 = vld [vmem:[%s1385_s0 + $0x194] sm:$0xf]  ;;  %v344_v17 = vmax.bf16 %v342_v5, %v340_v8  ;;  %v350_v18 = vsel %vm153_vm0, %v94_v4, 4286644096  ;;  %v63_v19 = vld [vmem:[%s1385_s0 + $0xd8] sm:$0xf] }
  0x26   :  { %v366_v20 = vsel %vm153_vm0, %v15_v9, 4286644096  ;;  %v369_v21 = vsel %vm153_vm0, %v31_v10, 4286644096  ;;  %v373_v22 = vsel %vm153_vm0, %v47_v11, 4286644096  ;;  %v325_v23 = vmax.bf16 %v323_v12, %v321_v15 }
  0x27   :  { %v126_v24 = vld [vmem:[%s1385_s0 + $0x1d4] sm:$0xf]  ;;  %v348_v26 = vmax.bf16 %v346_v14, %v344_v17  ;;  %v79_v27 = vld [vmem:[%s1385_s0 + $0x118] sm:$0xf]  ;;  %v371_v28 = vmax.bf16 %v369_v21, %v366_v20  ;;  %v354_v29 = vsel %vm153_vm0, %v110_v16, 4286644096 }
  0x28   :  { %v142_v25 = vld [vmem:[%s1385_s0 + $0x214] sm:$0xf]  ;;  %v95_v30 = vld [vmem:[%s1385_s0 + $0x158] sm:$0xf]  ;;  %v377_v31 = vsel %vm153_vm0, %v63_v19, 4286644096  ;;  %v329_v32 = vmax.bf16 %v327_v13, %v325_v23 }
  0x29   :  { %v352_v33 = vmax.bf16 %v350_v18, %v348_v26  ;;  %v375_v34 = vmax.bf16 %v373_v22, %v371_v28  ;;  %v16_v35 = vld [vmem:[%s1385_s0 + $0x1c] sm:$0xf]  ;;  %v358_v38 = vsel %vm153_vm0, %v126_v24, 4286644096  ;;  %v362_v39 = vsel %vm153_vm0, %v142_v25, 4286644096 }
  0x2a   :  { %v32_v36 = vld [vmem:[%s1385_s0 + $0x5c] sm:$0xf]  ;;  %v381_v40 = vsel %vm153_vm0, %v79_v27, 4286644096  ;;  %719 = vst.msk [vmem:[%s1386_s1 + $0x10] sm:$0xf] %vm153_vm0, %v329_v32 }
  0x2b   :  { %v48_v37 = vld [vmem:[%s1385_s0 + $0x9c] sm:$0xf]  ;;  %v356_v41 = vmax.bf16 %v354_v29, %v352_v33  ;;  %v111_v42 = vld [vmem:[%s1385_s0 + $0x198] sm:$0xf]  ;;  %v379_v43 = vmax.bf16 %v377_v31, %v375_v34  ;;  %v385_v44 = vsel %vm153_vm0, %v95_v30, 4286644096 }
  0x2c   :  { %v64_v45 = vld [vmem:[%s1385_s0 + $0xdc] sm:$0xf]  ;;  %v401_v46 = vsel %vm153_vm0, %v16_v35, 4286644096  ;;  %v404_v47 = vsel %vm153_vm0, %v32_v36, 4286644096 }
  0x2d   :  { %v408_v48 = vsel %vm153_vm0, %v48_v37, 4286644096  ;;  %v360_v49 = vmax.bf16 %v358_v38, %v356_v41  ;;  %v127_v50 = vld [vmem:[%s1385_s0 + $0x1d8] sm:$0xf]  ;;  %v383_v52 = vmax.bf16 %v381_v40, %v379_v43  ;;  %v80_v53 = vld [vmem:[%s1385_s0 + $0x11c] sm:$0xf]  ;;  %v406_v54 = vmax.bf16 %v404_v47, %v401_v46 }
  0x2e   :  { %v143_v51 = vld [vmem:[%s1385_s0 + $0x218] sm:$0xf]  ;;  %v389_v55 = vsel %vm153_vm0, %v111_v42, 4286644096  ;;  %v96_v56 = vld [vmem:[%s1385_s0 + $0x15c] sm:$0xf] }
  0x2f   :  { %v412_v57 = vsel %vm153_vm0, %v64_v45, 4286644096  ;;  %v364_v58 = vmax.bf16 %v362_v39, %v360_v49  ;;  %v387_v59 = vmax.bf16 %v385_v44, %v383_v52  ;;  %v410_v60 = vmax.bf16 %v408_v48, %v406_v54  ;;  %v17_v61 = vld [vmem:[%s1385_s0 + $0x20] sm:$0xf]  ;;  %v112_v4 = vld [vmem:[%s1385_s0 + $0x19c] sm:$0xf] }
  0x30   :  { %v33_v62 = vld [vmem:[%s1385_s0 + $0x60] sm:$0xf]  ;;  %v393_v0 = vsel %vm153_vm0, %v127_v50, 4286644096  ;;  %v397_v1 = vsel %vm153_vm0, %v143_v51, 4286644096 }
  0x31   :  { %v49_v63 = vld [vmem:[%s1385_s0 + $0xa0] sm:$0xf]  ;;  %v416_v2 = vsel %vm153_vm0, %v80_v53, 4286644096  ;;  %720 = vst.msk [vmem:[%s1386_s1 + $0x14] sm:$0xf] %vm153_vm0, %v364_v58  ;;  %v391_v3 = vmax.bf16 %v389_v55, %v387_v59  ;;  %v414_v5 = vmax.bf16 %v412_v57, %v410_v60 }
  0x32   :  { %v420_v6 = vsel %vm153_vm0, %v96_v56, 4286644096  ;;  %v65_v7 = vld [vmem:[%s1385_s0 + $0xe0] sm:$0xf]  ;;  %v436_v8 = vsel %vm153_vm0, %v17_v61, 4286644096 }
  0x33   :  { %v439_v9 = vsel %vm153_vm0, %v33_v62, 4286644096  ;;  %v443_v10 = vsel %vm153_vm0, %v49_v63, 4286644096  ;;  %v395_v11 = vmax.bf16 %v393_v0, %v391_v3  ;;  %v128_v12 = vld [vmem:[%s1385_s0 + $0x1dc] sm:$0xf]  ;;  %v418_v14 = vmax.bf16 %v416_v2, %v414_v5 }
  0x34   :  { %v144_v13 = vld [vmem:[%s1385_s0 + $0x21c] sm:$0xf]  ;;  %v81_v15 = vld [vmem:[%s1385_s0 + $0x120] sm:$0xf]  ;;  %v441_v16 = vmax.bf16 %v439_v9, %v436_v8  ;;  %v424_v17 = vsel %vm153_vm0, %v112_v4, 4286644096 }
  0x35   :  { %v97_v18 = vld [vmem:[%s1385_s0 + $0x160] sm:$0xf]  ;;  %v447_v19 = vsel %vm153_vm0, %v65_v7, 4286644096  ;;  %v399_v20 = vmax.bf16 %v397_v1, %v395_v11  ;;  %v422_v21 = vmax.bf16 %v420_v6, %v418_v14  ;;  %v18_v23 = vld [vmem:[%s1385_s0 + $0x24] sm:$0xf] }
  0x36   :  { %v445_v22 = vmax.bf16 %v443_v10, %v441_v16  ;;  %v34_v24 = vld [vmem:[%s1385_s0 + $0x64] sm:$0xf]  ;;  %v428_v26 = vsel %vm153_vm0, %v128_v12, 4286644096  ;;  %v432_v27 = vsel %vm153_vm0, %v144_v13, 4286644096 }
  0x37   :  { %v50_v25 = vld [vmem:[%s1385_s0 + $0xa4] sm:$0xf]  ;;  %v451_v28 = vsel %vm153_vm0, %v81_v15, 4286644096  ;;  %721 = vst.msk [vmem:[%s1386_s1 + $0x18] sm:$0xf] %vm153_vm0, %v399_v20  ;;  %v426_v29 = vmax.bf16 %v424_v17, %v422_v21 }
  0x38   :  { %v113_v30 = vld [vmem:[%s1385_s0 + $0x1a0] sm:$0xf]  ;;  %v449_v31 = vmax.bf16 %v447_v19, %v445_v22  ;;  %v455_v32 = vsel %vm153_vm0, %v97_v18, 4286644096  ;;  %v66_v33 = vld [vmem:[%s1385_s0 + $0xe4] sm:$0xf] }
  0x39   :  { %v471_v34 = vsel %vm153_vm0, %v18_v23, 4286644096  ;;  %v474_v35 = vsel %vm153_vm0, %v34_v24, 4286644096  ;;  %v478_v36 = vsel %vm153_vm0, %v50_v25, 4286644096  ;;  %v430_v37 = vmax.bf16 %v428_v26, %v426_v29 }
  0x3a   :  { %v129_v38 = vld [vmem:[%s1385_s0 + $0x1e0] sm:$0xf]  ;;  %v453_v40 = vmax.bf16 %v451_v28, %v449_v31  ;;  %v82_v41 = vld [vmem:[%s1385_s0 + $0x124] sm:$0xf]  ;;  %v476_v42 = vmax.bf16 %v474_v35, %v471_v34  ;;  %v459_v43 = vsel %vm153_vm0, %v113_v30, 4286644096 }
  0x3b   :  { %v145_v39 = vld [vmem:[%s1385_s0 + $0x220] sm:$0xf]  ;;  %v98_v44 = vld [vmem:[%s1385_s0 + $0x164] sm:$0xf]  ;;  %v482_v45 = vsel %vm153_vm0, %v66_v33, 4286644096  ;;  %v434_v46 = vmax.bf16 %v432_v27, %v430_v37 }
  0x3c   :  { %v457_v47 = vmax.bf16 %v455_v32, %v453_v40  ;;  %v480_v48 = vmax.bf16 %v478_v36, %v476_v42  ;;  %v19_v49 = vld [vmem:[%s1385_s0 + $0x28] sm:$0xf]  ;;  %v463_v52 = vsel %vm153_vm0, %v129_v38, 4286644096  ;;  %v467_v53 = vsel %vm153_vm0, %v145_v39, 4286644096 }
  0x3d   :  { %v35_v50 = vld [vmem:[%s1385_s0 + $0x68] sm:$0xf]  ;;  %v486_v54 = vsel %vm153_vm0, %v82_v41, 4286644096  ;;  %722 = vst.msk [vmem:[%s1386_s1 + $0x1c] sm:$0xf] %vm153_vm0, %v434_v46 }
  0x3e   :  { %v51_v51 = vld [vmem:[%s1385_s0 + $0xa8] sm:$0xf]  ;;  %v461_v55 = vmax.bf16 %v459_v43, %v457_v47  ;;  %v114_v56 = vld [vmem:[%s1385_s0 + $0x1a4] sm:$0xf]  ;;  %v484_v57 = vmax.bf16 %v482_v45, %v480_v48  ;;  %v490_v58 = vsel %vm153_vm0, %v98_v44, 4286644096 }
  0x3f   :  { %v67_v59 = vld [vmem:[%s1385_s0 + $0xe8] sm:$0xf]  ;;  %v506_v60 = vsel %vm153_vm0, %v19_v49, 4286644096  ;;  %v509_v61 = vsel %vm153_vm0, %v35_v50, 4286644096 }
  0x40   :  { %v513_v62 = vsel %vm153_vm0, %v51_v51, 4286644096  ;;  %v465_v63 = vmax.bf16 %v463_v52, %v461_v55  ;;  %v130_v0 = vld [vmem:[%s1385_s0 + $0x1e4] sm:$0xf]  ;;  %v488_v2 = vmax.bf16 %v486_v54, %v484_v57  ;;  %v83_v3 = vld [vmem:[%s1385_s0 + $0x128] sm:$0xf]  ;;  %v511_v4 = vmax.bf16 %v509_v61, %v506_v60 }
  0x41   :  { %v146_v1 = vld [vmem:[%s1385_s0 + $0x224] sm:$0xf]  ;;  %v494_v5 = vsel %vm153_vm0, %v114_v56, 4286644096  ;;  %v99_v6 = vld [vmem:[%s1385_s0 + $0x168] sm:$0xf] }
  0x42   :  { %v517_v7 = vsel %vm153_vm0, %v67_v59, 4286644096  ;;  %v469_v8 = vmax.bf16 %v467_v53, %v465_v63  ;;  %v492_v9 = vmax.bf16 %v490_v58, %v488_v2  ;;  %v515_v10 = vmax.bf16 %v513_v62, %v511_v4  ;;  %v20_v11 = vld [vmem:[%s1385_s0 + $0x2c] sm:$0xf]  ;;  %v115_v18 = vld [vmem:[%s1385_s0 + $0x1a8] sm:$0xf] }
  0x43   :  { %v36_v12 = vld [vmem:[%s1385_s0 + $0x6c] sm:$0xf]  ;;  %v498_v14 = vsel %vm153_vm0, %v130_v0, 4286644096  ;;  %v502_v15 = vsel %vm153_vm0, %v146_v1, 4286644096 }
  0x44   :  { %v52_v13 = vld [vmem:[%s1385_s0 + $0xac] sm:$0xf]  ;;  %v521_v16 = vsel %vm153_vm0, %v83_v3, 4286644096  ;;  %723 = vst.msk [vmem:[%s1386_s1 + $0x20] sm:$0xf] %vm153_vm0, %v469_v8  ;;  %v496_v17 = vmax.bf16 %v494_v5, %v492_v9  ;;  %v519_v19 = vmax.bf16 %v517_v7, %v515_v10 }
  0x45   :  { %v525_v20 = vsel %vm153_vm0, %v99_v6, 4286644096  ;;  %v68_v21 = vld [vmem:[%s1385_s0 + $0xec] sm:$0xf]  ;;  %v541_v22 = vsel %vm153_vm0, %v20_v11, 4286644096 }
  0x46   :  { %v544_v23 = vsel %vm153_vm0, %v36_v12, 4286644096  ;;  %v548_v24 = vsel %vm153_vm0, %v52_v13, 4286644096  ;;  %v500_v25 = vmax.bf16 %v498_v14, %v496_v17  ;;  %v131_v26 = vld [vmem:[%s1385_s0 + $0x1e8] sm:$0xf]  ;;  %v523_v28 = vmax.bf16 %v521_v16, %v519_v19 }
  0x47   :  { %v147_v27 = vld [vmem:[%s1385_s0 + $0x228] sm:$0xf]  ;;  %v84_v29 = vld [vmem:[%s1385_s0 + $0x12c] sm:$0xf]  ;;  %v546_v30 = vmax.bf16 %v544_v23, %v541_v22  ;;  %v529_v31 = vsel %vm153_vm0, %v115_v18, 4286644096 }
  0x48   :  { %v100_v32 = vld [vmem:[%s1385_s0 + $0x16c] sm:$0xf]  ;;  %v552_v33 = vsel %vm153_vm0, %v68_v21, 4286644096  ;;  %v504_v34 = vmax.bf16 %v502_v15, %v500_v25  ;;  %v527_v35 = vmax.bf16 %v525_v20, %v523_v28  ;;  %v21_v37 = vld [vmem:[%s1385_s0 + $0x30] sm:$0xf] }
  0x49   :  { %v550_v36 = vmax.bf16 %v548_v24, %v546_v30  ;;  %v37_v38 = vld [vmem:[%s1385_s0 + $0x70] sm:$0xf]  ;;  %v533_v40 = vsel %vm153_vm0, %v131_v26, 4286644096  ;;  %v537_v41 = vsel %vm153_vm0, %v147_v27, 4286644096 }
  0x4a   :  { %v53_v39 = vld [vmem:[%s1385_s0 + $0xb0] sm:$0xf]  ;;  %v556_v42 = vsel %vm153_vm0, %v84_v29, 4286644096  ;;  %724 = vst.msk [vmem:[%s1386_s1 + $0x24] sm:$0xf] %vm153_vm0, %v504_v34  ;;  %v531_v43 = vmax.bf16 %v529_v31, %v527_v35 }
  0x4b   :  { %v116_v44 = vld [vmem:[%s1385_s0 + $0x1ac] sm:$0xf]  ;;  %v554_v45 = vmax.bf16 %v552_v33, %v550_v36  ;;  %v560_v46 = vsel %vm153_vm0, %v100_v32, 4286644096  ;;  %v69_v47 = vld [vmem:[%s1385_s0 + $0xf0] sm:$0xf] }
  0x4c   :  { %v576_v48 = vsel %vm153_vm0, %v21_v37, 4286644096  ;;  %v579_v49 = vsel %vm153_vm0, %v37_v38, 4286644096  ;;  %v583_v50 = vsel %vm153_vm0, %v53_v39, 4286644096  ;;  %v535_v51 = vmax.bf16 %v533_v40, %v531_v43 }
  0x4d   :  { %v132_v52 = vld [vmem:[%s1385_s0 + $0x1ec] sm:$0xf]  ;;  %v558_v54 = vmax.bf16 %v556_v42, %v554_v45  ;;  %v85_v55 = vld [vmem:[%s1385_s0 + $0x130] sm:$0xf]  ;;  %v581_v56 = vmax.bf16 %v579_v49, %v576_v48  ;;  %v564_v57 = vsel %vm153_vm0, %v116_v44, 4286644096 }
  0x4e   :  { %v148_v53 = vld [vmem:[%s1385_s0 + $0x22c] sm:$0xf]  ;;  %v101_v58 = vld [vmem:[%s1385_s0 + $0x170] sm:$0xf]  ;;  %v587_v59 = vsel %vm153_vm0, %v69_v47, 4286644096  ;;  %v539_v60 = vmax.bf16 %v537_v41, %v535_v51 }
  0x4f   :  { %v562_v61 = vmax.bf16 %v560_v46, %v558_v54  ;;  %v585_v62 = vmax.bf16 %v583_v50, %v581_v56  ;;  %v22_v63 = vld [vmem:[%s1385_s0 + $0x34] sm:$0xf]  ;;  %v568_v2 = vsel %vm153_vm0, %v132_v52, 4286644096  ;;  %v572_v3 = vsel %vm153_vm0, %v148_v53, 4286644096 }
  0x50   :  { %v38_v0 = vld [vmem:[%s1385_s0 + $0x74] sm:$0xf]  ;;  %v591_v4 = vsel %vm153_vm0, %v85_v55, 4286644096  ;;  %725 = vst.msk [vmem:[%s1386_s1 + $0x28] sm:$0xf] %vm153_vm0, %v539_v60 }
  0x51   :  { %v54_v1 = vld [vmem:[%s1385_s0 + $0xb4] sm:$0xf]  ;;  %v566_v5 = vmax.bf16 %v564_v57, %v562_v61  ;;  %v117_v6 = vld [vmem:[%s1385_s0 + $0x1b0] sm:$0xf]  ;;  %v589_v7 = vmax.bf16 %v587_v59, %v585_v62  ;;  %v595_v8 = vsel %vm153_vm0, %v101_v58, 4286644096 }
  0x52   :  { %v70_v9 = vld [vmem:[%s1385_s0 + $0xf4] sm:$0xf]  ;;  %v611_v10 = vsel %vm153_vm0, %v22_v63, 4286644096  ;;  %v614_v11 = vsel %vm153_vm0, %v38_v0, 4286644096 }
  0x53   :  { %v618_v12 = vsel %vm153_vm0, %v54_v1, 4286644096  ;;  %v570_v13 = vmax.bf16 %v568_v2, %v566_v5  ;;  %v133_v14 = vld [vmem:[%s1385_s0 + $0x1f0] sm:$0xf]  ;;  %v593_v16 = vmax.bf16 %v591_v4, %v589_v7  ;;  %v86_v17 = vld [vmem:[%s1385_s0 + $0x134] sm:$0xf]  ;;  %v616_v18 = vmax.bf16 %v614_v11, %v611_v10 }
  0x54   :  { %v149_v15 = vld [vmem:[%s1385_s0 + $0x230] sm:$0xf]  ;;  %v599_v19 = vsel %vm153_vm0, %v117_v6, 4286644096  ;;  %v102_v20 = vld [vmem:[%s1385_s0 + $0x174] sm:$0xf] }
  0x55   :  { %v622_v21 = vsel %vm153_vm0, %v70_v9, 4286644096  ;;  %v574_v22 = vmax.bf16 %v572_v3, %v570_v13  ;;  %v597_v23 = vmax.bf16 %v595_v8, %v593_v16  ;;  %v620_v24 = vmax.bf16 %v618_v12, %v616_v18  ;;  %v23_v25 = vld [vmem:[%s1385_s0 + $0x38] sm:$0xf]  ;;  %v118_v32 = vld [vmem:[%s1385_s0 + $0x1b4] sm:$0xf] }
  0x56   :  { %v39_v26 = vld [vmem:[%s1385_s0 + $0x78] sm:$0xf]  ;;  %v603_v28 = vsel %vm153_vm0, %v133_v14, 4286644096  ;;  %v607_v29 = vsel %vm153_vm0, %v149_v15, 4286644096 }
  0x57   :  { %v55_v27 = vld [vmem:[%s1385_s0 + $0xb8] sm:$0xf]  ;;  %v626_v30 = vsel %vm153_vm0, %v86_v17, 4286644096  ;;  %726 = vst.msk [vmem:[%s1386_s1 + $0x2c] sm:$0xf] %vm153_vm0, %v574_v22  ;;  %v601_v31 = vmax.bf16 %v599_v19, %v597_v23  ;;  %v624_v33 = vmax.bf16 %v622_v21, %v620_v24 }
  0x58   :  { %v630_v34 = vsel %vm153_vm0, %v102_v20, 4286644096  ;;  %v71_v35 = vld [vmem:[%s1385_s0 + $0xf8] sm:$0xf]  ;;  %v646_v36 = vsel %vm153_vm0, %v23_v25, 4286644096 }
  0x59   :  { %v649_v37 = vsel %vm153_vm0, %v39_v26, 4286644096  ;;  %v653_v38 = vsel %vm153_vm0, %v55_v27, 4286644096  ;;  %v605_v39 = vmax.bf16 %v603_v28, %v601_v31  ;;  %v134_v40 = vld [vmem:[%s1385_s0 + $0x1f4] sm:$0xf]  ;;  %v628_v42 = vmax.bf16 %v626_v30, %v624_v33 }
  0x5a   :  { %v150_v41 = vld [vmem:[%s1385_s0 + $0x234] sm:$0xf]  ;;  %v87_v43 = vld [vmem:[%s1385_s0 + $0x138] sm:$0xf]  ;;  %v651_v44 = vmax.bf16 %v649_v37, %v646_v36  ;;  %v634_v45 = vsel %vm153_vm0, %v118_v32, 4286644096 }
  0x5b   :  { %v103_v46 = vld [vmem:[%s1385_s0 + $0x178] sm:$0xf]  ;;  %v657_v47 = vsel %vm153_vm0, %v71_v35, 4286644096  ;;  %v609_v48 = vmax.bf16 %v607_v29, %v605_v39  ;;  %v632_v49 = vmax.bf16 %v630_v34, %v628_v42  ;;  %v24_v51 = vld [vmem:[%s1385_s0 + $0x3c] sm:$0xf] }
  0x5c   :  { %v655_v50 = vmax.bf16 %v653_v38, %v651_v44  ;;  %v40_v52 = vld [vmem:[%s1385_s0 + $0x7c] sm:$0xf]  ;;  %v638_v54 = vsel %vm153_vm0, %v134_v40, 4286644096  ;;  %v642_v55 = vsel %vm153_vm0, %v150_v41, 4286644096 }
  0x5d   :  { %v56_v53 = vld [vmem:[%s1385_s0 + $0xbc] sm:$0xf]  ;;  %v661_v56 = vsel %vm153_vm0, %v87_v43, 4286644096  ;;  %727 = vst.msk [vmem:[%s1386_s1 + $0x30] sm:$0xf] %vm153_vm0, %v609_v48  ;;  %v636_v57 = vmax.bf16 %v634_v45, %v632_v49 }
  0x5e   :  { %v119_v58 = vld [vmem:[%s1385_s0 + $0x1b8] sm:$0xf]  ;;  %v659_v59 = vmax.bf16 %v657_v47, %v655_v50  ;;  %v665_v60 = vsel %vm153_vm0, %v103_v46, 4286644096  ;;  %v72_v61 = vld [vmem:[%s1385_s0 + $0xfc] sm:$0xf] }
  0x5f   :  { %v681_v62 = vsel %vm153_vm0, %v24_v51, 4286644096  ;;  %v684_v63 = vsel %vm153_vm0, %v40_v52, 4286644096  ;;  %v688_v0 = vsel %vm153_vm0, %v56_v53, 4286644096  ;;  %v640_v1 = vmax.bf16 %v638_v54, %v636_v57 }
  0x60   :  { %v135_v2 = vld [vmem:[%s1385_s0 + $0x1f8] sm:$0xf]  ;;  %v663_v3 = vmax.bf16 %v661_v56, %v659_v59  ;;  %v88_v4 = vld [vmem:[%s1385_s0 + $0x13c] sm:$0xf]  ;;  %v686_v5 = vmax.bf16 %v684_v63, %v681_v62  ;;  %v669_v6 = vsel %vm153_vm0, %v119_v58, 4286644096 }
  0x61   :  { %v692_v7 = vsel %vm153_vm0, %v72_v61, 4286644096  ;;  %v644_v8 = vmax.bf16 %v642_v55, %v640_v1  ;;  %v151_v9 = vld [vmem:[%s1385_s0 + $0x238] sm:$0xf]  ;;  %v104_v11 = vld [vmem:[%s1385_s0 + $0x17c] sm:$0xf] }
  0x62   :  { %v667_v10 = vmax.bf16 %v665_v60, %v663_v3  ;;  %v690_v12 = vmax.bf16 %v688_v0, %v686_v5  ;;  %v673_v13 = vsel %vm153_vm0, %v135_v2, 4286644096  ;;  %v696_v14 = vsel %vm153_vm0, %v88_v4, 4286644096  ;;  %v120_v16 = vld [vmem:[%s1385_s0 + $0x1bc] sm:$0xf] }
  0x63   :  { %728 = vst.msk [vmem:[%s1386_s1 + $0x34] sm:$0xf] %vm153_vm0, %v644_v8  ;;  %v677_v18 = vsel %vm153_vm0, %v151_v9, 4286644096  ;;  %v700_v19 = vsel %vm153_vm0, %v104_v11, 4286644096 }
  0x64   :  { %v671_v15 = vmax.bf16 %v669_v6, %v667_v10  ;;  %v694_v17 = vmax.bf16 %v692_v7, %v690_v12  ;;  %v136_v21 = vld [vmem:[%s1385_s0 + $0x1fc] sm:$0xf]  ;;  %v704_v23 = vsel %vm153_vm0, %v120_v16, 4286644096 }
  0x65   :  { %v152_v25 = vld [vmem:[%s1385_s0 + $0x23c] sm:$0xf]  ;;  %v708_v27 = vsel %vm153_vm0, %v136_v21, 4286644096 }
  0x66   :  { %v675_v20 = vmax.bf16 %v673_v13, %v671_v15  ;;  %v698_v22 = vmax.bf16 %v696_v14, %v694_v17  ;;  %v712_v29 = vsel %vm153_vm0, %v152_v25, 4286644096 }
  0x68   :  { %v679_v24 = vmax.bf16 %v677_v18, %v675_v20  ;;  %v702_v26 = vmax.bf16 %v700_v19, %v698_v22 }
  0x6a   :  { %729 = vst.msk [vmem:[%s1386_s1 + $0x38] sm:$0xf] %vm153_vm0, %v679_v24  ;;  %v706_v28 = vmax.bf16 %v704_v23, %v702_v26 }
  0x6c   :  { %v710_v30 = vmax.bf16 %v708_v27, %v706_v28 }
  0x6e   :  { %v714_v31 = vmax.bf16 %v712_v29, %v710_v30 }
  0x70   :  { %730 = vst.msk [vmem:[%s1386_s1 + $0x3c] sm:$0xf] %vm153_vm0, %v714_v31 }

// kernel: encoder_forward.58
= control target key start
LH: loop header
LB: loop body
LE: loop exit
PB: predicated region body
PF: predicated region fallthrough
CT: control target
= control target key end

     0   :  { %s687_s1 = inlined_call_operand.vmem [shape: bf16[1,128,128], index: 1, kind: input, shape index: {}]   ;;  %s688_s0 = inlined_call_operand.vmem [shape: bf16[1,128,128], index: 0, kind: input, shape index: {}]   ;;  %s689_s2 = inlined_call_operand.vmem [shape: f32[1,1,128], index: 2, kind: input, shape index: {}]   ;;  %s690_s3 = inlined_call_operand.vmem [shape: f32[1,1,128], index: 3, kind: input, shape index: {}]   ;;  %s691_s4 = inlined_call_operand.vmem [shape: bf16[1,128,128], index: 4, kind: output, shape index: {}]  }
   0x1   :  { %v550_v0 = vld [vmem:[%s687_s1] sm:$0xff]   ;;  %v551_v1 = vld [vmem:[%s687_s1 + $0x8] sm:$0xff]   ;;  %v552_v2 = vld [vmem:[%s687_s1 + $0x10] sm:$0xff]  }
   0x2   :  { %502 = vmatprep.subr.bf16.mxu0 %v550_v0  ;;  %534 = vmatprep.subr.bf16.mxu1 %v550_v0  ;;  %v553_v3 = vld [vmem:[%s687_s1 + $0x18] sm:$0xff]   ;;  %v558_v4 = vld [vmem:[%s688_s0] sm:$0xff]   ;;  %v555_v7 = vld [vmem:[%s687_s1 + $0x28] sm:$0xff]  }
   0x3   :  { %503 = vmatpush3.bf16.msra.mxu0 %v550_v0  ;;  %542 = vmatpush3.bf16.msra.mxu1 %v550_v0  ;;  %v559_v5 = vld [vmem:[%s688_s0 + $0x20] sm:$0xff]   ;;  %v556_v8 = vld [vmem:[%s687_s1 + $0x30] sm:$0xff]   ;;  %v557_v9 = vld [vmem:[%s687_s1 + $0x38] sm:$0xff]  }
   0x4   :  { %504 = vmatprep.subr.bf16.mxu0 %v551_v1  ;;  %535 = vmatprep.subr.bf16.mxu1 %v551_v1  ;;  %v554_v6 = vld [vmem:[%s687_s1 + $0x20] sm:$0xff]   ;;  %v560_v10 = vld [vmem:[%s688_s0 + $0x8] sm:$0xff]   ;;  %v562_v12 = vld [vmem:[%s688_s0 + $0x10] sm:$0xff]  }
   0x5   :  { %518 = vmatprep.mubr.bf16.mxu0 %v558_v4  ;;  %526 = vmatprep.mubr.bf16.mxu1 %v559_v5  ;;  %v561_v11 = vld [vmem:[%s688_s0 + $0x28] sm:$0xff]   ;;  %v563_v13 = vld [vmem:[%s688_s0 + $0x30] sm:$0xff]   ;;  %v564_v14 = vld [vmem:[%s688_s0 + $0x18] sm:$0xff]  }
   0x6   :  { %v565_v15 = vld [vmem:[%s688_s0 + $0x38] sm:$0xff]   ;;  %v405_v16 = vld [vmem:[%s689_s2] ss:$0 sm:$0xff] }
   0x7   :  { %505 = vmatpush3.bf16.msra.mxu0 %v551_v1  ;;  %543 = vmatpush3.bf16.msra.mxu1 %v551_v1  ;;  %v645_v18 = vld [vmem:[%s690_s3] ss:$0 sm:$0xff] }
   0x8   :  { %506 = vmatprep.subr.bf16.mxu0 %v552_v2  ;;  %536 = vmatprep.subr.bf16.mxu1 %v552_v2 }
   0xb   :  { %507 = vmatpush3.bf16.msra.mxu0 %v552_v2  ;;  %544 = vmatpush3.bf16.msra.mxu1 %v552_v2 }
   0xc   :  { %508 = vmatprep.subr.bf16.mxu0 %v553_v3  ;;  %537 = vmatprep.subr.bf16.mxu1 %v553_v3 }
   0xf   :  { %509 = vmatpush3.bf16.msra.mxu0 %v553_v3  ;;  %545 = vmatpush3.bf16.msra.mxu1 %v553_v3 }
  0x10   :  { %510 = vmatprep.subr.bf16.mxu0 %v554_v6  ;;  %538 = vmatprep.subr.bf16.mxu1 %v554_v6 }
  0x13   :  { %511 = vmatpush3.bf16.msra.mxu0 %v554_v6  ;;  %546 = vmatpush3.bf16.msra.mxu1 %v554_v6 }
  0x14   :  { %512 = vmatprep.subr.bf16.mxu0 %v555_v7  ;;  %539 = vmatprep.subr.bf16.mxu1 %v555_v7 }
  0x17   :  { %513 = vmatpush3.bf16.msra.mxu0 %v555_v7  ;;  %547 = vmatpush3.bf16.msra.mxu1 %v555_v7 }
  0x18   :  { %514 = vmatprep.subr.bf16.mxu0 %v556_v8  ;;  %540 = vmatprep.subr.bf16.mxu1 %v556_v8 }
  0x1b   :  { %515 = vmatpush3.bf16.msra.mxu0 %v556_v8  ;;  %548 = vmatpush3.bf16.msra.mxu1 %v556_v8 }
  0x1c   :  { %516 = vmatprep.subr.bf16.mxu0 %v557_v9  ;;  %541 = vmatprep.subr.bf16.mxu1 %v557_v9 }
  0x1f   :  { %517 = vmatpush3.bf16.msra.mxu0 %v557_v9  ;;  %549 = vmatpush3.bf16.msra.mxu1 %v557_v9 }
  0x22   :  { %519 = vmatmul.mubr.bf16.vlgmr.msra.gmra.mrb[0].mxu0 %v560_v10  ;;  %527 = vmatmul.mubr.bf16.vlgmr.msra.gmra.mrb[0].mxu1 %v561_v11 }
  0x23   :  { %522 = vmatprep.mubr.bf16.mxu0 %v562_v12  ;;  %530 = vmatprep.mubr.bf16.mxu1 %v563_v13 }
  0x2a   :  { %523 = vmatmul.mubr.bf16.gmra.mrb[4].mxu0 %v564_v14  ;;  %531 = vmatmul.mubr.bf16.gmra.mrb[4].mxu1 %v565_v15 }
  0xf5   :  { %v520_v17 = vpop.f32.mrb[0].mxu0  ;;  %v528_v19 = vpop.f32.mrb[0].mxu1 }
  0xf6   :  { %v252_v20 = vmul.f32 %v520_v17, %v405_v16  ;;  %v260_v21 = vmul.f32 %v528_v19, %v405_v16  ;;  %v180_v22 = vpop.f32.mrb[1].mxu0  ;;  %v212_v23 = vpop.f32.mrb[1].mxu1 }
  0xf7   :  { %v250_v24 = vmul.f32 %v405_v16, %v180_v22  ;;  %v258_v25 = vmul.f32 %v405_v16, %v212_v23  ;;  %v521_v26 = vpop.f32.mrb[2].mxu0  ;;  %v529_v27 = vpop.f32.mrb[2].mxu1 }
  0xf8   :  { %v275_v28 = vadd.f32 %v645_v18, %v252_v20  ;;  %v283_v29 = vadd.f32 %v645_v18, %v260_v21  ;;  %v253_v30 = vmul.f32 %v521_v26, %v405_v16  ;;  %v261_v31 = vmul.f32 %v529_v27, %v405_v16  ;;  %v183_v32 = vpop.f32.mrb[3].mxu0  ;;  %v215_v33 = vpop.f32.mrb[3].mxu1 }
  0xf9   :  { %v273_v34 = vadd.f32 %v645_v18, %v250_v24  ;;  %v281_v35 = vadd.f32 %v645_v18, %v258_v25  ;;  %v251_v36 = vmul.f32 %v405_v16, %v183_v32  ;;  %v259_v37 = vmul.f32 %v405_v16, %v215_v33 }
  0xfa   :  { %v276_v38 = vadd.f32 %v645_v18, %v253_v30  ;;  %v284_v39 = vadd.f32 %v645_v18, %v261_v31  ;;  %v291_v42 = vmax.f32 %v275_v28, 0.0  ;;  %v299_v43 = vmax.f32 %v283_v29, 0.0 }
  0xfb   :  { %v274_v40 = vadd.f32 %v645_v18, %v251_v36  ;;  %v282_v41 = vadd.f32 %v645_v18, %v259_v37  ;;  %v289_v46 = vmax.f32 %v273_v34, 0.0  ;;  %v297_v47 = vmax.f32 %v281_v35, 0.0 }
  0xfc   :  { %v292_v44 = vmax.f32 %v276_v38, 0.0  ;;  %v300_v45 = vmax.f32 %v284_v39, 0.0 }
  0xfd   :  { %v290_v48 = vmax.f32 %v274_v40, 0.0  ;;  %v298_v49 = vmax.f32 %v282_v41, 0.0  ;;  %v524_v50 = vpop.f32.mrb[4].mxu0  ;;  %v532_v51 = vpop.f32.mrb[4].mxu1 }
  0xfe   :  { %v447_v52 = vpack.c.bf16 %v292_v44, %v291_v42  ;;  %v467_v53 = vpack.c.bf16 %v300_v45, %v299_v43  ;;  %v256_v54 = vmul.f32 %v524_v50, %v405_v16  ;;  %v264_v55 = vmul.f32 %v532_v51, %v405_v16  ;;  %v196_v56 = vpop.f32.mrb[5].mxu0  ;;  %v228_v57 = vpop.f32.mrb[5].mxu1 }
  0xff   :  { %v442_v58 = vpack.c.bf16 %v290_v48, %v289_v46  ;;  %v462_v59 = vpack.c.bf16 %v298_v49, %v297_v47  ;;  %v254_v60 = vmul.f32 %v405_v16, %v196_v56  ;;  %v262_v61 = vmul.f32 %v405_v16, %v228_v57  ;;  %v525_v62 = vpop.f32.mrb[6].mxu0  ;;  %v533_v63 = vpop.f32.mrb[6].mxu1 }
 0x100   :  { %479 = vst [vmem:[%s691_s4 + $0x8] sm:$0xff] %v447_v52   ;;  %483 = vst [vmem:[%s691_s4 + $0x28] sm:$0xff] %v467_v53   ;;  %v279_v0 = vadd.f32 %v645_v18, %v256_v54  ;;  %v287_v1 = vadd.f32 %v645_v18, %v264_v55  ;;  %v257_v2 = vmul.f32 %v525_v62, %v405_v16  ;;  %v199_v4 = vpop.f32.mrb[7].mxu0  ;;  %v231_v5 = vpop.f32.mrb[7].mxu1 }
 0x101   :  { %v265_v3 = vmul.f32 %v533_v63, %v405_v16  ;;  %443 = vst [vmem:[%s691_s4] sm:$0xff] %v442_v58   ;;  %482 = vst [vmem:[%s691_s4 + $0x20] sm:$0xff] %v462_v59   ;;  %v277_v6 = vadd.f32 %v645_v18, %v254_v60  ;;  %v285_v7 = vadd.f32 %v645_v18, %v262_v61 }
 0x102   :  { %v255_v8 = vmul.f32 %v405_v16, %v199_v4  ;;  %v263_v9 = vmul.f32 %v405_v16, %v231_v5  ;;  %v280_v10 = vadd.f32 %v645_v18, %v257_v2  ;;  %v295_v14 = vmax.f32 %v279_v0, 0.0 }
 0x103   :  { %v288_v11 = vadd.f32 %v645_v18, %v265_v3  ;;  %v303_v15 = vmax.f32 %v287_v1, 0.0  ;;  %v293_v20 = vmax.f32 %v277_v6, 0.0  ;;  %v301_v21 = vmax.f32 %v285_v7, 0.0 }
 0x104   :  { %v278_v12 = vadd.f32 %v645_v18, %v255_v8  ;;  %v286_v13 = vadd.f32 %v645_v18, %v263_v9  ;;  %v296_v17 = vmax.f32 %v280_v10, 0.0 }
 0x105   :  { %v304_v19 = vmax.f32 %v288_v11, 0.0 }
 0x106   :  { %v294_v22 = vmax.f32 %v278_v12, 0.0  ;;  %v302_v23 = vmax.f32 %v286_v13, 0.0  ;;  %v457_v24 = vpack.c.bf16 %v296_v17, %v295_v14 }
 0x107   :  { %v477_v25 = vpack.c.bf16 %v304_v19, %v303_v15 }
 0x108   :  { %v452_v26 = vpack.c.bf16 %v294_v22, %v293_v20  ;;  %v472_v16 = vpack.c.bf16 %v302_v23, %v301_v21  ;;  %481 = vst [vmem:[%s691_s4 + $0x18] sm:$0xff] %v457_v24  }
 0x109   :  { %485 = vst [vmem:[%s691_s4 + $0x38] sm:$0xff] %v477_v25  }
 0x10a   :  { %480 = vst [vmem:[%s691_s4 + $0x10] sm:$0xff] %v452_v26   ;;  %484 = vst [vmem:[%s691_s4 + $0x30] sm:$0xff] %v472_v16  }

// kernel: encoder_forward.59
= control target key start
LH: loop header
LB: loop body
LE: loop exit
PB: predicated region body
PF: predicated region fallthrough
CT: control target
= control target key end

     0   :  { %s1109_s15 = smov 0   ;;  %s1111_s16 = smov 0   ;;  %s1209_s0 = inlined_call_operand.vmem [shape: bf16[2,128,128], index: 0, kind: input, shape index: {}]   ;;  %s1210_s1 = inlined_call_operand.vmem [shape: bf16[2,128,128], index: 1, kind: input, shape index: {}]   ;;  %s1211_s2 = inlined_call_operand.vmem [shape: f32[2,1,128], index: 2, kind: input, shape index: {}]   ;;  %s1212_s3 = inlined_call_operand.vmem [shape: f32[2,1,128], index: 3, kind: input, shape index: {}]   ;;  %s1213_s4 = inlined_call_operand.vmem [shape: bf16[2,128,128], index: 4, kind: output, shape index: {}]  }
   0x1   :  { %s1113_s17 = smov 0  }
   0x2 LB: > { %s33_s18 = sadd.s32 1, %s1078_s16  ;;  %p847_p0 = scmp.ge.s32.totalorder %s1082_s17, 1  ;;  %s1082_s17 = sphi %s1113_s17, %s14_s17   ;;  %s1078_s16 = sphi %s1111_s16, %s1215_s16   ;;  %s1074_s15 = sphi %s1109_s15, %s1214_s15  }
   0x3   : > { %p35_p1 = scmp.ge.s32.totalorder %s33_s18, 2  ;;  %p233_p2 = scmp.lt.s32.totalorder %s1082_s17, 3 }
   0x5   : > { %s1217_s18 = smov (%p35_p1, %s33_s18), 0  ;;  %p234_p3 = pnand %p847_p0, %p233_p2 }
   0x6   : > { %p291_p4 = scmp.lt.s32.totalorder (!%p234_p3), %s1074_s15, 1 }
   0x7   : > { %237 = sbr.rel (%p234_p3) target bundleno = 283 (0x11b), region = 36 }
   0xe   : > { %s1219_s15 = smov (!%p291_p4, %s1074_s15), 1 }
   0xf   : > { %s1130_s19 = sshll.u32 %s1219_s15, 6  ;;  %s313_s28 = scalar_lea.vmem %s1211_s2, %s1219_s15 }
  0x10   : > { %s1136_s22 = scalar_lea.vmem %s1210_s1, %s1130_s19  ;;  %s1145_s25 = scalar_lea.vmem %s1209_s0, %s1130_s19  ;;  %v870_v16 = vld [vmem:[%s313_s28] ss:$0 sm:$0xff] }
  0x11   : > { %v1044_v0 = vld [vmem:[%s1136_s22] sm:$0xff]   ;;  %v1045_v1 = vld [vmem:[%s1136_s22 + $0x8] sm:$0xff]   ;;  %v1046_v2 = vld [vmem:[%s1136_s22 + $0x10] sm:$0xff]   ;;  %s319_s5 = scalar_lea.vmem %s1212_s3, %s1219_s15  ;;  %s1182_s8 = scalar_lea.vmem %s1213_s4, %s1130_s19 }
  0x12   : > { %972 = vmatprep.subr.bf16.mxu0 %v1044_v0  ;;  %1004 = vmatprep.subr.bf16.mxu1 %v1044_v0  ;;  %v1047_v3 = vld [vmem:[%s1136_s22 + $0x18] sm:$0xff]   ;;  %v1052_v4 = vld [vmem:[%s1145_s25] sm:$0xff]   ;;  %v1049_v7 = vld [vmem:[%s1136_s22 + $0x28] sm:$0xff]  }
  0x13   : > { %973 = vmatpush3.bf16.msra.mxu0 %v1044_v0  ;;  %1012 = vmatpush3.bf16.msra.mxu1 %v1044_v0  ;;  %v1053_v5 = vld [vmem:[%s1145_s25 + $0x20] sm:$0xff]   ;;  %v1050_v8 = vld [vmem:[%s1136_s22 + $0x30] sm:$0xff]   ;;  %v1051_v9 = vld [vmem:[%s1136_s22 + $0x38] sm:$0xff]  }
  0x14   : > { %974 = vmatprep.subr.bf16.mxu0 %v1045_v1  ;;  %1005 = vmatprep.subr.bf16.mxu1 %v1045_v1  ;;  %v1048_v6 = vld [vmem:[%s1136_s22 + $0x20] sm:$0xff]   ;;  %v1054_v10 = vld [vmem:[%s1145_s25 + $0x8] sm:$0xff]   ;;  %v1056_v12 = vld [vmem:[%s1145_s25 + $0x10] sm:$0xff]  }
  0x15   : > { %988 = vmatprep.mubr.bf16.mxu0 %v1052_v4  ;;  %996 = vmatprep.mubr.bf16.mxu1 %v1053_v5  ;;  %v1055_v11 = vld [vmem:[%s1145_s25 + $0x28] sm:$0xff]   ;;  %v1057_v13 = vld [vmem:[%s1145_s25 + $0x30] sm:$0xff]   ;;  %v1058_v14 = vld [vmem:[%s1145_s25 + $0x18] sm:$0xff]  }
  0x16   : > { %v1059_v15 = vld [vmem:[%s1145_s25 + $0x38] sm:$0xff]   ;;  %v1168_v18 = vld [vmem:[%s319_s5] ss:$0 sm:$0xff] }
  0x17   : > { %975 = vmatpush3.bf16.msra.mxu0 %v1045_v1  ;;  %1013 = vmatpush3.bf16.msra.mxu1 %v1045_v1 }
  0x18   : > { %976 = vmatprep.subr.bf16.mxu0 %v1046_v2  ;;  %1006 = vmatprep.subr.bf16.mxu1 %v1046_v2 }
  0x1b   : > { %977 = vmatpush3.bf16.msra.mxu0 %v1046_v2  ;;  %1014 = vmatpush3.bf16.msra.mxu1 %v1046_v2 }
  0x1c   : > { %978 = vmatprep.subr.bf16.mxu0 %v1047_v3  ;;  %1007 = vmatprep.subr.bf16.mxu1 %v1047_v3 }
  0x1f   : > { %979 = vmatpush3.bf16.msra.mxu0 %v1047_v3  ;;  %1015 = vmatpush3.bf16.msra.mxu1 %v1047_v3 }
  0x20   : > { %980 = vmatprep.subr.bf16.mxu0 %v1048_v6  ;;  %1008 = vmatprep.subr.bf16.mxu1 %v1048_v6 }
  0x23   : > { %981 = vmatpush3.bf16.msra.mxu0 %v1048_v6  ;;  %1016 = vmatpush3.bf16.msra.mxu1 %v1048_v6 }
  0x24   : > { %982 = vmatprep.subr.bf16.mxu0 %v1049_v7  ;;  %1009 = vmatprep.subr.bf16.mxu1 %v1049_v7 }
  0x27   : > { %983 = vmatpush3.bf16.msra.mxu0 %v1049_v7  ;;  %1017 = vmatpush3.bf16.msra.mxu1 %v1049_v7 }
  0x28   : > { %984 = vmatprep.subr.bf16.mxu0 %v1050_v8  ;;  %1010 = vmatprep.subr.bf16.mxu1 %v1050_v8 }
  0x2b   : > { %985 = vmatpush3.bf16.msra.mxu0 %v1050_v8  ;;  %1018 = vmatpush3.bf16.msra.mxu1 %v1050_v8 }
  0x2c   : > { %986 = vmatprep.subr.bf16.mxu0 %v1051_v9  ;;  %1011 = vmatprep.subr.bf16.mxu1 %v1051_v9 }
  0x2f   : > { %987 = vmatpush3.bf16.msra.mxu0 %v1051_v9  ;;  %1019 = vmatpush3.bf16.msra.mxu1 %v1051_v9 }
  0x32   : > { %989 = vmatmul.mubr.bf16.vlgmr.msra.gmra.mrb[0].mxu0 %v1054_v10  ;;  %997 = vmatmul.mubr.bf16.vlgmr.msra.gmra.mrb[0].mxu1 %v1055_v11 }
  0x33   : > { %992 = vmatprep.mubr.bf16.mxu0 %v1056_v12  ;;  %1000 = vmatprep.mubr.bf16.mxu1 %v1057_v13 }
  0x3a   : > { %993 = vmatmul.mubr.bf16.gmra.mrb[4].mxu0 %v1058_v14  ;;  %1001 = vmatmul.mubr.bf16.gmra.mrb[4].mxu1 %v1059_v15 }
 0x105   : > { %v990_v17 = vpop.f32.mrb[0].mxu0  ;;  %v998_v19 = vpop.f32.mrb[0].mxu1 }
 0x106   : > { %v568_v20 = vmul.f32 %v990_v17, %v870_v16  ;;  %v576_v21 = vmul.f32 %v998_v19, %v870_v16  ;;  %v496_v22 = vpop.f32.mrb[1].mxu0  ;;  %v528_v23 = vpop.f32.mrb[1].mxu1 }
 0x107   : > { %v566_v24 = vmul.f32 %v870_v16, %v496_v22  ;;  %v574_v25 = vmul.f32 %v870_v16, %v528_v23  ;;  %v991_v26 = vpop.f32.mrb[2].mxu0  ;;  %v999_v27 = vpop.f32.mrb[2].mxu1 }
 0x108   : > { %v591_v28 = vadd.f32 %v1168_v18, %v568_v20  ;;  %v599_v29 = vadd.f32 %v1168_v18, %v576_v21  ;;  %v569_v30 = vmul.f32 %v991_v26, %v870_v16  ;;  %v577_v31 = vmul.f32 %v999_v27, %v870_v16  ;;  %v499_v32 = vpop.f32.mrb[3].mxu0  ;;  %v531_v33 = vpop.f32.mrb[3].mxu1 }
 0x109   : > { %v589_v34 = vadd.f32 %v1168_v18, %v566_v24  ;;  %v597_v35 = vadd.f32 %v1168_v18, %v574_v25  ;;  %v567_v36 = vmul.f32 %v870_v16, %v499_v32  ;;  %v575_v37 = vmul.f32 %v870_v16, %v531_v33 }
 0x10a   : > { %v592_v38 = vadd.f32 %v1168_v18, %v569_v30  ;;  %v600_v39 = vadd.f32 %v1168_v18, %v577_v31  ;;  %v607_v42 = vmax.f32 %v591_v28, 0.0  ;;  %v615_v43 = vmax.f32 %v599_v29, 0.0 }
 0x10b   : > { %v590_v40 = vadd.f32 %v1168_v18, %v567_v36  ;;  %v598_v41 = vadd.f32 %v1168_v18, %v575_v37  ;;  %v605_v46 = vmax.f32 %v589_v34, 0.0  ;;  %v613_v47 = vmax.f32 %v597_v35, 0.0 }
 0x10c   : > { %v608_v44 = vmax.f32 %v592_v38, 0.0  ;;  %v616_v45 = vmax.f32 %v600_v39, 0.0 }
 0x10d   : > { %v606_v48 = vmax.f32 %v590_v40, 0.0  ;;  %v614_v49 = vmax.f32 %v598_v41, 0.0  ;;  %v994_v50 = vpop.f32.mrb[4].mxu0  ;;  %v1002_v51 = vpop.f32.mrb[4].mxu1 }
 0x10e   : > { %v917_v52 = vpack.c.bf16 %v608_v44, %v607_v42  ;;  %v937_v53 = vpack.c.bf16 %v616_v45, %v615_v43  ;;  %v572_v54 = vmul.f32 %v994_v50, %v870_v16  ;;  %v580_v55 = vmul.f32 %v1002_v51, %v870_v16  ;;  %v512_v56 = vpop.f32.mrb[5].mxu0  ;;  %v544_v57 = vpop.f32.mrb[5].mxu1 }
 0x10f   : > { %v912_v58 = vpack.c.bf16 %v606_v48, %v605_v46  ;;  %v932_v59 = vpack.c.bf16 %v614_v49, %v613_v47  ;;  %v570_v60 = vmul.f32 %v870_v16, %v512_v56  ;;  %v578_v61 = vmul.f32 %v870_v16, %v544_v57  ;;  %v995_v62 = vpop.f32.mrb[6].mxu0  ;;  %v1003_v63 = vpop.f32.mrb[6].mxu1 }
 0x110   : > { %949 = vst [vmem:[%s1182_s8 + $0x8] sm:$0xff] %v917_v52   ;;  %953 = vst [vmem:[%s1182_s8 + $0x28] sm:$0xff] %v937_v53   ;;  %v595_v0 = vadd.f32 %v1168_v18, %v572_v54  ;;  %v603_v1 = vadd.f32 %v1168_v18, %v580_v55  ;;  %v573_v2 = vmul.f32 %v995_v62, %v870_v16  ;;  %v515_v4 = vpop.f32.mrb[7].mxu0  ;;  %v547_v5 = vpop.f32.mrb[7].mxu1 }
 0x111   : > { %v581_v3 = vmul.f32 %v1003_v63, %v870_v16  ;;  %913 = vst [vmem:[%s1182_s8] sm:$0xff] %v912_v58   ;;  %952 = vst [vmem:[%s1182_s8 + $0x20] sm:$0xff] %v932_v59   ;;  %v593_v6 = vadd.f32 %v1168_v18, %v570_v60  ;;  %v601_v7 = vadd.f32 %v1168_v18, %v578_v61 }
 0x112   : > { %v571_v8 = vmul.f32 %v870_v16, %v515_v4  ;;  %v579_v9 = vmul.f32 %v870_v16, %v547_v5  ;;  %v596_v10 = vadd.f32 %v1168_v18, %v573_v2  ;;  %v611_v14 = vmax.f32 %v595_v0, 0.0 }
 0x113   : > { %v604_v11 = vadd.f32 %v1168_v18, %v581_v3  ;;  %v619_v15 = vmax.f32 %v603_v1, 0.0  ;;  %v609_v20 = vmax.f32 %v593_v6, 0.0  ;;  %v617_v21 = vmax.f32 %v601_v7, 0.0 }
 0x114   : > { %v594_v12 = vadd.f32 %v1168_v18, %v571_v8  ;;  %v602_v13 = vadd.f32 %v1168_v18, %v579_v9  ;;  %v612_v17 = vmax.f32 %v596_v10, 0.0 }
 0x115   : > { %v620_v19 = vmax.f32 %v604_v11, 0.0 }
 0x116   : > { %v610_v22 = vmax.f32 %v594_v12, 0.0  ;;  %v618_v16 = vmax.f32 %v602_v13, 0.0  ;;  %v927_v23 = vpack.c.bf16 %v612_v17, %v611_v14 }
 0x117   : > { %v947_v24 = vpack.c.bf16 %v620_v19, %v619_v15 }
 0x118   : > { %v922_v25 = vpack.c.bf16 %v610_v22, %v609_v20  ;;  %v942_v26 = vpack.c.bf16 %v618_v16, %v617_v21  ;;  %951 = vst [vmem:[%s1182_s8 + $0x18] sm:$0xff] %v927_v23  }
 0x119   : > { %955 = vst [vmem:[%s1182_s8 + $0x38] sm:$0xff] %v947_v24  }
 0x11a   : > { %950 = vst [vmem:[%s1182_s8 + $0x10] sm:$0xff] %v922_v25   ;;  %954 = vst [vmem:[%s1182_s8 + $0x30] sm:$0xff] %v942_v26  }
 0x11b PF: > { %s14_s17 = sadd.s32 1, %s1082_s17   ;;  %s1214_s15 = smov %s1078_s16 }
 0x11c   : > { %p11_p5 = scmp.ge.s32.totalorder %s14_s17, 4   ;;  %s1215_s16 = smov %s1217_s18 }
 0x11e   :  { %13 = sbr.rel (!%p11_p5) target bundleno = 2 (0x2), region = 75 }

// kernel: encoder_forward.60
= control target key start
LH: loop header
LB: loop body
LE: loop exit
PB: predicated region body
PF: predicated region fallthrough
CT: control target
= control target key end

     0   :  { %s653_s1 = inlined_call_operand.vmem [shape: bf16[1,128,128], index: 1, kind: input, shape index: {}]   ;;  %s654_s0 = inlined_call_operand.vmem [shape: bf16[1,128,128], index: 0, kind: input, shape index: {}]   ;;  %s655_s2 = inlined_call_operand.vmem [shape: f32[1,1,128], index: 2, kind: input, shape index: {}]   ;;  %s656_s3 = inlined_call_operand.vmem [shape: f32[1,1,128], index: 3, kind: input, shape index: {}]   ;;  %s657_s4 = inlined_call_operand.vmem [shape: bf16[1,128,128], index: 4, kind: output, shape index: {}]  }
   0x1   :  { %v534_v0 = vld [vmem:[%s653_s1] sm:$0xff]   ;;  %v535_v1 = vld [vmem:[%s653_s1 + $0x8] sm:$0xff]   ;;  %v536_v2 = vld [vmem:[%s653_s1 + $0x10] sm:$0xff]  }
   0x2   :  { %486 = vmatprep.subr.bf16.mxu0 %v534_v0  ;;  %518 = vmatprep.subr.bf16.mxu1 %v534_v0  ;;  %v537_v3 = vld [vmem:[%s653_s1 + $0x18] sm:$0xff]   ;;  %v542_v4 = vld [vmem:[%s654_s0] sm:$0xff]   ;;  %v539_v7 = vld [vmem:[%s653_s1 + $0x28] sm:$0xff]  }
   0x3   :  { %487 = vmatpush3.bf16.msra.mxu0 %v534_v0  ;;  %526 = vmatpush3.bf16.msra.mxu1 %v534_v0  ;;  %v543_v5 = vld [vmem:[%s654_s0 + $0x20] sm:$0xff]   ;;  %v540_v8 = vld [vmem:[%s653_s1 + $0x30] sm:$0xff]   ;;  %v541_v9 = vld [vmem:[%s653_s1 + $0x38] sm:$0xff]  }
   0x4   :  { %488 = vmatprep.subr.bf16.mxu0 %v535_v1  ;;  %519 = vmatprep.subr.bf16.mxu1 %v535_v1  ;;  %v538_v6 = vld [vmem:[%s653_s1 + $0x20] sm:$0xff]   ;;  %v544_v10 = vld [vmem:[%s654_s0 + $0x8] sm:$0xff]   ;;  %v546_v12 = vld [vmem:[%s654_s0 + $0x10] sm:$0xff]  }
   0x5   :  { %502 = vmatprep.mubr.bf16.mxu0 %v542_v4  ;;  %510 = vmatprep.mubr.bf16.mxu1 %v543_v5  ;;  %v545_v11 = vld [vmem:[%s654_s0 + $0x28] sm:$0xff]   ;;  %v547_v13 = vld [vmem:[%s654_s0 + $0x30] sm:$0xff]   ;;  %v548_v14 = vld [vmem:[%s654_s0 + $0x18] sm:$0xff]  }
   0x6   :  { %v549_v15 = vld [vmem:[%s654_s0 + $0x38] sm:$0xff]   ;;  %v389_v16 = vld [vmem:[%s655_s2] ss:$0 sm:$0xff] }
   0x7   :  { %489 = vmatpush3.bf16.msra.mxu0 %v535_v1  ;;  %527 = vmatpush3.bf16.msra.mxu1 %v535_v1  ;;  %v390_v23 = vld [vmem:[%s656_s3] ss:$0 sm:$0xff] }
   0x8   :  { %490 = vmatprep.subr.bf16.mxu0 %v536_v2  ;;  %520 = vmatprep.subr.bf16.mxu1 %v536_v2 }
   0xb   :  { %491 = vmatpush3.bf16.msra.mxu0 %v536_v2  ;;  %528 = vmatpush3.bf16.msra.mxu1 %v536_v2 }
   0xc   :  { %492 = vmatprep.subr.bf16.mxu0 %v537_v3  ;;  %521 = vmatprep.subr.bf16.mxu1 %v537_v3 }
   0xf   :  { %493 = vmatpush3.bf16.msra.mxu0 %v537_v3  ;;  %529 = vmatpush3.bf16.msra.mxu1 %v537_v3 }
  0x10   :  { %494 = vmatprep.subr.bf16.mxu0 %v538_v6  ;;  %522 = vmatprep.subr.bf16.mxu1 %v538_v6 }
  0x13   :  { %495 = vmatpush3.bf16.msra.mxu0 %v538_v6  ;;  %530 = vmatpush3.bf16.msra.mxu1 %v538_v6 }
  0x14   :  { %496 = vmatprep.subr.bf16.mxu0 %v539_v7  ;;  %523 = vmatprep.subr.bf16.mxu1 %v539_v7 }
  0x17   :  { %497 = vmatpush3.bf16.msra.mxu0 %v539_v7  ;;  %531 = vmatpush3.bf16.msra.mxu1 %v539_v7 }
  0x18   :  { %498 = vmatprep.subr.bf16.mxu0 %v540_v8  ;;  %524 = vmatprep.subr.bf16.mxu1 %v540_v8 }
  0x1b   :  { %499 = vmatpush3.bf16.msra.mxu0 %v540_v8  ;;  %532 = vmatpush3.bf16.msra.mxu1 %v540_v8 }
  0x1c   :  { %500 = vmatprep.subr.bf16.mxu0 %v541_v9  ;;  %525 = vmatprep.subr.bf16.mxu1 %v541_v9 }
  0x1f   :  { %501 = vmatpush3.bf16.msra.mxu0 %v541_v9  ;;  %533 = vmatpush3.bf16.msra.mxu1 %v541_v9 }
  0x22   :  { %503 = vmatmul.mubr.bf16.vlgmr.msra.gmra.mrb[0].mxu0 %v544_v10  ;;  %511 = vmatmul.mubr.bf16.vlgmr.msra.gmra.mrb[0].mxu1 %v545_v11 }
  0x23   :  { %506 = vmatprep.mubr.bf16.mxu0 %v546_v12  ;;  %514 = vmatprep.mubr.bf16.mxu1 %v547_v13 }
  0x2a   :  { %507 = vmatmul.mubr.bf16.gmra.mrb[4].mxu0 %v548_v14  ;;  %515 = vmatmul.mubr.bf16.gmra.mrb[4].mxu1 %v549_v15 }
  0xf5   :  { %v504_v17 = vpop.f32.mrb[0].mxu0  ;;  %v512_v18 = vpop.f32.mrb[0].mxu1 }
  0xf6   :  { %v252_v19 = vmul.f32 %v504_v17, %v389_v16  ;;  %v260_v20 = vmul.f32 %v512_v18, %v389_v16  ;;  %v180_v21 = vpop.f32.mrb[1].mxu0  ;;  %v212_v22 = vpop.f32.mrb[1].mxu1 }
  0xf7   :  { %v250_v24 = vmul.f32 %v389_v16, %v180_v21  ;;  %v258_v25 = vmul.f32 %v389_v16, %v212_v22  ;;  %v505_v26 = vpop.f32.mrb[2].mxu0  ;;  %v513_v27 = vpop.f32.mrb[2].mxu1 }
  0xf8   :  { %v253_v28 = vmul.f32 %v505_v26, %v389_v16  ;;  %v261_v29 = vmul.f32 %v513_v27, %v389_v16  ;;  %v183_v30 = vpop.f32.mrb[3].mxu0  ;;  %v215_v31 = vpop.f32.mrb[3].mxu1  ;;  %v275_v34 = vadd.f32 %v390_v23, %v252_v19  ;;  %v283_v35 = vadd.f32 %v390_v23, %v260_v20 }
  0xf9   :  { %v251_v32 = vmul.f32 %v389_v16, %v183_v30  ;;  %v259_v33 = vmul.f32 %v389_v16, %v215_v31  ;;  %v273_v38 = vadd.f32 %v390_v23, %v250_v24  ;;  %v281_v39 = vadd.f32 %v390_v23, %v258_v25 }
  0xfa   :  { %v276_v36 = vadd.f32 %v390_v23, %v253_v28  ;;  %v284_v37 = vadd.f32 %v390_v23, %v261_v29 }
  0xfb   :  { %v274_v40 = vadd.f32 %v390_v23, %v251_v32  ;;  %v282_v41 = vadd.f32 %v390_v23, %v259_v33 }
  0xfc   :  { %v431_v42 = vpack.c.bf16 %v276_v36, %v275_v34  ;;  %v451_v43 = vpack.c.bf16 %v284_v37, %v283_v35 }
  0xfd   :  { %v426_v44 = vpack.c.bf16 %v274_v40, %v273_v38  ;;  %v446_v45 = vpack.c.bf16 %v282_v41, %v281_v39  ;;  %v508_v46 = vpop.f32.mrb[4].mxu0  ;;  %v516_v47 = vpop.f32.mrb[4].mxu1 }
  0xfe   :  { %463 = vst [vmem:[%s657_s4 + $0x8] sm:$0xff] %v431_v42   ;;  %467 = vst [vmem:[%s657_s4 + $0x28] sm:$0xff] %v451_v43   ;;  %v256_v48 = vmul.f32 %v508_v46, %v389_v16  ;;  %v264_v49 = vmul.f32 %v516_v47, %v389_v16  ;;  %v196_v50 = vpop.f32.mrb[5].mxu0  ;;  %v228_v51 = vpop.f32.mrb[5].mxu1 }
  0xff   :  { %427 = vst [vmem:[%s657_s4] sm:$0xff] %v426_v44   ;;  %466 = vst [vmem:[%s657_s4 + $0x20] sm:$0xff] %v446_v45   ;;  %v254_v52 = vmul.f32 %v389_v16, %v196_v50  ;;  %v262_v53 = vmul.f32 %v389_v16, %v228_v51  ;;  %v509_v54 = vpop.f32.mrb[6].mxu0  ;;  %v517_v55 = vpop.f32.mrb[6].mxu1 }
 0x100   :  { %v257_v56 = vmul.f32 %v509_v54, %v389_v16  ;;  %v265_v57 = vmul.f32 %v517_v55, %v389_v16  ;;  %v199_v58 = vpop.f32.mrb[7].mxu0  ;;  %v231_v59 = vpop.f32.mrb[7].mxu1  ;;  %v279_v62 = vadd.f32 %v390_v23, %v256_v48  ;;  %v287_v63 = vadd.f32 %v390_v23, %v264_v49 }
 0x101   :  { %v255_v60 = vmul.f32 %v389_v16, %v199_v58  ;;  %v263_v61 = vmul.f32 %v389_v16, %v231_v59  ;;  %v277_v2 = vadd.f32 %v390_v23, %v254_v52  ;;  %v285_v3 = vadd.f32 %v390_v23, %v262_v53 }
 0x102   :  { %v280_v0 = vadd.f32 %v390_v23, %v257_v56  ;;  %v288_v1 = vadd.f32 %v390_v23, %v265_v57 }
 0x103   :  { %v278_v4 = vadd.f32 %v390_v23, %v255_v60  ;;  %v286_v5 = vadd.f32 %v390_v23, %v263_v61 }
 0x104   :  { %v441_v6 = vpack.c.bf16 %v280_v0, %v279_v62  ;;  %v461_v7 = vpack.c.bf16 %v288_v1, %v287_v63 }
 0x105   :  { %v436_v8 = vpack.c.bf16 %v278_v4, %v277_v2  ;;  %v456_v9 = vpack.c.bf16 %v286_v5, %v285_v3 }
 0x106   :  { %465 = vst [vmem:[%s657_s4 + $0x18] sm:$0xff] %v441_v6   ;;  %469 = vst [vmem:[%s657_s4 + $0x38] sm:$0xff] %v461_v7  }
 0x107   :  { %464 = vst [vmem:[%s657_s4 + $0x10] sm:$0xff] %v436_v8   ;;  %468 = vst [vmem:[%s657_s4 + $0x30] sm:$0xff] %v456_v9  }

// kernel: encoder_forward.61
= control target key start
LH: loop header
LB: loop body
LE: loop exit
PB: predicated region body
PF: predicated region fallthrough
CT: control target
= control target key end

     0   :  { %s848_s1 = inlined_call_operand.vmem [shape: bf16[1,128,128], index: 1, kind: input, shape index: {}]   ;;  %s849_s0 = inlined_call_operand.vmem [shape: bf16[1,128,128], index: 0, kind: input, shape index: {}]   ;;  %s850_s4 = inlined_call_operand.vmem [shape: bf16[1,128,128], index: 4, kind: input, shape index: {}]   ;;  %s851_s2 = inlined_call_operand.vmem [shape: f32[1,1,128], index: 2, kind: input, shape index: {}]   ;;  %s852_s3 = inlined_call_operand.vmem [shape: f32[1,1,128], index: 3, kind: input, shape index: {}]   ;;  %s853_s5 = inlined_call_operand.vmem [shape: bf16[1,128,128], index: 5, kind: output, shape index: {}]  }
   0x1   :  { %v640_v0 = vld [vmem:[%s848_s1] sm:$0xff]   ;;  %v641_v1 = vld [vmem:[%s848_s1 + $0x8] sm:$0xff]   ;;  %v642_v2 = vld [vmem:[%s848_s1 + $0x10] sm:$0xff]  }
   0x2   :  { %592 = vmatprep.subr.bf16.mxu0 %v640_v0  ;;  %624 = vmatprep.subr.bf16.mxu1 %v640_v0  ;;  %v643_v3 = vld [vmem:[%s848_s1 + $0x18] sm:$0xff]   ;;  %v648_v4 = vld [vmem:[%s849_s0] sm:$0xff]   ;;  %v645_v7 = vld [vmem:[%s848_s1 + $0x28] sm:$0xff]  }
   0x3   :  { %593 = vmatpush3.bf16.msra.mxu0 %v640_v0  ;;  %632 = vmatpush3.bf16.msra.mxu1 %v640_v0  ;;  %v649_v5 = vld [vmem:[%s849_s0 + $0x20] sm:$0xff]   ;;  %v646_v8 = vld [vmem:[%s848_s1 + $0x30] sm:$0xff]   ;;  %v647_v9 = vld [vmem:[%s848_s1 + $0x38] sm:$0xff]  }
   0x4   :  { %594 = vmatprep.subr.bf16.mxu0 %v641_v1  ;;  %625 = vmatprep.subr.bf16.mxu1 %v641_v1  ;;  %v644_v6 = vld [vmem:[%s848_s1 + $0x20] sm:$0xff]   ;;  %v650_v10 = vld [vmem:[%s849_s0 + $0x8] sm:$0xff]   ;;  %v652_v12 = vld [vmem:[%s849_s0 + $0x10] sm:$0xff]  }
   0x5   :  { %608 = vmatprep.mubr.bf16.mxu0 %v648_v4  ;;  %616 = vmatprep.mubr.bf16.mxu1 %v649_v5  ;;  %v651_v11 = vld [vmem:[%s849_s0 + $0x28] sm:$0xff]   ;;  %v653_v13 = vld [vmem:[%s849_s0 + $0x30] sm:$0xff]   ;;  %v654_v14 = vld [vmem:[%s849_s0 + $0x18] sm:$0xff]  }
   0x6   :  { %v655_v15 = vld [vmem:[%s849_s0 + $0x38] sm:$0xff]   ;;  %v562_v16 = vld [vmem:[%s850_s4 + $0x8] sm:$0xff]   ;;  %v491_v18 = vld [vmem:[%s850_s4] sm:$0xff]  }
   0x7   :  { %595 = vmatpush3.bf16.msra.mxu0 %v641_v1  ;;  %633 = vmatpush3.bf16.msra.mxu1 %v641_v1  ;;  %v566_v17 = vld [vmem:[%s850_s4 + $0x28] sm:$0xff]   ;;  %v565_v19 = vld [vmem:[%s850_s4 + $0x20] sm:$0xff]   ;;  %v754_v21 = vld [vmem:[%s850_s4 + $0x18] sm:$0xff]   ;;  %v496_v23 = vunpack.c.l.bf16 %v562_v16  ;;  %v492_v25 = vunpack.c.l.bf16 %v491_v18  ;;  %v497_v32 = vunpack.c.h.bf16 %v562_v16  ;;  %v493_v34 = vunpack.c.h.bf16 %v491_v18 }
   0x8   :  { %596 = vmatprep.subr.bf16.mxu0 %v642_v2  ;;  %626 = vmatprep.subr.bf16.mxu1 %v642_v2  ;;  %v749_v20 = vld [vmem:[%s851_s2] ss:$0 sm:$0xff]  ;;  %v759_v22 = vld [vmem:[%s850_s4 + $0x38] sm:$0xff]   ;;  %v512_v24 = vunpack.c.l.bf16 %v566_v17  ;;  %v508_v26 = vunpack.c.l.bf16 %v565_v19  ;;  %v764_v27 = vld [vmem:[%s850_s4 + $0x10] sm:$0xff]   ;;  %v513_v33 = vunpack.c.h.bf16 %v566_v17  ;;  %v509_v35 = vunpack.c.h.bf16 %v565_v19 }
   0x9   :  { %v769_v28 = vld [vmem:[%s850_s4 + $0x30] sm:$0xff]   ;;  %v774_v30 = vld [vmem:[%s852_s3] ss:$0 sm:$0xff]  ;;  %v504_v40 = vunpack.c.l.bf16 %v754_v21  ;;  %v520_v41 = vunpack.c.l.bf16 %v759_v22  ;;  %v500_v46 = vunpack.c.l.bf16 %v764_v27 }
   0xa   :  { %v516_v47 = vunpack.c.l.bf16 %v769_v28 }
   0xb   :  { %597 = vmatpush3.bf16.msra.mxu0 %v642_v2  ;;  %634 = vmatpush3.bf16.msra.mxu1 %v642_v2 }
   0xc   :  { %598 = vmatprep.subr.bf16.mxu0 %v643_v3  ;;  %627 = vmatprep.subr.bf16.mxu1 %v643_v3 }
   0xf   :  { %599 = vmatpush3.bf16.msra.mxu0 %v643_v3  ;;  %635 = vmatpush3.bf16.msra.mxu1 %v643_v3 }
  0x10   :  { %600 = vmatprep.subr.bf16.mxu0 %v644_v6  ;;  %628 = vmatprep.subr.bf16.mxu1 %v644_v6 }
  0x13   :  { %601 = vmatpush3.bf16.msra.mxu0 %v644_v6  ;;  %636 = vmatpush3.bf16.msra.mxu1 %v644_v6 }
  0x14   :  { %602 = vmatprep.subr.bf16.mxu0 %v645_v7  ;;  %629 = vmatprep.subr.bf16.mxu1 %v645_v7 }
  0x17   :  { %603 = vmatpush3.bf16.msra.mxu0 %v645_v7  ;;  %637 = vmatpush3.bf16.msra.mxu1 %v645_v7 }
  0x18   :  { %604 = vmatprep.subr.bf16.mxu0 %v646_v8  ;;  %630 = vmatprep.subr.bf16.mxu1 %v646_v8 }
  0x1b   :  { %605 = vmatpush3.bf16.msra.mxu0 %v646_v8  ;;  %638 = vmatpush3.bf16.msra.mxu1 %v646_v8 }
  0x1c   :  { %606 = vmatprep.subr.bf16.mxu0 %v647_v9  ;;  %631 = vmatprep.subr.bf16.mxu1 %v647_v9 }
  0x1f   :  { %607 = vmatpush3.bf16.msra.mxu0 %v647_v9  ;;  %639 = vmatpush3.bf16.msra.mxu1 %v647_v9 }
  0x22   :  { %609 = vmatmul.mubr.bf16.vlgmr.msra.gmra.mrb[0].mxu0 %v650_v10  ;;  %617 = vmatmul.mubr.bf16.vlgmr.msra.gmra.mrb[0].mxu1 %v651_v11 }
  0x23   :  { %612 = vmatprep.mubr.bf16.mxu0 %v652_v12  ;;  %620 = vmatprep.mubr.bf16.mxu1 %v653_v13 }
  0x2a   :  { %613 = vmatmul.mubr.bf16.gmra.mrb[4].mxu0 %v654_v14  ;;  %621 = vmatmul.mubr.bf16.gmra.mrb[4].mxu1 %v655_v15 }
  0xf5   :  { %v610_v29 = vpop.f32.mrb[0].mxu0  ;;  %v618_v31 = vpop.f32.mrb[0].mxu1 }
  0xf6   :  { %v255_v36 = vmul.f32 %v610_v29, %v749_v20  ;;  %v263_v37 = vmul.f32 %v618_v31, %v749_v20  ;;  %v183_v38 = vpop.f32.mrb[1].mxu0  ;;  %v215_v39 = vpop.f32.mrb[1].mxu1 }
  0xf7   :  { %v253_v42 = vmul.f32 %v749_v20, %v183_v38  ;;  %v261_v43 = vmul.f32 %v749_v20, %v215_v39  ;;  %v611_v44 = vpop.f32.mrb[2].mxu0  ;;  %v619_v45 = vpop.f32.mrb[2].mxu1 }
  0xf8   :  { %v278_v48 = vadd.f32 %v774_v30, %v255_v36  ;;  %v286_v49 = vadd.f32 %v774_v30, %v263_v37  ;;  %v256_v50 = vmul.f32 %v611_v44, %v749_v20  ;;  %v264_v51 = vmul.f32 %v619_v45, %v749_v20  ;;  %v186_v52 = vpop.f32.mrb[3].mxu0  ;;  %v218_v53 = vpop.f32.mrb[3].mxu1 }
  0xf9   :  { %v276_v54 = vadd.f32 %v774_v30, %v253_v42  ;;  %v284_v55 = vadd.f32 %v774_v30, %v261_v43  ;;  %v254_v56 = vmul.f32 %v749_v20, %v186_v52  ;;  %v262_v57 = vmul.f32 %v749_v20, %v218_v53 }
  0xfa   :  { %v326_v58 = vadd.f32 %v496_v23, %v278_v48  ;;  %v334_v59 = vadd.f32 %v512_v24, %v286_v49  ;;  %v279_v60 = vadd.f32 %v774_v30, %v256_v50  ;;  %v287_v61 = vadd.f32 %v774_v30, %v264_v51 }
  0xfb   :  { %v324_v62 = vadd.f32 %v492_v25, %v276_v54  ;;  %v332_v63 = vadd.f32 %v508_v26, %v284_v55  ;;  %v277_v0 = vadd.f32 %v774_v30, %v254_v56  ;;  %v285_v1 = vadd.f32 %v774_v30, %v262_v57 }
  0xfc   :  { %v342_v2 = vmax.f32 %v326_v58, 0.0  ;;  %v350_v3 = vmax.f32 %v334_v59, 0.0  ;;  %v327_v4 = vadd.f32 %v497_v32, %v279_v60  ;;  %v335_v5 = vadd.f32 %v513_v33, %v287_v61 }
  0xfd   :  { %v340_v6 = vmax.f32 %v324_v62, 0.0  ;;  %v348_v7 = vmax.f32 %v332_v63, 0.0  ;;  %v325_v8 = vadd.f32 %v493_v34, %v277_v0  ;;  %v333_v9 = vadd.f32 %v509_v35, %v285_v1  ;;  %v614_v10 = vpop.f32.mrb[4].mxu0  ;;  %v622_v11 = vpop.f32.mrb[4].mxu1 }
  0xfe   :  { %v343_v12 = vmax.f32 %v327_v4, 0.0  ;;  %v351_v13 = vmax.f32 %v335_v5, 0.0  ;;  %v259_v14 = vmul.f32 %v614_v10, %v749_v20  ;;  %v267_v15 = vmul.f32 %v622_v11, %v749_v20  ;;  %v199_v16 = vpop.f32.mrb[5].mxu0  ;;  %v231_v17 = vpop.f32.mrb[5].mxu1 }
  0xff   :  { %v341_v18 = vmax.f32 %v325_v8, 0.0  ;;  %v349_v19 = vmax.f32 %v333_v9, 0.0  ;;  %v257_v23 = vmul.f32 %v749_v20, %v199_v16  ;;  %v265_v24 = vmul.f32 %v749_v20, %v231_v17  ;;  %v615_v25 = vpop.f32.mrb[6].mxu0  ;;  %v623_v26 = vpop.f32.mrb[6].mxu1 }
 0x100   :  { %v530_v29 = vpack.c.bf16 %v343_v12, %v342_v2  ;;  %v550_v31 = vpack.c.bf16 %v351_v13, %v350_v3  ;;  %v282_v32 = vadd.f32 %v774_v30, %v259_v14  ;;  %v290_v33 = vadd.f32 %v774_v30, %v267_v15  ;;  %v202_v34 = vpop.f32.mrb[7].mxu0  ;;  %v234_v35 = vpop.f32.mrb[7].mxu1 }
 0x101   :  { %v525_v36 = vpack.c.bf16 %v341_v18, %v340_v6  ;;  %v545_v37 = vpack.c.bf16 %v349_v19, %v348_v7  ;;  %v280_v38 = vadd.f32 %v774_v30, %v257_v23  ;;  %v288_v39 = vadd.f32 %v774_v30, %v265_v24 }
 0x102   :  { %569 = vst [vmem:[%s853_s5 + $0x8] sm:$0xff] %v530_v29   ;;  %573 = vst [vmem:[%s853_s5 + $0x28] sm:$0xff] %v550_v31   ;;  %v260_v42 = vmul.f32 %v615_v25, %v749_v20  ;;  %v505_v43 = vunpack.c.h.bf16 %v754_v21  ;;  %v268_v44 = vmul.f32 %v623_v26, %v749_v20  ;;  %v521_v45 = vunpack.c.h.bf16 %v759_v22 }
 0x103   :  { %526 = vst [vmem:[%s853_s5] sm:$0xff] %v525_v36   ;;  %572 = vst [vmem:[%s853_s5 + $0x20] sm:$0xff] %v545_v37   ;;  %v258_v48 = vmul.f32 %v749_v20, %v202_v34  ;;  %v501_v49 = vunpack.c.h.bf16 %v764_v27  ;;  %v266_v50 = vmul.f32 %v749_v20, %v234_v35  ;;  %v517_v51 = vunpack.c.h.bf16 %v769_v28 }
 0x104   :  { %v330_v52 = vadd.f32 %v504_v40, %v282_v32  ;;  %v338_v53 = vadd.f32 %v520_v41, %v290_v33  ;;  %v283_v54 = vadd.f32 %v774_v30, %v260_v42  ;;  %v291_v55 = vadd.f32 %v774_v30, %v268_v44 }
 0x105   :  { %v328_v56 = vadd.f32 %v500_v46, %v280_v38  ;;  %v336_v57 = vadd.f32 %v516_v47, %v288_v39  ;;  %v281_v20 = vadd.f32 %v774_v30, %v258_v48  ;;  %v289_v58 = vadd.f32 %v774_v30, %v266_v50 }
 0x106   :  { %v331_v59 = vadd.f32 %v505_v43, %v283_v54  ;;  %v339_v21 = vadd.f32 %v521_v45, %v291_v55  ;;  %v346_v22 = vmax.f32 %v330_v52, 0.0  ;;  %v354_v41 = vmax.f32 %v338_v53, 0.0 }
 0x107   :  { %v329_v40 = vadd.f32 %v501_v49, %v281_v20  ;;  %v337_v60 = vadd.f32 %v517_v51, %v289_v58  ;;  %v344_v63 = vmax.f32 %v328_v56, 0.0  ;;  %v352_v0 = vmax.f32 %v336_v57, 0.0 }
 0x108   :  { %v347_v61 = vmax.f32 %v331_v59, 0.0  ;;  %v355_v62 = vmax.f32 %v339_v21, 0.0 }
 0x109   :  { %v345_v1 = vmax.f32 %v329_v40, 0.0  ;;  %v353_v27 = vmax.f32 %v337_v60, 0.0 }
 0x10a   :  { %v540_v46 = vpack.c.bf16 %v347_v61, %v346_v22  ;;  %v560_v2 = vpack.c.bf16 %v355_v62, %v354_v41 }
 0x10b   :  { %v535_v28 = vpack.c.bf16 %v345_v1, %v344_v63  ;;  %v555_v47 = vpack.c.bf16 %v353_v27, %v352_v0 }
 0x10c   :  { %571 = vst [vmem:[%s853_s5 + $0x18] sm:$0xff] %v540_v46   ;;  %575 = vst [vmem:[%s853_s5 + $0x38] sm:$0xff] %v560_v2  }
 0x10d   :  { %570 = vst [vmem:[%s853_s5 + $0x10] sm:$0xff] %v535_v28   ;;  %574 = vst [vmem:[%s853_s5 + $0x30] sm:$0xff] %v555_v47  }

// kernel: encoder_forward.69
= control target key start
LH: loop header
LB: loop body
LE: loop exit
PB: predicated region body
PF: predicated region fallthrough
CT: control target
= control target key end

     0   :  { %s811_s15 = smov 0   ;;  %s813_s16 = smov 0   ;;  %s863_s0 = inlined_call_operand.vmem [shape: bf16[2,32,128], index: 0, kind: input, shape index: {}]   ;;  %s864_s1 = inlined_call_operand.vmem [shape: bf16[2,128,128], index: 1, kind: input, shape index: {}]   ;;  %s865_s2 = inlined_call_operand.vmem [shape: f32[2,1,128], index: 2, kind: input, shape index: {}]   ;;  %s866_s3 = inlined_call_operand.vmem [shape: f32[2,1,128], index: 3, kind: input, shape index: {}]   ;;  %s867_s4 = inlined_call_operand.vmem [shape: bf16[2,32,128], index: 4, kind: output, shape index: {}]  }
   0x1   :  { %s815_s17 = smov 0  }
   0x2 LB: > { %s33_s18 = sadd.s32 1, %s780_s16  ;;  %p655_p0 = scmp.ge.s32.totalorder %s784_s17, 1  ;;  %s784_s17 = sphi %s815_s17, %s14_s17   ;;  %s780_s16 = sphi %s813_s16, %s869_s16   ;;  %s776_s15 = sphi %s811_s15, %s868_s15  }
   0x3   : > { %p35_p1 = scmp.ge.s32.totalorder %s33_s18, 2  ;;  %p233_p2 = scmp.lt.s32.totalorder %s784_s17, 3 }
   0x5   : > { %s871_s18 = smov (%p35_p1, %s33_s18), 0  ;;  %p234_p3 = pnand %p655_p0, %p233_p2 }
   0x6   : > { %p291_p4 = scmp.lt.s32.totalorder (!%p234_p3), %s776_s15, 1 }
   0x7   : > { %237 = sbr.rel (%p234_p3) target bundleno = 274 (0x112), region = 36 }
   0xe   : > { %s873_s15 = smov (!%p291_p4, %s776_s15), 1 }
   0xf   : > { %s681_s19 = sshll.u32 %s873_s15, 6  ;;  %s680_s23 = sshll.u32 %s873_s15, 4 }
  0x10   : > { %s307_s22 = scalar_lea.vmem %s864_s1, %s681_s19  ;;  %s298_s26 = scalar_lea.vmem %s863_s0, %s680_s23 }
  0x11   : > { %v752_v0 = vld [vmem:[%s307_s22] sm:$0xff]   ;;  %v753_v1 = vld [vmem:[%s307_s22 + $0x8] sm:$0xff]   ;;  %v754_v2 = vld [vmem:[%s307_s22 + $0x10] sm:$0xff]   ;;  %s313_s29 = scalar_lea.vmem %s865_s2, %s873_s15  ;;  %s319_s6 = scalar_lea.vmem %s866_s3, %s873_s15 }
  0x12   : > { %708 = vmatprep.subr.bf16.mxu0 %v752_v0  ;;  %v755_v3 = vld [vmem:[%s307_s22 + $0x18] sm:$0xff]   ;;  %v760_v4 = vld [vmem:[%s298_s26] sm:$0xff]   ;;  %v757_v6 = vld [vmem:[%s307_s22 + $0x28] sm:$0xff]   ;;  %s331_s9 = scalar_lea.vmem %s867_s4, %s680_s23 }
  0x13   : > { %709 = vmatpush3.bf16.msra.mxu0 %v752_v0  ;;  %724 = vmatprep.mubr.bf16.mxu0 %v760_v4  ;;  %v756_v5 = vld [vmem:[%s307_s22 + $0x20] sm:$0xff]   ;;  %v758_v7 = vld [vmem:[%s307_s22 + $0x30] sm:$0xff]   ;;  %v759_v8 = vld [vmem:[%s307_s22 + $0x38] sm:$0xff]  }
  0x14   : > { %710 = vmatprep.subr.bf16.mxu0 %v753_v1  ;;  %v761_v9 = vld [vmem:[%s298_s26 + $0x8] sm:$0xff]   ;;  %v672_v10 = vld [vmem:[%s313_s29] ss:$0 sm:$0xff] }
  0x15   : > { %v673_v12 = vld [vmem:[%s319_s6] ss:$0 sm:$0xff] }
  0x17   : > { %711 = vmatpush3.bf16.msra.mxu0 %v753_v1 }
  0x18   : > { %712 = vmatprep.subr.bf16.mxu0 %v754_v2 }
  0x1b   : > { %713 = vmatpush3.bf16.msra.mxu0 %v754_v2 }
  0x1c   : > { %714 = vmatprep.subr.bf16.mxu0 %v755_v3 }
  0x1f   : > { %715 = vmatpush3.bf16.msra.mxu0 %v755_v3 }
  0x20   : > { %716 = vmatprep.subr.bf16.mxu0 %v756_v5 }
  0x23   : > { %717 = vmatpush3.bf16.msra.mxu0 %v756_v5 }
  0x24   : > { %718 = vmatprep.subr.bf16.mxu0 %v757_v6 }
  0x27   : > { %719 = vmatpush3.bf16.msra.mxu0 %v757_v6 }
  0x28   : > { %720 = vmatprep.subr.bf16.mxu0 %v758_v7 }
  0x2b   : > { %721 = vmatpush3.bf16.msra.mxu0 %v758_v7 }
  0x2c   : > { %722 = vmatprep.subr.bf16.mxu0 %v759_v8 }
  0x2f   : > { %723 = vmatpush3.bf16.msra.mxu0 %v759_v8 }
  0x32   : > { %725 = vmatmul.mubr.bf16.vlgmr.msra.gmra.mrb[0].mxu0 %v761_v9 }
 0x105   : > { %v726_v11 = vpop.f32.mrb[0].mxu0 }
 0x106   : > { %v472_v13 = vmul.f32 %v726_v11, %v672_v10  ;;  %v448_v14 = vpop.f32.mrb[1].mxu0 }
 0x107   : > { %v470_v15 = vmul.f32 %v672_v10, %v448_v14  ;;  %v727_v16 = vpop.f32.mrb[2].mxu0 }
 0x108   : > { %v483_v17 = vadd.f32 %v673_v12, %v472_v13  ;;  %v473_v18 = vmul.f32 %v727_v16, %v672_v10  ;;  %v451_v19 = vpop.f32.mrb[3].mxu0 }
 0x109   : > { %v481_v20 = vadd.f32 %v673_v12, %v470_v15  ;;  %v471_v21 = vmul.f32 %v672_v10, %v451_v19 }
 0x10a   : > { %v484_v22 = vadd.f32 %v673_v12, %v473_v18  ;;  %v487_v24 = vmax.f32 %v483_v17, 0.0 }
 0x10b   : > { %v482_v23 = vadd.f32 %v673_v12, %v471_v21  ;;  %v485_v26 = vmax.f32 %v481_v20, 0.0 }
 0x10c   : > { %v488_v25 = vmax.f32 %v484_v22, 0.0 }
 0x10d   : > { %v486_v27 = vmax.f32 %v482_v23, 0.0 }
 0x10e   : > { %v695_v28 = vpack.c.bf16 %v488_v25, %v487_v24 }
 0x10f   : > { %v690_v29 = vpack.c.bf16 %v486_v27, %v485_v26 }
 0x110   : > { %697 = vst [vmem:[%s331_s9 + $0x8] sm:$0xff] %v695_v28  }
 0x111   : > { %691 = vst [vmem:[%s331_s9] sm:$0xff] %v690_v29  }
 0x112 PF: > { %s14_s17 = sadd.s32 1, %s784_s17   ;;  %s868_s15 = smov %s780_s16 }
 0x113   : > { %p11_p5 = scmp.ge.s32.totalorder %s14_s17, 4   ;;  %s869_s16 = smov %s871_s18 }
 0x115   :  { %13 = sbr.rel (!%p11_p5) target bundleno = 2 (0x2), region = 75 }

// kernel: encoder_forward.72
= control target key start
LH: loop header
LB: loop body
LE: loop exit
PB: predicated region body
PF: predicated region fallthrough
CT: control target
= control target key end

     0   :  { %s335_s1 = inlined_call_operand.vmem [shape: bf16[1,128,128], index: 1, kind: input, shape index: {}]   ;;  %s336_s0 = inlined_call_operand.vmem [shape: bf16[1,32,128], index: 0, kind: input, shape index: {}]   ;;  %s337_s2 = inlined_call_operand.vmem [shape: f32[1,1,128], index: 2, kind: input, shape index: {}]   ;;  %s338_s3 = inlined_call_operand.vmem [shape: f32[1,1,128], index: 3, kind: input, shape index: {}]   ;;  %s339_s4 = inlined_call_operand.vmem [shape: bf16[1,32,128], index: 4, kind: output, shape index: {}]  }
   0x1   :  { %v258_v0 = vld [vmem:[%s335_s1] sm:$0xff]   ;;  %v259_v1 = vld [vmem:[%s335_s1 + $0x8] sm:$0xff]   ;;  %v260_v2 = vld [vmem:[%s335_s1 + $0x10] sm:$0xff]  }
   0x2   :  { %238 = vmatprep.subr.bf16.mxu0 %v258_v0  ;;  %v261_v3 = vld [vmem:[%s335_s1 + $0x18] sm:$0xff]   ;;  %v266_v4 = vld [vmem:[%s336_s0] sm:$0xff]   ;;  %v263_v6 = vld [vmem:[%s335_s1 + $0x28] sm:$0xff]  }
   0x3   :  { %239 = vmatpush3.bf16.msra.mxu0 %v258_v0  ;;  %254 = vmatprep.mubr.bf16.mxu0 %v266_v4  ;;  %v262_v5 = vld [vmem:[%s335_s1 + $0x20] sm:$0xff]   ;;  %v264_v7 = vld [vmem:[%s335_s1 + $0x30] sm:$0xff]   ;;  %v265_v8 = vld [vmem:[%s335_s1 + $0x38] sm:$0xff]  }
   0x4   :  { %240 = vmatprep.subr.bf16.mxu0 %v259_v1  ;;  %v267_v9 = vld [vmem:[%s336_s0 + $0x8] sm:$0xff]   ;;  %v207_v10 = vld [vmem:[%s337_s2] ss:$0 sm:$0xff] }
   0x5   :  { %v208_v12 = vld [vmem:[%s338_s3] ss:$0 sm:$0xff] }
   0x7   :  { %241 = vmatpush3.bf16.msra.mxu0 %v259_v1 }
   0x8   :  { %242 = vmatprep.subr.bf16.mxu0 %v260_v2 }
   0xb   :  { %243 = vmatpush3.bf16.msra.mxu0 %v260_v2 }
   0xc   :  { %244 = vmatprep.subr.bf16.mxu0 %v261_v3 }
   0xf   :  { %245 = vmatpush3.bf16.msra.mxu0 %v261_v3 }
  0x10   :  { %246 = vmatprep.subr.bf16.mxu0 %v262_v5 }
  0x13   :  { %247 = vmatpush3.bf16.msra.mxu0 %v262_v5 }
  0x14   :  { %248 = vmatprep.subr.bf16.mxu0 %v263_v6 }
  0x17   :  { %249 = vmatpush3.bf16.msra.mxu0 %v263_v6 }
  0x18   :  { %250 = vmatprep.subr.bf16.mxu0 %v264_v7 }
  0x1b   :  { %251 = vmatpush3.bf16.msra.mxu0 %v264_v7 }
  0x1c   :  { %252 = vmatprep.subr.bf16.mxu0 %v265_v8 }
  0x1f   :  { %253 = vmatpush3.bf16.msra.mxu0 %v265_v8 }
  0x22   :  { %255 = vmatmul.mubr.bf16.vlgmr.msra.gmra.mrb[0].mxu0 %v267_v9 }
  0xf5   :  { %v256_v11 = vpop.f32.mrb[0].mxu0 }
  0xf6   :  { %v156_v13 = vmul.f32 %v256_v11, %v207_v10  ;;  %v132_v14 = vpop.f32.mrb[1].mxu0 }
  0xf7   :  { %v154_v15 = vmul.f32 %v207_v10, %v132_v14  ;;  %v257_v16 = vpop.f32.mrb[2].mxu0 }
  0xf8   :  { %v167_v17 = vadd.f32 %v208_v12, %v156_v13  ;;  %v157_v18 = vmul.f32 %v257_v16, %v207_v10  ;;  %v135_v19 = vpop.f32.mrb[3].mxu0 }
  0xf9   :  { %v165_v20 = vadd.f32 %v208_v12, %v154_v15  ;;  %v155_v21 = vmul.f32 %v207_v10, %v135_v19 }
  0xfa   :  { %v168_v22 = vadd.f32 %v208_v12, %v157_v18  ;;  %v171_v24 = vmax.f32 %v167_v17, 0.0 }
  0xfb   :  { %v166_v23 = vadd.f32 %v208_v12, %v155_v21  ;;  %v169_v26 = vmax.f32 %v165_v20, 0.0 }
  0xfc   :  { %v172_v25 = vmax.f32 %v168_v22, 0.0 }
  0xfd   :  { %v170_v27 = vmax.f32 %v166_v23, 0.0 }
  0xfe   :  { %v225_v28 = vpack.c.bf16 %v172_v25, %v171_v24 }
  0xff   :  { %v220_v29 = vpack.c.bf16 %v170_v27, %v169_v26 }
 0x100   :  { %227 = vst [vmem:[%s339_s4 + $0x8] sm:$0xff] %v225_v28  }
 0x101   :  { %221 = vst [vmem:[%s339_s4] sm:$0xff] %v220_v29  }

// kernel: encoder_forward.70
= control target key start
LH: loop header
LB: loop body
LE: loop exit
PB: predicated region body
PF: predicated region fallthrough
CT: control target
= control target key end

     0   :  { %s331_s1 = inlined_call_operand.vmem [shape: bf16[1,128,128], index: 1, kind: input, shape index: {}]   ;;  %s332_s0 = inlined_call_operand.vmem [shape: bf16[1,32,128], index: 0, kind: input, shape index: {}]   ;;  %s333_s2 = inlined_call_operand.vmem [shape: f32[1,1,128], index: 2, kind: input, shape index: {}]   ;;  %s334_s3 = inlined_call_operand.vmem [shape: f32[1,1,128], index: 3, kind: input, shape index: {}]   ;;  %s335_s4 = inlined_call_operand.vmem [shape: bf16[1,32,128], index: 4, kind: output, shape index: {}]  }
   0x1   :  { %v254_v0 = vld [vmem:[%s331_s1] sm:$0xff]   ;;  %v255_v1 = vld [vmem:[%s331_s1 + $0x8] sm:$0xff]   ;;  %v256_v2 = vld [vmem:[%s331_s1 + $0x10] sm:$0xff]  }
   0x2   :  { %234 = vmatprep.subr.bf16.mxu0 %v254_v0  ;;  %v257_v3 = vld [vmem:[%s331_s1 + $0x18] sm:$0xff]   ;;  %v262_v4 = vld [vmem:[%s332_s0] sm:$0xff]   ;;  %v259_v6 = vld [vmem:[%s331_s1 + $0x28] sm:$0xff]  }
   0x3   :  { %235 = vmatpush3.bf16.msra.mxu0 %v254_v0  ;;  %250 = vmatprep.mubr.bf16.mxu0 %v262_v4  ;;  %v258_v5 = vld [vmem:[%s331_s1 + $0x20] sm:$0xff]   ;;  %v260_v7 = vld [vmem:[%s331_s1 + $0x30] sm:$0xff]   ;;  %v261_v8 = vld [vmem:[%s331_s1 + $0x38] sm:$0xff]  }
   0x4   :  { %236 = vmatprep.subr.bf16.mxu0 %v255_v1  ;;  %v263_v9 = vld [vmem:[%s332_s0 + $0x8] sm:$0xff]   ;;  %v203_v10 = vld [vmem:[%s333_s2] ss:$0 sm:$0xff] }
   0x5   :  { %v204_v14 = vld [vmem:[%s334_s3] ss:$0 sm:$0xff] }
   0x7   :  { %237 = vmatpush3.bf16.msra.mxu0 %v255_v1 }
   0x8   :  { %238 = vmatprep.subr.bf16.mxu0 %v256_v2 }
   0xb   :  { %239 = vmatpush3.bf16.msra.mxu0 %v256_v2 }
   0xc   :  { %240 = vmatprep.subr.bf16.mxu0 %v257_v3 }
   0xf   :  { %241 = vmatpush3.bf16.msra.mxu0 %v257_v3 }
  0x10   :  { %242 = vmatprep.subr.bf16.mxu0 %v258_v5 }
  0x13   :  { %243 = vmatpush3.bf16.msra.mxu0 %v258_v5 }
  0x14   :  { %244 = vmatprep.subr.bf16.mxu0 %v259_v6 }
  0x17   :  { %245 = vmatpush3.bf16.msra.mxu0 %v259_v6 }
  0x18   :  { %246 = vmatprep.subr.bf16.mxu0 %v260_v7 }
  0x1b   :  { %247 = vmatpush3.bf16.msra.mxu0 %v260_v7 }
  0x1c   :  { %248 = vmatprep.subr.bf16.mxu0 %v261_v8 }
  0x1f   :  { %249 = vmatpush3.bf16.msra.mxu0 %v261_v8 }
  0x22   :  { %251 = vmatmul.mubr.bf16.vlgmr.msra.gmra.mrb[0].mxu0 %v263_v9 }
  0xf5   :  { %v252_v11 = vpop.f32.mrb[0].mxu0 }
  0xf6   :  { %v156_v12 = vmul.f32 %v252_v11, %v203_v10  ;;  %v132_v13 = vpop.f32.mrb[1].mxu0 }
  0xf7   :  { %v154_v15 = vmul.f32 %v203_v10, %v132_v13  ;;  %v253_v16 = vpop.f32.mrb[2].mxu0 }
  0xf8   :  { %v157_v17 = vmul.f32 %v253_v16, %v203_v10  ;;  %v135_v18 = vpop.f32.mrb[3].mxu0  ;;  %v167_v20 = vadd.f32 %v204_v14, %v156_v12 }
  0xf9   :  { %v155_v19 = vmul.f32 %v203_v10, %v135_v18  ;;  %v165_v22 = vadd.f32 %v204_v14, %v154_v15 }
  0xfa   :  { %v168_v21 = vadd.f32 %v204_v14, %v157_v17 }
  0xfb   :  { %v166_v23 = vadd.f32 %v204_v14, %v155_v19 }
  0xfc   :  { %v221_v24 = vpack.c.bf16 %v168_v21, %v167_v20 }
  0xfd   :  { %v216_v25 = vpack.c.bf16 %v166_v23, %v165_v22 }
  0xfe   :  { %223 = vst [vmem:[%s335_s4 + $0x8] sm:$0xff] %v221_v24  }
  0xff   :  { %217 = vst [vmem:[%s335_s4] sm:$0xff] %v216_v25  }

// kernel: encoder_forward.71
= control target key start
LH: loop header
LB: loop body
LE: loop exit
PB: predicated region body
PF: predicated region fallthrough
CT: control target
= control target key end

     0   :  { %s370_s1 = inlined_call_operand.vmem [shape: bf16[1,128,128], index: 1, kind: input, shape index: {}]   ;;  %s371_s0 = inlined_call_operand.vmem [shape: bf16[1,32,128], index: 0, kind: input, shape index: {}]   ;;  %s372_s2 = inlined_call_operand.vmem [shape: f32[1,1,128], index: 2, kind: input, shape index: {}]   ;;  %s373_s4 = inlined_call_operand.vmem [shape: bf16[1,32,128], index: 4, kind: input, shape index: {}]   ;;  %s374_s3 = inlined_call_operand.vmem [shape: f32[1,1,128], index: 3, kind: input, shape index: {}]   ;;  %s375_s5 = inlined_call_operand.vmem [shape: bf16[1,32,128], index: 5, kind: output, shape index: {}]  }
   0x1   :  { %v282_v0 = vld [vmem:[%s370_s1] sm:$0xff]   ;;  %v283_v1 = vld [vmem:[%s370_s1 + $0x8] sm:$0xff]   ;;  %v284_v2 = vld [vmem:[%s370_s1 + $0x10] sm:$0xff]  }
   0x2   :  { %262 = vmatprep.subr.bf16.mxu0 %v282_v0  ;;  %v285_v3 = vld [vmem:[%s370_s1 + $0x18] sm:$0xff]   ;;  %v290_v4 = vld [vmem:[%s371_s0] sm:$0xff]   ;;  %v287_v6 = vld [vmem:[%s370_s1 + $0x28] sm:$0xff]  }
   0x3   :  { %263 = vmatpush3.bf16.msra.mxu0 %v282_v0  ;;  %278 = vmatprep.mubr.bf16.mxu0 %v290_v4  ;;  %v286_v5 = vld [vmem:[%s370_s1 + $0x20] sm:$0xff]   ;;  %v288_v7 = vld [vmem:[%s370_s1 + $0x30] sm:$0xff]   ;;  %v289_v8 = vld [vmem:[%s370_s1 + $0x38] sm:$0xff]  }
   0x4   :  { %264 = vmatprep.subr.bf16.mxu0 %v283_v1  ;;  %v291_v9 = vld [vmem:[%s371_s0 + $0x8] sm:$0xff]   ;;  %v222_v10 = vld [vmem:[%s372_s2] ss:$0 sm:$0xff] }
   0x5   :  { %v250_v11 = vld [vmem:[%s373_s4 + $0x8] sm:$0xff]   ;;  %v233_v12 = vld [vmem:[%s373_s4] sm:$0xff]  }
   0x6   :  { %v223_v14 = vld [vmem:[%s374_s3] ss:$0 sm:$0xff]  ;;  %v238_v16 = vunpack.c.l.bf16 %v250_v11  ;;  %v234_v19 = vunpack.c.l.bf16 %v233_v12  ;;  %v239_v23 = vunpack.c.h.bf16 %v250_v11  ;;  %v235_v27 = vunpack.c.h.bf16 %v233_v12 }
   0x7   :  { %265 = vmatpush3.bf16.msra.mxu0 %v283_v1 }
   0x8   :  { %266 = vmatprep.subr.bf16.mxu0 %v284_v2 }
   0xb   :  { %267 = vmatpush3.bf16.msra.mxu0 %v284_v2 }
   0xc   :  { %268 = vmatprep.subr.bf16.mxu0 %v285_v3 }
   0xf   :  { %269 = vmatpush3.bf16.msra.mxu0 %v285_v3 }
  0x10   :  { %270 = vmatprep.subr.bf16.mxu0 %v286_v5 }
  0x13   :  { %271 = vmatpush3.bf16.msra.mxu0 %v286_v5 }
  0x14   :  { %272 = vmatprep.subr.bf16.mxu0 %v287_v6 }
  0x17   :  { %273 = vmatpush3.bf16.msra.mxu0 %v287_v6 }
  0x18   :  { %274 = vmatprep.subr.bf16.mxu0 %v288_v7 }
  0x1b   :  { %275 = vmatpush3.bf16.msra.mxu0 %v288_v7 }
  0x1c   :  { %276 = vmatprep.subr.bf16.mxu0 %v289_v8 }
  0x1f   :  { %277 = vmatpush3.bf16.msra.mxu0 %v289_v8 }
  0x22   :  { %279 = vmatmul.mubr.bf16.vlgmr.msra.gmra.mrb[0].mxu0 %v291_v9 }
  0xf5   :  { %v280_v13 = vpop.f32.mrb[0].mxu0 }
  0xf6   :  { %v159_v15 = vmul.f32 %v280_v13, %v222_v10  ;;  %v135_v17 = vpop.f32.mrb[1].mxu0 }
  0xf7   :  { %v157_v18 = vmul.f32 %v222_v10, %v135_v17  ;;  %v281_v20 = vpop.f32.mrb[2].mxu0 }
  0xf8   :  { %v170_v21 = vadd.f32 %v223_v14, %v159_v15  ;;  %v160_v22 = vmul.f32 %v281_v20, %v222_v10  ;;  %v138_v24 = vpop.f32.mrb[3].mxu0 }
  0xf9   :  { %v168_v25 = vadd.f32 %v223_v14, %v157_v18  ;;  %v158_v26 = vmul.f32 %v222_v10, %v138_v24 }
  0xfa   :  { %v182_v28 = vadd.f32 %v238_v16, %v170_v21  ;;  %v171_v29 = vadd.f32 %v223_v14, %v160_v22 }
  0xfb   :  { %v180_v30 = vadd.f32 %v234_v19, %v168_v25  ;;  %v169_v31 = vadd.f32 %v223_v14, %v158_v26 }
  0xfc   :  { %v183_v32 = vadd.f32 %v239_v23, %v171_v29  ;;  %v186_v34 = vmax.f32 %v182_v28, 0.0 }
  0xfd   :  { %v181_v33 = vadd.f32 %v235_v27, %v169_v31  ;;  %v184_v36 = vmax.f32 %v180_v30, 0.0 }
  0xfe   :  { %v187_v35 = vmax.f32 %v183_v32, 0.0 }
  0xff   :  { %v185_v37 = vmax.f32 %v181_v33, 0.0 }
 0x100   :  { %v248_v38 = vpack.c.bf16 %v187_v35, %v186_v34 }
 0x101   :  { %v243_v39 = vpack.c.bf16 %v185_v37, %v184_v36 }
 0x102   :  { %251 = vst [vmem:[%s375_s5 + $0x8] sm:$0xff] %v248_v38  }
 0x103   :  { %244 = vst [vmem:[%s375_s5] sm:$0xff] %v243_v39  }

// kernel: encoder_forward.83
= control target key start
LH: loop header
LB: loop body
LE: loop exit
PB: predicated region body
PF: predicated region fallthrough
CT: control target
= control target key end

     0   :  { %v194_v0 = vmov 0.0   ;;  %vm195_vm0 = vmmov 0   ;;  %s257_s1 = inlined_call_operand.vmem [shape: bf16[1,128,128], index: 1, kind: input, shape index: {}]   ;;  %s258_s0 = inlined_call_operand.vmem [shape: bf16[1,8,128], index: 0, kind: input, shape index: {}]   ;;  %s259_s2 = inlined_call_operand.vmem [shape: f32[1,1,128], index: 2, kind: input, shape index: {}]   ;;  %s260_s3 = inlined_call_operand.vmem [shape: f32[1,1,128], index: 3, kind: input, shape index: {}]   ;;  %s261_s4 = inlined_call_operand.vmem [shape: bf16[1,8,128], index: 4, kind: output, shape index: {}]  }
   0x1   :  { %164 = vmatprep.subr.bf16.mxu0 %v194_v0  ;;  %v186_v1 = vld [vmem:[%s257_s1] sm:$0xff]   ;;  %180 = vmatprep.mubr.msk.bf16.mxu0 %vm195_vm0, %v194_v0  ;;  %v187_v2 = vld [vmem:[%s257_s1 + $0x8] sm:$0xff]   ;;  %v188_v3 = vld [vmem:[%s257_s1 + $0x10] sm:$0xff]  }
   0x2   :  { %165 = vmatpush3.bf16.msra.mxu0 %v186_v1  ;;  %v189_v4 = vld [vmem:[%s257_s1 + $0x18] sm:$0xff]   ;;  %v190_v5 = vld [vmem:[%s257_s1 + $0x20] sm:$0xff]   ;;  %v191_v6 = vld [vmem:[%s257_s1 + $0x28] sm:$0xff]  }
   0x3   :  { %166 = vmatprep.subr.bf16.mxu0 %v194_v0  ;;  %v192_v7 = vld [vmem:[%s257_s1 + $0x30] sm:$0xff]   ;;  %v193_v8 = vld [vmem:[%s257_s1 + $0x38] sm:$0xff]   ;;  %v18_v9 = vld [vmem:[%s258_s0] sm:$0xf] }
   0x4   :  { %v153_v10 = vld [vmem:[%s259_s2] ss:$0 sm:$0xff] }
   0x5   :  { %v154_v12 = vld [vmem:[%s260_s3] ss:$0 sm:$0xff] }
   0x6   :  { %167 = vmatpush3.bf16.msra.mxu0 %v187_v2 }
   0x7   :  { %168 = vmatprep.subr.bf16.mxu0 %v194_v0 }
   0xa   :  { %169 = vmatpush3.bf16.msra.mxu0 %v188_v3 }
   0xb   :  { %170 = vmatprep.subr.bf16.mxu0 %v194_v0 }
   0xe   :  { %171 = vmatpush3.bf16.msra.mxu0 %v189_v4 }
   0xf   :  { %172 = vmatprep.subr.bf16.mxu0 %v194_v0 }
  0x12   :  { %173 = vmatpush3.bf16.msra.mxu0 %v190_v5 }
  0x13   :  { %174 = vmatprep.subr.bf16.mxu0 %v194_v0 }
  0x16   :  { %175 = vmatpush3.bf16.msra.mxu0 %v191_v6 }
  0x17   :  { %176 = vmatprep.subr.bf16.mxu0 %v194_v0 }
  0x1a   :  { %177 = vmatpush3.bf16.msra.mxu0 %v192_v7 }
  0x1b   :  { %178 = vmatprep.subr.bf16.mxu0 %v194_v0 }
  0x1e   :  { %179 = vmatpush3.bf16.msra.mxu0 %v193_v8 }
  0x21   :  { %181 = vmatmul.mubr.bf16.vlgmr.msra.gmra.mrb[0].mxu0 %v18_v9 }
  0xf4   :  { %v117_v11 = vpop.f32.mrb[0].mxu0 }
  0xf5   :  { %v130_v13 = vmul.f32 %v153_v10, %v117_v11  ;;  %v182_v14 = vpop.f32.mrb[1].mxu0 }
  0xf6   :  { %v120_v15 = vpop.f32.mrb[2].mxu0 }
  0xf7   :  { %v138_v16 = vadd.f32 %v154_v12, %v130_v13  ;;  %v183_v17 = vpop.f32.mrb[3].mxu0 }
  0xf9   :  { %v139_v18 = vpack.c.bf16 %v138_v16, %v138_v16 }
  0xfb   :  { %140 = vst [vmem:[%s261_s4] sm:$0xf] %v139_v18 }

// kernel: encoder_forward.82
= control target key start
LH: loop header
LB: loop body
LE: loop exit
PB: predicated region body
PF: predicated region fallthrough
CT: control target
= control target key end

     0   :  { %s804_s15 = smov 0   ;;  %s806_s16 = smov 0   ;;  %s871_s0 = inlined_call_operand.vmem [shape: bf16[2,8,256], index: 0, kind: input, shape index: {}]   ;;  %s872_s1 = inlined_call_operand.vmem [shape: bf16[2,256,128], index: 1, kind: input, shape index: {}]   ;;  %s873_s2 = inlined_call_operand.vmem [shape: f32[2,1,128], index: 2, kind: input, shape index: {}]   ;;  %s874_s3 = inlined_call_operand.vmem [shape: f32[2,1,128], index: 3, kind: input, shape index: {}]   ;;  %s875_s4 = inlined_call_operand.vmem [shape: bf16[2,8,128], index: 4, kind: output, shape index: {}]  }
   0x1   :  { %s808_s17 = smov 0  }
   0x2 LB: > { %s33_s18 = sadd.s32 1, %s773_s16  ;;  %p661_p0 = scmp.ge.s32.totalorder %s777_s17, 1  ;;  %s777_s17 = sphi %s808_s17, %s14_s17   ;;  %s773_s16 = sphi %s806_s16, %s877_s16   ;;  %s769_s15 = sphi %s804_s15, %s876_s15  }
   0x3   : > { %p35_p1 = scmp.ge.s32.totalorder %s33_s18, 2  ;;  %p232_p2 = scmp.lt.s32.totalorder %s777_s17, 3 }
   0x5   : > { %s879_s18 = smov (%p35_p1, %s33_s18), 0  ;;  %p233_p3 = pnand %p661_p0, %p232_p2 }
   0x6   : > { %p287_p4 = scmp.lt.s32.totalorder (!%p233_p3), %s769_s15, 1 }
   0x7   : > { %236 = sbr.rel (%p233_p3) target bundleno = 274 (0x112), region = 36 }
   0xe   : > { %s881_s15 = smov (!%p287_p4, %s769_s15), 1 }
   0xf   : > { %s690_s19 = sshll.u32 %s881_s15, 7  ;;  %s689_s23 = sshll.u32 %s881_s15, 3 }
  0x10   : > { %s828_s22 = scalar_lea.vmem %s872_s1, %s690_s19  ;;  %s295_s26 = scalar_lea.vmem %s871_s0, %s689_s23 }
  0x11   : > { %v737_v0 = vld [vmem:[%s828_s22 + $0x40] sm:$0xff]   ;;  %v739_v2 = vld [vmem:[%s828_s22 + $0x48] sm:$0xff]   ;;  %v741_v4 = vld [vmem:[%s828_s22 + $0x50] sm:$0xff]   ;;  %s309_s29 = scalar_lea.vmem %s873_s2, %s881_s15  ;;  %s315_s6 = scalar_lea.vmem %s874_s3, %s881_s15 }
  0x12   : > { %v738_v1 = vld [vmem:[%s828_s22] sm:$0xff]   ;;  %691 = vmatprep.subr.bf16.mxu0 %v737_v0  ;;  %v740_v3 = vld [vmem:[%s828_s22 + $0x8] sm:$0xff]   ;;  %v742_v5 = vld [vmem:[%s828_s22 + $0x10] sm:$0xff]   ;;  %s666_s7 = sshll.u32 %s881_s15, 2 }
  0x13   : > { %692 = vmatpush3.bf16.msra.mxu0 %v738_v1  ;;  %v743_v6 = vld [vmem:[%s828_s22 + $0x58] sm:$0xff]   ;;  %v745_v8 = vld [vmem:[%s828_s22 + $0x60] sm:$0xff]   ;;  %v747_v10 = vld [vmem:[%s828_s22 + $0x68] sm:$0xff]   ;;  %s325_s10 = scalar_lea.vmem %s875_s4, %s666_s7 }
  0x14   : > { %693 = vmatprep.subr.bf16.mxu0 %v739_v2  ;;  %v744_v7 = vld [vmem:[%s828_s22 + $0x18] sm:$0xff]   ;;  %v746_v9 = vld [vmem:[%s828_s22 + $0x20] sm:$0xff]   ;;  %v748_v13 = vld [vmem:[%s828_s22 + $0x28] sm:$0xff]  }
  0x15   : > { %v327_v11 = vld [vmem:[%s295_s26] sm:$0xff]  ;;  %v749_v14 = vld [vmem:[%s828_s22 + $0x70] sm:$0xff]   ;;  %v751_v16 = vld [vmem:[%s828_s22 + $0x78] sm:$0xff]  }
  0x16   : > { %v668_v12 = vcombine.high %v327_v11, %v327_v11  ;;  %v750_v15 = vld [vmem:[%s828_s22 + $0x30] sm:$0xff]   ;;  %v752_v17 = vld [vmem:[%s828_s22 + $0x38] sm:$0xff]   ;;  %v667_v18 = vcombine.low %v327_v11, %v327_v11  ;;  %v685_v21 = vld [vmem:[%s309_s29] ss:$0 sm:$0xff] }
  0x17   : > { %694 = vmatpush3.bf16.msra.mxu0 %v740_v3  ;;  %v686_v24 = vld [vmem:[%s315_s6] ss:$0 sm:$0xff] }
  0x18   : > { %695 = vmatprep.subr.bf16.mxu0 %v741_v4  ;;  %495 = vmatprep.mubr.bf16.mxu0 %v668_v12 }
  0x1b   : > { %696 = vmatpush3.bf16.msra.mxu0 %v742_v5 }
  0x1c   : > { %697 = vmatprep.subr.bf16.mxu0 %v743_v6 }
  0x1f   : > { %698 = vmatpush3.bf16.msra.mxu0 %v744_v7 }
  0x20   : > { %699 = vmatprep.subr.bf16.mxu0 %v745_v8 }
  0x23   : > { %700 = vmatpush3.bf16.msra.mxu0 %v746_v9 }
  0x24   : > { %701 = vmatprep.subr.bf16.mxu0 %v747_v10 }
  0x27   : > { %702 = vmatpush3.bf16.msra.mxu0 %v748_v13 }
  0x28   : > { %703 = vmatprep.subr.bf16.mxu0 %v749_v14 }
  0x2b   : > { %704 = vmatpush3.bf16.msra.mxu0 %v750_v15 }
  0x2c   : > { %705 = vmatprep.subr.bf16.mxu0 %v751_v16 }
  0x2f   : > { %706 = vmatpush3.bf16.msra.mxu0 %v752_v17 }
  0x32   : > { %496 = vmatmul.mubr.bf16.vlgmr.msra.gmra.mrb[0].mxu0 %v667_v18 }
 0x105   : > { %v707_v19 = vpop.f32.mrb[0].mxu0 }
 0x106   : > { %v708_v20 = vpop.f32.mrb[1].mxu0 }
 0x107   : > { %v709_v22 = vadd.f32 %v708_v20, %v707_v19  ;;  %v710_v23 = vpop.f32.mrb[2].mxu0 }
 0x108   : > { %v711_v25 = vpop.f32.mrb[3].mxu0 }
 0x109   : > { %v510_v26 = vmul.f32 %v709_v22, %v685_v21 }
 0x10b   : > { %v518_v27 = vadd.f32 %v686_v24, %v510_v26 }
 0x10d   : > { %v519_v28 = vmax.f32 %v518_v27, 0.0 }
 0x10f   : > { %v520_v29 = vpack.c.bf16 %v519_v28, %v519_v28 }
 0x111   : > { %521 = vst [vmem:[%s325_s10] sm:$0xf] %v520_v29 }
 0x112 PF: > { %s14_s17 = sadd.s32 1, %s777_s17   ;;  %s876_s15 = smov %s773_s16 }
 0x113   : > { %p11_p5 = scmp.ge.s32.totalorder %s14_s17, 4   ;;  %s877_s16 = smov %s879_s18 }
 0x115   :  { %13 = sbr.rel (!%p11_p5) target bundleno = 2 (0x2), region = 75 }

// kernel: encoder_forward.85
= control target key start
LH: loop header
LB: loop body
LE: loop exit
PB: predicated region body
PF: predicated region fallthrough
CT: control target
= control target key end

     0   :  { %v195_v0 = vmov 0.0   ;;  %vm196_vm0 = vmmov 0   ;;  %s258_s1 = inlined_call_operand.vmem [shape: bf16[1,128,128], index: 1, kind: input, shape index: {}]   ;;  %s259_s0 = inlined_call_operand.vmem [shape: bf16[1,8,128], index: 0, kind: input, shape index: {}]   ;;  %s260_s2 = inlined_call_operand.vmem [shape: f32[1,1,128], index: 2, kind: input, shape index: {}]   ;;  %s261_s3 = inlined_call_operand.vmem [shape: f32[1,1,128], index: 3, kind: input, shape index: {}]   ;;  %s262_s4 = inlined_call_operand.vmem [shape: bf16[1,8,128], index: 4, kind: output, shape index: {}]  }
   0x1   :  { %165 = vmatprep.subr.bf16.mxu0 %v195_v0  ;;  %v187_v1 = vld [vmem:[%s258_s1] sm:$0xff]   ;;  %181 = vmatprep.mubr.msk.bf16.mxu0 %vm196_vm0, %v195_v0  ;;  %v188_v2 = vld [vmem:[%s258_s1 + $0x8] sm:$0xff]   ;;  %v189_v3 = vld [vmem:[%s258_s1 + $0x10] sm:$0xff]  }
   0x2   :  { %166 = vmatpush3.bf16.msra.mxu0 %v187_v1  ;;  %v190_v4 = vld [vmem:[%s258_s1 + $0x18] sm:$0xff]   ;;  %v191_v5 = vld [vmem:[%s258_s1 + $0x20] sm:$0xff]   ;;  %v192_v6 = vld [vmem:[%s258_s1 + $0x28] sm:$0xff]  }
   0x3   :  { %167 = vmatprep.subr.bf16.mxu0 %v195_v0  ;;  %v193_v7 = vld [vmem:[%s258_s1 + $0x30] sm:$0xff]   ;;  %v194_v8 = vld [vmem:[%s258_s1 + $0x38] sm:$0xff]   ;;  %v18_v9 = vld [vmem:[%s259_s0] sm:$0xf] }
   0x4   :  { %v154_v10 = vld [vmem:[%s260_s2] ss:$0 sm:$0xff] }
   0x5   :  { %v155_v12 = vld [vmem:[%s261_s3] ss:$0 sm:$0xff] }
   0x6   :  { %168 = vmatpush3.bf16.msra.mxu0 %v188_v2 }
   0x7   :  { %169 = vmatprep.subr.bf16.mxu0 %v195_v0 }
   0xa   :  { %170 = vmatpush3.bf16.msra.mxu0 %v189_v3 }
   0xb   :  { %171 = vmatprep.subr.bf16.mxu0 %v195_v0 }
   0xe   :  { %172 = vmatpush3.bf16.msra.mxu0 %v190_v4 }
   0xf   :  { %173 = vmatprep.subr.bf16.mxu0 %v195_v0 }
  0x12   :  { %174 = vmatpush3.bf16.msra.mxu0 %v191_v5 }
  0x13   :  { %175 = vmatprep.subr.bf16.mxu0 %v195_v0 }
  0x16   :  { %176 = vmatpush3.bf16.msra.mxu0 %v192_v6 }
  0x17   :  { %177 = vmatprep.subr.bf16.mxu0 %v195_v0 }
  0x1a   :  { %178 = vmatpush3.bf16.msra.mxu0 %v193_v7 }
  0x1b   :  { %179 = vmatprep.subr.bf16.mxu0 %v195_v0 }
  0x1e   :  { %180 = vmatpush3.bf16.msra.mxu0 %v194_v8 }
  0x21   :  { %182 = vmatmul.mubr.bf16.vlgmr.msra.gmra.mrb[0].mxu0 %v18_v9 }
  0xf4   :  { %v117_v11 = vpop.f32.mrb[0].mxu0 }
  0xf5   :  { %v130_v13 = vmul.f32 %v154_v10, %v117_v11  ;;  %v183_v14 = vpop.f32.mrb[1].mxu0 }
  0xf6   :  { %v120_v15 = vpop.f32.mrb[2].mxu0 }
  0xf7   :  { %v138_v16 = vadd.f32 %v155_v12, %v130_v13  ;;  %v184_v17 = vpop.f32.mrb[3].mxu0 }
  0xf9   :  { %v139_v18 = vmax.f32 %v138_v16, 0.0 }
  0xfb   :  { %v140_v19 = vpack.c.bf16 %v139_v18, %v139_v18 }
  0xfd   :  { %141 = vst [vmem:[%s262_s4] sm:$0xf] %v140_v19 }

// kernel: encoder_forward.84
= control target key start
LH: loop header
LB: loop body
LE: loop exit
PB: predicated region body
PF: predicated region fallthrough
CT: control target
= control target key end

     0   :  { %v201_v0 = vmov 0.0   ;;  %vm202_vm0 = vmmov 0   ;;  %s272_s1 = inlined_call_operand.vmem [shape: bf16[1,128,128], index: 1, kind: input, shape index: {}]   ;;  %s273_s0 = inlined_call_operand.vmem [shape: bf16[1,8,128], index: 0, kind: input, shape index: {}]   ;;  %s274_s2 = inlined_call_operand.vmem [shape: f32[1,1,128], index: 2, kind: input, shape index: {}]   ;;  %s275_s4 = inlined_call_operand.vmem [shape: bf16[1,8,128], index: 4, kind: input, shape index: {}]   ;;  %s276_s3 = inlined_call_operand.vmem [shape: f32[1,1,128], index: 3, kind: input, shape index: {}]   ;;  %s277_s5 = inlined_call_operand.vmem [shape: bf16[1,8,128], index: 5, kind: output, shape index: {}]  }
   0x1   :  { %171 = vmatprep.subr.bf16.mxu0 %v201_v0  ;;  %v193_v1 = vld [vmem:[%s272_s1] sm:$0xff]   ;;  %187 = vmatprep.mubr.msk.bf16.mxu0 %vm202_vm0, %v201_v0  ;;  %v194_v2 = vld [vmem:[%s272_s1 + $0x8] sm:$0xff]   ;;  %v195_v3 = vld [vmem:[%s272_s1 + $0x10] sm:$0xff]  }
   0x2   :  { %172 = vmatpush3.bf16.msra.mxu0 %v193_v1  ;;  %v196_v4 = vld [vmem:[%s272_s1 + $0x18] sm:$0xff]   ;;  %v197_v5 = vld [vmem:[%s272_s1 + $0x20] sm:$0xff]   ;;  %v198_v6 = vld [vmem:[%s272_s1 + $0x28] sm:$0xff]  }
   0x3   :  { %173 = vmatprep.subr.bf16.mxu0 %v201_v0  ;;  %v199_v7 = vld [vmem:[%s272_s1 + $0x30] sm:$0xff]   ;;  %v200_v8 = vld [vmem:[%s272_s1 + $0x38] sm:$0xff]   ;;  %v21_v9 = vld [vmem:[%s273_s0] sm:$0xf] }
   0x4   :  { %v160_v10 = vld [vmem:[%s274_s2] ss:$0 sm:$0xff] }
   0x5   :  { %v142_v11 = vld [vmem:[%s275_s4] sm:$0xf] }
   0x6   :  { %174 = vmatpush3.bf16.msra.mxu0 %v194_v2  ;;  %v161_v13 = vld [vmem:[%s276_s3] ss:$0 sm:$0xff]  ;;  %v143_v15 = vunpack.c.l.bf16 %v142_v11 }
   0x7   :  { %175 = vmatprep.subr.bf16.mxu0 %v201_v0 }
   0xa   :  { %176 = vmatpush3.bf16.msra.mxu0 %v195_v3 }
   0xb   :  { %177 = vmatprep.subr.bf16.mxu0 %v201_v0 }
   0xe   :  { %178 = vmatpush3.bf16.msra.mxu0 %v196_v4 }
   0xf   :  { %179 = vmatprep.subr.bf16.mxu0 %v201_v0 }
  0x12   :  { %180 = vmatpush3.bf16.msra.mxu0 %v197_v5 }
  0x13   :  { %181 = vmatprep.subr.bf16.mxu0 %v201_v0 }
  0x16   :  { %182 = vmatpush3.bf16.msra.mxu0 %v198_v6 }
  0x17   :  { %183 = vmatprep.subr.bf16.mxu0 %v201_v0 }
  0x1a   :  { %184 = vmatpush3.bf16.msra.mxu0 %v199_v7 }
  0x1b   :  { %185 = vmatprep.subr.bf16.mxu0 %v201_v0 }
  0x1e   :  { %186 = vmatpush3.bf16.msra.mxu0 %v200_v8 }
  0x21   :  { %188 = vmatmul.mubr.bf16.vlgmr.msra.gmra.mrb[0].mxu0 %v21_v9 }
  0xf4   :  { %v120_v12 = vpop.f32.mrb[0].mxu0 }
  0xf5   :  { %v133_v14 = vmul.f32 %v160_v10, %v120_v12  ;;  %v189_v16 = vpop.f32.mrb[1].mxu0 }
  0xf6   :  { %v123_v17 = vpop.f32.mrb[2].mxu0 }
  0xf7   :  { %v141_v18 = vadd.f32 %v161_v13, %v133_v14  ;;  %v190_v19 = vpop.f32.mrb[3].mxu0 }
  0xf9   :  { %v144_v20 = vadd.f32 %v143_v15, %v141_v18 }
  0xfb   :  { %v145_v21 = vmax.f32 %v144_v20, 0.0 }
  0xfd   :  { %v146_v22 = vpack.c.bf16 %v145_v21, %v145_v21 }
  0xff   :  { %147 = vst [vmem:[%s277_s5] sm:$0xf] %v146_v22 }

// kernel: encoder_forward.101
= control target key start
LH: loop header
LB: loop body
LE: loop exit
PB: predicated region body
PF: predicated region fallthrough
CT: control target
= control target key end

     0   :  { %s962_s15 = smov 0   ;;  %s964_s16 = smov 0   ;;  %s1046_s0 = inlined_call_operand.vmem [shape: bf16[2,8,384], index: 0, kind: input, shape index: {}]   ;;  %s1047_s1 = inlined_call_operand.vmem [shape: bf16[2,384,128], index: 1, kind: input, shape index: {}]   ;;  %s1048_s2 = inlined_call_operand.vmem [shape: f32[2,1,128], index: 2, kind: input, shape index: {}]   ;;  %s1049_s3 = inlined_call_operand.vmem [shape: f32[2,1,128], index: 3, kind: input, shape index: {}]   ;;  %s1050_s4 = inlined_call_operand.vmem [shape: bf16[2,8,128], index: 4, kind: output, shape index: {}]  }
   0x1   :  { %s966_s17 = smov 0  }
   0x2 LB: > { %s33_s18 = sadd.s32 1, %s929_s16  ;;  %p770_p0 = scmp.ge.s32.totalorder %s933_s17, 1  ;;  %s933_s17 = sphi %s966_s17, %s14_s17   ;;  %s929_s16 = sphi %s964_s16, %s1052_s16   ;;  %s925_s15 = sphi %s962_s15, %s1051_s15  }
   0x3   : > { %p35_p1 = scmp.ge.s32.totalorder %s33_s18, 2  ;;  %p232_p2 = scmp.lt.s32.totalorder %s933_s17, 3 }
   0x5   : > { %s1054_s18 = smov (%p35_p1, %s33_s18), 0  ;;  %p233_p3 = pnand %p770_p0, %p232_p2 }
   0x6   : > { %p287_p4 = scmp.lt.s32.totalorder (!%p233_p3), %s925_s15, 1  ;;  %v935_v0 = vmov (!%p233_p3), 0.0   ;;  %vm936_vm0 = vmmov (!%p233_p3), 0  }
   0x7   : > { %236 = sbr.rel (%p233_p3) target bundleno = 277 (0x115), region = 36  ;;  %836 = vmatprep.subr.bf16.mxu1 (!%p233_p3), %v935_v0  ;;  %852 = vmatprep.mubr.msk.bf16.mxu1 (!%p233_p3), %vm936_vm0, %v935_v0 }
   0xe   : > { %s1056_s15 = smov (!%p287_p4, %s925_s15), 1 }
   0xf   : > { %s857_s19 = smul.u32 192, %s1056_s15  ;;  %s309_s29 = scalar_lea.vmem %s1048_s2, %s1056_s15 }
  0x10   : > { %s856_s23 = smul.u32 12, %s1056_s15  ;;  %s315_s6 = scalar_lea.vmem %s1049_s3, %s1056_s15  ;;  %v801_v35 = vld [vmem:[%s309_s29] ss:$0 sm:$0xff] }
  0x11   : > { %s988_s22 = scalar_lea.vmem %s1047_s1, %s857_s19  ;;  %v802_v40 = vld [vmem:[%s315_s6] ss:$0 sm:$0xff]  ;;  %s773_s7 = sshll.u32 %s1056_s15, 2 }
  0x12   : > { %v884_v1 = vld [vmem:[%s988_s22 + $0x40] sm:$0xff]   ;;  %v887_v4 = vld [vmem:[%s988_s22 + $0x48] sm:$0xff]   ;;  %v890_v7 = vld [vmem:[%s988_s22 + $0x50] sm:$0xff]   ;;  %s295_s26 = scalar_lea.vmem %s1046_s0, %s856_s23  ;;  %s325_s10 = scalar_lea.vmem %s1050_s4, %s773_s7 }
  0x13   : > { %v885_v2 = vld [vmem:[%s988_s22] sm:$0xff]   ;;  %805 = vmatprep.subr.bf16.mxu0 %v884_v1  ;;  %v888_v5 = vld [vmem:[%s988_s22 + $0x8] sm:$0xff]   ;;  %v891_v8 = vld [vmem:[%s988_s22 + $0x10] sm:$0xff]  }
  0x14   : > { %v886_v3 = vld [vmem:[%s988_s22 + $0x80] sm:$0xff]   ;;  %806 = vmatpush3.bf16.msra.mxu0 %v885_v2  ;;  %v889_v6 = vld [vmem:[%s988_s22 + $0x88] sm:$0xff]   ;;  %v892_v9 = vld [vmem:[%s988_s22 + $0x90] sm:$0xff]  }
  0x15   : > { %837 = vmatpush3.bf16.msra.mxu1 %v886_v3  ;;  %807 = vmatprep.subr.bf16.mxu0 %v887_v4  ;;  %v893_v10 = vld [vmem:[%s988_s22 + $0x58] sm:$0xff]   ;;  %v896_v13 = vld [vmem:[%s988_s22 + $0x60] sm:$0xff]   ;;  %v899_v16 = vld [vmem:[%s988_s22 + $0x68] sm:$0xff]  }
  0x16   : > { %838 = vmatprep.subr.bf16.mxu1 %v935_v0  ;;  %v894_v11 = vld [vmem:[%s988_s22 + $0x18] sm:$0xff]   ;;  %v897_v14 = vld [vmem:[%s988_s22 + $0x20] sm:$0xff]   ;;  %v900_v17 = vld [vmem:[%s988_s22 + $0x28] sm:$0xff]  }
  0x17   : > { %v895_v12 = vld [vmem:[%s988_s22 + $0x98] sm:$0xff]   ;;  %v898_v15 = vld [vmem:[%s988_s22 + $0xa0] sm:$0xff]   ;;  %v901_v18 = vld [vmem:[%s988_s22 + $0xa8] sm:$0xff]  }
  0x18   : > { %808 = vmatpush3.bf16.msra.mxu0 %v888_v5  ;;  %v902_v19 = vld [vmem:[%s988_s22 + $0x70] sm:$0xff]   ;;  %v905_v22 = vld [vmem:[%s988_s22 + $0x78] sm:$0xff]   ;;  %v327_v23 = vld [vmem:[%s295_s26] sm:$0xff] }
  0x19   : > { %839 = vmatpush3.bf16.msra.mxu1 %v889_v6  ;;  %809 = vmatprep.subr.bf16.mxu0 %v890_v7  ;;  %v903_v20 = vld [vmem:[%s988_s22 + $0x30] sm:$0xff]   ;;  %v775_v24 = vcombine.high %v327_v23, %v327_v23  ;;  %v906_v25 = vld [vmem:[%s988_s22 + $0x38] sm:$0xff]   ;;  %v774_v27 = vcombine.low %v327_v23, %v327_v23  ;;  %v910_v28 = vld [vmem:[%s295_s26 + $0x8] ss:$0 sps:$4 sm:$0xff]  }
  0x1a   : > { %840 = vmatprep.subr.bf16.mxu1 %v935_v0  ;;  %v904_v21 = vld [vmem:[%s988_s22 + $0xb0] sm:$0xff]   ;;  %v907_v26 = vld [vmem:[%s988_s22 + $0xb8] sm:$0xff]  }
  0x1b   : > { %564 = vmatprep.mubr.bf16.mxu0 %v775_v24 }
  0x1c   : > { %810 = vmatpush3.bf16.msra.mxu0 %v891_v8 }
  0x1d   : > { %841 = vmatpush3.bf16.msra.mxu1 %v892_v9  ;;  %811 = vmatprep.subr.bf16.mxu0 %v893_v10 }
  0x1e   : > { %842 = vmatprep.subr.bf16.mxu1 %v935_v0 }
  0x20   : > { %812 = vmatpush3.bf16.msra.mxu0 %v894_v11 }
  0x21   : > { %843 = vmatpush3.bf16.msra.mxu1 %v895_v12  ;;  %813 = vmatprep.subr.bf16.mxu0 %v896_v13 }
  0x22   : > { %844 = vmatprep.subr.bf16.mxu1 %v935_v0 }
  0x24   : > { %814 = vmatpush3.bf16.msra.mxu0 %v897_v14 }
  0x25   : > { %845 = vmatpush3.bf16.msra.mxu1 %v898_v15  ;;  %815 = vmatprep.subr.bf16.mxu0 %v899_v16 }
  0x26   : > { %846 = vmatprep.subr.bf16.mxu1 %v935_v0 }
  0x28   : > { %816 = vmatpush3.bf16.msra.mxu0 %v900_v17 }
  0x29   : > { %847 = vmatpush3.bf16.msra.mxu1 %v901_v18  ;;  %817 = vmatprep.subr.bf16.mxu0 %v902_v19 }
  0x2a   : > { %848 = vmatprep.subr.bf16.mxu1 %v935_v0 }
  0x2c   : > { %818 = vmatpush3.bf16.msra.mxu0 %v903_v20 }
  0x2d   : > { %849 = vmatpush3.bf16.msra.mxu1 %v904_v21  ;;  %819 = vmatprep.subr.bf16.mxu0 %v905_v22 }
  0x2e   : > { %850 = vmatprep.subr.bf16.mxu1 %v935_v0 }
  0x30   : > { %820 = vmatpush3.bf16.msra.mxu0 %v906_v25 }
  0x31   : > { %851 = vmatpush3.bf16.msra.mxu1 %v907_v26 }
  0x33   : > { %565 = vmatmul.mubr.bf16.vlgmr.msra.gmra.mrb[0].mxu0 %v774_v27 }
  0x34   : > { %853 = vmatmul.mubr.bf16.vlgmr.msra.gmra.mrb[0].mxu1 %v910_v28 }
 0x106   : > { %v821_v29 = vpop.f32.mrb[0].mxu0 }
 0x107   : > { %v606_v30 = vpop.f32.mrb[0].mxu1  ;;  %v822_v31 = vpop.f32.mrb[1].mxu0 }
 0x108   : > { %v823_v32 = vadd.f32 %v822_v31, %v821_v29  ;;  %v854_v33 = vpop.f32.mrb[1].mxu1  ;;  %v824_v34 = vpop.f32.mrb[2].mxu0 }
 0x109   : > { %v609_v36 = vpop.f32.mrb[2].mxu1  ;;  %v825_v37 = vpop.f32.mrb[3].mxu0 }
 0x10a   : > { %v607_v38 = vadd.f32 %v823_v32, %v606_v30  ;;  %v855_v39 = vpop.f32.mrb[3].mxu1 }
 0x10c   : > { %v619_v41 = vmul.f32 %v801_v35, %v607_v38 }
 0x10e   : > { %v627_v42 = vadd.f32 %v802_v40, %v619_v41 }
 0x110   : > { %v628_v43 = vmax.f32 %v627_v42, 0.0 }
 0x112   : > { %v629_v44 = vpack.c.bf16 %v628_v43, %v628_v43 }
 0x114   : > { %630 = vst [vmem:[%s325_s10] sm:$0xf] %v629_v44 }
 0x115 PF: > { %s14_s17 = sadd.s32 1, %s933_s17   ;;  %s1051_s15 = smov %s929_s16 }
 0x116   : > { %p11_p5 = scmp.ge.s32.totalorder %s14_s17, 4   ;;  %s1052_s16 = smov %s1054_s18 }
 0x118   :  { %13 = sbr.rel (!%p11_p5) target bundleno = 2 (0x2), region = 75 }

// kernel: encoder_forward.110
= control target key start
LH: loop header
LB: loop body
LE: loop exit
PB: predicated region body
PF: predicated region fallthrough
CT: control target
= control target key end

     0   :  { %s175_s6 = smov 0   ;;  %s195_s0 = inlined_call_operand.vmem [shape: bf16[2,1,64], index: 0, kind: input, shape index: {}]   ;;  %s196_s1 = inlined_call_operand.vmem [shape: f32[2,1,64], index: 1, kind: output, shape index: {}]  }
   0x1 LB: > { %s156_s7 = sadd.s32 4294967295, %s177_s6   ;;  %p160_p0 = scmp.ge.s32.totalorder %s177_s6, 1  ;;  %s177_s6 = sphi %s175_s6, %s11_s6  }
   0x2   : > { %p85_p1 = scmp.lt.s32.totalorder %s177_s6, 3 }
   0x4   : > { %p86_p2 = pnand %p160_p0, %p85_p1 }
   0x5   : > { %p101_p3 = scmp.lt.s32.totalorder (!%p86_p2), %s156_s7, 1  ;;  %vm110_vm0 = vcmask (!%p86_p2), 516096  }
   0x6   : > { %89 = sbr.rel (%p86_p2) target bundleno = 19 (0x13), region = 24 }
   0xd   : > { %s198_s7 = smov (!%p101_p3, %s156_s7), 1 }
   0xe   : > { %s103_s10 = scalar_lea.vmem %s195_s0, %s198_s7  ;;  %s106_s13 = scalar_lea.vmem %s196_s1, %s198_s7 }
   0xf   : > { %v107_v0 = vld [vmem:[%s103_s10] sm:$0x1] }
  0x10   : > { %v108_v1 = vunpack.c.l.bf16 %v107_v0 }
  0x12   : > { %111 = vst.msk [vmem:[%s106_s13] sm:$0x1] %vm110_vm0, %v108_v1 }
  0x13 PF: > { %s11_s6 = sadd.s32 1, %s177_s6  }
  0x14   : > { %p8_p4 = scmp.ge.s32.totalorder %s11_s6, 4  }
  0x16   :  { %10 = sbr.rel (!%p8_p4) target bundleno = 1 (0x1), region = 54 }

// kernel: encoder_forward.111
= control target key start
LH: loop header
LB: loop body
LE: loop exit
PB: predicated region body
PF: predicated region fallthrough
CT: control target
= control target key end

     0   :  { %v193_v0 = vmov 0.0   ;;  %vm194_vm0 = vmmov 0   ;;  %s256_s1 = inlined_call_operand.vmem [shape: bf16[1,128,128], index: 1, kind: input, shape index: {}]   ;;  %s257_s0 = inlined_call_operand.vmem [shape: bf16[1,8,128], index: 0, kind: input, shape index: {}]   ;;  %s258_s2 = inlined_call_operand.vmem [shape: f32[1,1,128], index: 2, kind: input, shape index: {}]   ;;  %s259_s3 = inlined_call_operand.vmem [shape: f32[1,1,128], index: 3, kind: input, shape index: {}]   ;;  %s260_s4 = inlined_call_operand.vmem [shape: f32[1,8,128], index: 4, kind: output, shape index: {}]  }
   0x1   :  { %163 = vmatprep.subr.bf16.mxu0 %v193_v0  ;;  %v185_v1 = vld [vmem:[%s256_s1] sm:$0xff]   ;;  %179 = vmatprep.mubr.msk.bf16.mxu0 %vm194_vm0, %v193_v0  ;;  %v186_v2 = vld [vmem:[%s256_s1 + $0x8] sm:$0xff]   ;;  %v187_v3 = vld [vmem:[%s256_s1 + $0x10] sm:$0xff]  }
   0x2   :  { %164 = vmatpush3.bf16.msra.mxu0 %v185_v1  ;;  %v188_v4 = vld [vmem:[%s256_s1 + $0x18] sm:$0xff]   ;;  %v189_v5 = vld [vmem:[%s256_s1 + $0x20] sm:$0xff]   ;;  %v190_v6 = vld [vmem:[%s256_s1 + $0x28] sm:$0xff]  }
   0x3   :  { %165 = vmatprep.subr.bf16.mxu0 %v193_v0  ;;  %v191_v7 = vld [vmem:[%s256_s1 + $0x30] sm:$0xff]   ;;  %v192_v8 = vld [vmem:[%s256_s1 + $0x38] sm:$0xff]   ;;  %v18_v9 = vld [vmem:[%s257_s0] sm:$0xf] }
   0x4   :  { %v152_v10 = vld [vmem:[%s258_s2] ss:$0 sm:$0xff] }
   0x5   :  { %v153_v12 = vld [vmem:[%s259_s3] ss:$0 sm:$0xff] }
   0x6   :  { %166 = vmatpush3.bf16.msra.mxu0 %v186_v2 }
   0x7   :  { %167 = vmatprep.subr.bf16.mxu0 %v193_v0 }
   0xa   :  { %168 = vmatpush3.bf16.msra.mxu0 %v187_v3 }
   0xb   :  { %169 = vmatprep.subr.bf16.mxu0 %v193_v0 }
   0xe   :  { %170 = vmatpush3.bf16.msra.mxu0 %v188_v4 }
   0xf   :  { %171 = vmatprep.subr.bf16.mxu0 %v193_v0 }
  0x12   :  { %172 = vmatpush3.bf16.msra.mxu0 %v189_v5 }
  0x13   :  { %173 = vmatprep.subr.bf16.mxu0 %v193_v0 }
  0x16   :  { %174 = vmatpush3.bf16.msra.mxu0 %v190_v6 }
  0x17   :  { %175 = vmatprep.subr.bf16.mxu0 %v193_v0 }
  0x1a   :  { %176 = vmatpush3.bf16.msra.mxu0 %v191_v7 }
  0x1b   :  { %177 = vmatprep.subr.bf16.mxu0 %v193_v0 }
  0x1e   :  { %178 = vmatpush3.bf16.msra.mxu0 %v192_v8 }
  0x21   :  { %180 = vmatmul.mubr.bf16.vlgmr.msra.gmra.mrb[0].mxu0 %v18_v9 }
  0xf4   :  { %v117_v11 = vpop.f32.mrb[0].mxu0 }
  0xf5   :  { %v130_v13 = vmul.f32 %v152_v10, %v117_v11  ;;  %v181_v14 = vpop.f32.mrb[1].mxu0 }
  0xf6   :  { %v120_v15 = vpop.f32.mrb[2].mxu0 }
  0xf7   :  { %v138_v16 = vadd.f32 %v153_v12, %v130_v13  ;;  %v182_v17 = vpop.f32.mrb[3].mxu0 }
  0xf9   :  { %139 = vst [vmem:[%s260_s4] sm:$0xff] %v138_v16 }

</bundles_post_ra>
